<compile_context>
chip_gen: v5e
topology: v5e:2x2
jax: 0.10.0
libtpu: 0.0.40
codegen_flags: <defaults>
</compile_context>

<pallas_src>
import functools

import numpy as np
import jax
import jax.numpy as jnp
from jax.experimental import pallas as pl
from jax.experimental.pallas import tpu as pltpu

# conv geometry: Conv2d(k=8,s=4,32) -> Conv2d(k=4,s=2,64) -> Conv2d(k=3,s=1,64)
K1, S1, C1 = 8, 4, 32
K2, S2, C2 = 4, 2, 64
K3, S3, C3 = 3, 1, 64
HID = 256


def _conv_out(n, k, s):
    return (n - k) // s + 1


# ----------------------------------------------------------------------------
# Fused Pallas kernel: conv1 -> conv2 -> conv3 -> [adv|val] heads -> dueling Q
# ----------------------------------------------------------------------------
def _fused_dqn_kernel(p1_ref, w1_ref, b1_ref, w2_ref, b2_ref, w3_ref, b3_ref,
                      wh1_ref, bh1_ref, wa2_ref, ba2_ref, wv2_ref, bv2_ref,
                      o_ref, *, batch, n_pos2):
    f32 = jnp.float32
    n_taps2 = K2 * K2          # 16 conv2 taps
    m2 = n_pos2 * batch        # rows per conv2 tap block

    # conv1: one im2col GEMM over the (duplicated/reordered) patch rows + ReLU.
    # w1 already contains the folded 1/256 input scale.
    h1 = jnp.dot(p1_ref[...], w1_ref[...], preferred_element_type=f32) + b1_ref[...]
    h1 = jnp.maximum(h1, 0.0)                                    # (16*m2, C1)

    # conv2: sum of 16 tap GEMMs over contiguous row blocks of h1.
    w2 = w2_ref[...]
    acc2 = jnp.dot(h1[0:m2, :], w2[0:C1, :], preferred_element_type=f32)
    for t in range(1, n_taps2):
        acc2 = acc2 + jnp.dot(h1[t * m2:(t + 1) * m2, :],
                              w2[t * C1:(t + 1) * C1, :],
                              preferred_element_type=f32)
    h2 = jnp.maximum(acc2 + b2_ref[...], 0.0)                    # (m2, C2)

    # conv3: 3x3 input -> 1x1 output, so each conv2 spatial position is one tap.
    w3 = w3_ref[...]
    acc3 = jnp.dot(h2[0:batch, :], w3[0:C2, :], preferred_element_type=f32)
    for p in range(1, n_pos2):
        acc3 = acc3 + jnp.dot(h2[p * batch:(p + 1) * batch, :],
                              w3[p * C2:(p + 1) * C2, :],
                              preferred_element_type=f32)
    feat = jnp.maximum(acc3 + b3_ref[...], 0.0)                  # (batch, C3)

    # fused [advantage | value] hidden layer: one lane-dense N=512 GEMM + ReLU.
    hh = jnp.dot(feat, wh1_ref[...], preferred_element_type=f32) + bh1_ref[...]
    hh = jnp.maximum(hh, 0.0)                                    # (batch, 2*HID)

    adv = jnp.dot(hh[:, 0:HID], wa2_ref[...], preferred_element_type=f32) + ba2_ref[...]
    val = jnp.dot(hh[:, HID:2 * HID], wv2_ref[...], preferred_element_type=f32) + bv2_ref[...]

    # dueling combine: Q = V + A - mean(A, axis=1, keepdims=True)
    o_ref[...] = val + adv - jnp.mean(adv, axis=1, keepdims=True)


# ----------------------------------------------------------------------------
# Wrapper-side im2col for conv1 (plain JAX), with rows duplicated & reordered
# as (conv2 tap (i2,j2), conv2 position (oy2,ox2), batch) so the in-kernel
# conv2/conv3 stages only need contiguous row-block slices.
# ----------------------------------------------------------------------------
def _build_conv1_patch_rows(x_nhwc, oh1, ow1, oh2, ow2):
    B, H, W, C = x_nhwc.shape
    cols = []
    for i in range(K1):
        for j in range(K1):
            cols.append(x_nhwc[:, i:i + S1 * (oh1 - 1) + 1:S1,
                               j:j + S1 * (ow1 - 1) + 1:S1, :])   # (B, oh1, ow1, C)
    p = jnp.stack(cols, axis=3).reshape(B, oh1, ow1, K1 * K1 * C)  # cols ordered (kh,kw,c)
    p_flat = p.reshape(B * oh1 * ow1, K1 * K1 * C)

    idx = []
    for i2 in range(K2):
        for j2 in range(K2):
            for oy2 in range(oh2):
                for ox2 in range(ow2):
                    y1 = S2 * oy2 + i2
                    x1 = S2 * ox2 + j2
                    for b in range(B):
                        idx.append((b * oh1 + y1) * ow1 + x1)
    return p_flat[np.asarray(idx, dtype=np.int32)]   # (16 * oh2*ow2 * B, K1*K1*C)


# ----------------------------------------------------------------------------
# Forward pass (matches DuelingDQN.forward semantics)
# ----------------------------------------------------------------------------
def dueling_dqn_forward(x_nchw, kparams):
    B, C, H, W = x_nchw.shape
    n_actions = kparams["wa2"].shape[1]

    oh1, ow1 = _conv_out(H, K1, S1), _conv_out(W, K1, S1)
    oh2, ow2 = _conv_out(oh1, K2, S2), _conv_out(ow1, K2, S2)
    oh3, ow3 = _conv_out(oh2, K3, S3), _conv_out(ow2, K3, S3)
    # TODO(synk): fused kernel assumes the conv stack ends at 1x1 spatial (e.g.
    # 36x36 inputs); larger inputs need a conv3 spatial loop + NCHW flatten.
    assert (oh3, ow3) == (1, 1), (oh3, ow3)

    # pad batch to a sublane multiple so every in-kernel row slice is aligned
    b_pad = max(8, ((B + 7) // 8) * 8)
    if b_pad != B:
        x_nchw = jnp.pad(x_nchw, ((0, b_pad - B), (0, 0), (0, 0), (0, 0)))

    x = jnp.transpose(x_nchw, (0, 2, 3, 1)).astype(jnp.float32)   # NCHW -> NHWC
    p1 = _build_conv1_patch_rows(x, oh1, ow1, oh2, ow2)
    n_pos2 = oh2 * ow2

    args = (p1, kparams["w1"], kparams["b1"], kparams["w2"], kparams["b2"],
            kparams["w3"], kparams["b3"], kparams["wh1"], kparams["bh1"],
            kparams["wa2"], kparams["ba2"], kparams["wv2"], kparams["bv2"])

    kernel = functools.partial(_fused_dqn_kernel, batch=b_pad, n_pos2=n_pos2)
    out = pl.pallas_call(
        kernel,
        out_shape=jax.ShapeDtypeStruct((b_pad, n_actions), jnp.float32),
        grid=(1,),
        in_specs=[pl.BlockSpec(a.shape, lambda i: (0, 0)) for a in args],
        out_specs=pl.BlockSpec((b_pad, n_actions), lambda i: (0, 0)),
        compiler_params=pltpu.CompilerParams(dimension_semantics=("arbitrary",)),
    )(*args)
    return out[:B]


# ----------------------------------------------------------------------------
# Parameters (PyTorch-style uniform(-1/sqrt(fan_in), 1/sqrt(fan_in))) and the
# one-time constant transform into the fused-kernel layout.
# ----------------------------------------------------------------------------
def init_params(key, in_c, n_actions, conv_out_size):
    def uniform(k, shape, fan_in):
        bound = 1.0 / float(fan_in) ** 0.5
        return jax.random.uniform(k, shape, jnp.float32, -bound, bound)

    ks = jax.random.split(key, 16)
    p = {}
    # conv weights stored as (KH*KW*Cin, Cout), row order (kh, kw, cin)
    p["w1"] = uniform(ks[0], (K1 * K1 * in_c, C1), K1 * K1 * in_c)
    p["b1"] = uniform(ks[1], (C1,), K1 * K1 * in_c)
    p["w2"] = uniform(ks[2], (K2 * K2 * C1, C2), K2 * K2 * C1)
    p["b2"] = uniform(ks[3], (C2,), K2 * K2 * C1)
    p["w3"] = uniform(ks[4], (K3 * K3 * C2, C3), K3 * K3 * C2)
    p["b3"] = uniform(ks[5], (C3,), K3 * K3 * C2)
    # advantage head
    p["wa1"] = uniform(ks[6], (conv_out_size, HID), conv_out_size)
    p["ba1"] = uniform(ks[7], (HID,), conv_out_size)
    p["wa2"] = uniform(ks[8], (HID, n_actions), HID)
    p["ba2"] = uniform(ks[9], (n_actions,), HID)
    # value head
    p["wv1"] = uniform(ks[10], (conv_out_size, HID), conv_out_size)
    p["bv1"] = uniform(ks[11], (HID,), conv_out_size)
    p["wv2"] = uniform(ks[12], (HID, 1), HID)
    p["bv2"] = uniform(ks[13], (1,), HID)
    return p


def prepare_params(params):
    """One-time constant transform: fold 1/256 into w1, concat the two heads,
    reshape biases to (1, N) rows for in-kernel broadcasting."""
    kp = {}
    kp["w1"] = (params["w1"] / 256.0).astype(jnp.float32)
    kp["b1"] = params["b1"].reshape(1, -1)
    kp["w2"] = params["w2"]
    kp["b2"] = params["b2"].reshape(1, -1)
    kp["w3"] = params["w3"]
    kp["b3"] = params["b3"].reshape(1, -1)
    kp["wh1"] = jnp.concatenate([params["wa1"], params["wv1"]], axis=1)   # (f, 512)
    kp["bh1"] = jnp.concatenate([params["ba1"], params["bv1"]]).reshape(1, -1)
    kp["wa2"] = params["wa2"]
    kp["ba2"] = params["ba2"].reshape(1, -1)
    kp["wv2"] = params["wv2"]
    kp["bv2"] = params["bv2"].reshape(1, -1)
    return kp


# ----------------------------------------------------------------------------
# Pure-JAX reference (standard per-layer im2col path), for a sanity check.
# ----------------------------------------------------------------------------
def _reference_forward(x_nchw, params):
    hi = jax.lax.Precision.HIGHEST
    x = jnp.transpose(x_nchw, (0, 2, 3, 1)).astype(jnp.float32) / 256.0

    def conv(h, w, b, k, s):
        B, H, W, C = h.shape
        oh, ow = _conv_out(H, k, s), _conv_out(W, k, s)
        cols = []
        for i in range(k):
            for j in range(k):
                cols.append(h[:, i:i + s * (oh - 1) + 1:s, j:j + s * (ow - 1) + 1:s, :])
        p = jnp.stack(cols, axis=3).reshape(B * oh * ow, k * k * C)
        y = jnp.dot(p, w, precision=hi) + b
        return jnp.maximum(y, 0.0).reshape(B, oh, ow, -1)

    h = conv(x, params["w1"], params["b1"], K1, S1)
    h = conv(h, params["w2"], params["b2"], K2, S2)
    h = conv(h, params["w3"], params["b3"], K3, S3)
    B = x.shape[0]
    feat = jnp.transpose(h, (0, 3, 1, 2)).reshape(B, -1)   # PyTorch NCHW flatten
    adv = jnp.maximum(jnp.dot(feat, params["wa1"], precision=hi) + params["ba1"], 0.0)
    adv = jnp.dot(adv, params["wa2"], precision=hi) + params["ba2"]
    val = jnp.maximum(jnp.dot(feat, params["wv1"], precision=hi) + params["bv1"], 0.0)
    val = jnp.dot(val, params["wv2"], precision=hi) + params["bv2"]
    return val + adv - jnp.mean(adv, axis=1, keepdims=True)


if __name__ == "__main__":
    key = jax.random.PRNGKey(0)
    kx, kp = jax.random.split(key)

    # small, conv-consistent shapes: 36 -> 8 -> 3 -> 1 spatial, conv_out_size = 64
    B, C, H, W = 8, 4, 36, 36
    n_actions = 6
    conv_out_size = C3 * 1 * 1

    # emulate uint8 frames (values in [0, 256)); X.float()/256 is folded into w1
    x = jax.random.randint(kx, (B, C, H, W), 0, 256).astype(jnp.float32)

    params = init_params(kp, C, n_actions, conv_out_size)
    kparams = prepare_params(params)           # one-time constant transform

    fwd = jax.jit(dueling_dqn_forward)
    out = jax.block_until_ready(fwd(x, kparams))
    assert out.shape == (B, n_actions), out.shape
    assert out.dtype == jnp.float32

    ref = _reference_forward(x, params)
    err = float(jnp.max(jnp.abs(out - ref)))
    assert err < 2e-2, f"max abs diff vs reference: {err}"
    print("KERNEL_OK")
</pallas_src>

<mosaic_0001>
module attributes {stable_mosaic.version = 11 : i64} {
  func.func @_fused_dqn_kernel(%arg0: i32, %arg1: memref<1152x256xf32, #tpu.memory_space<vmem>>, %arg2: memref<256x32xf32, #tpu.memory_space<vmem>>, %arg3: memref<1x32xf32, #tpu.memory_space<vmem>>, %arg4: memref<512x64xf32, #tpu.memory_space<vmem>>, %arg5: memref<1x64xf32, #tpu.memory_space<vmem>>, %arg6: memref<576x64xf32, #tpu.memory_space<vmem>>, %arg7: memref<1x64xf32, #tpu.memory_space<vmem>>, %arg8: memref<64x512xf32, #tpu.memory_space<vmem>>, %arg9: memref<1x512xf32, #tpu.memory_space<vmem>>, %arg10: memref<256x6xf32, #tpu.memory_space<vmem>>, %arg11: memref<1x6xf32, #tpu.memory_space<vmem>>, %arg12: memref<256x1xf32, #tpu.memory_space<vmem>>, %arg13: memref<1x1xf32, #tpu.memory_space<vmem>>, %arg14: memref<8x6xf32, #tpu.memory_space<vmem>>) attributes {dimension_semantics = [#tpu.dimension_semantics<arbitrary>], iteration_bounds = array<i64: 1>, scalar_prefetch = 0 : i64, scratch_operands = 0 : i64, tpu.core_type = #tpu.core_type<tc>, window_params = [{pipeline_mode = #tpu.pipeline_mode<synchronous>, transform_indices = @transform_0, window_bounds = array<i64: 1152, 256>}, {pipeline_mode = #tpu.pipeline_mode<synchronous>, transform_indices = @transform_1, window_bounds = array<i64: 256, 32>}, {pipeline_mode = #tpu.pipeline_mode<synchronous>, transform_indices = @transform_2, window_bounds = array<i64: 1, 32>}, {pipeline_mode = #tpu.pipeline_mode<synchronous>, transform_indices = @transform_3, window_bounds = array<i64: 512, 64>}, {pipeline_mode = #tpu.pipeline_mode<synchronous>, transform_indices = @transform_4, window_bounds = array<i64: 1, 64>}, {pipeline_mode = #tpu.pipeline_mode<synchronous>, transform_indices = @transform_5, window_bounds = array<i64: 576, 64>}, {pipeline_mode = #tpu.pipeline_mode<synchronous>, transform_indices = @transform_6, window_bounds = array<i64: 1, 64>}, {pipeline_mode = #tpu.pipeline_mode<synchronous>, transform_indices = @transform_7, window_bounds = array<i64: 64, 512>}, {pipeline_mode = #tpu.pipeline_mode<synchronous>, transform_indices = @transform_8, window_bounds = array<i64: 1, 512>}, {pipeline_mode = #tpu.pipeline_mode<synchronous>, transform_indices = @transform_9, window_bounds = array<i64: 256, 6>}, {pipeline_mode = #tpu.pipeline_mode<synchronous>, transform_indices = @transform_10, window_bounds = array<i64: 1, 6>}, {pipeline_mode = #tpu.pipeline_mode<synchronous>, transform_indices = @transform_11, window_bounds = array<i64: 256, 1>}, {pipeline_mode = #tpu.pipeline_mode<synchronous>, transform_indices = @transform_12, window_bounds = array<i64: 1, 1>}, {pipeline_mode = #tpu.pipeline_mode<synchronous>, transform_indices = @transform_13, window_bounds = array<i64: 8, 6>}]} {
    %c0 = arith.constant 0 : index
    %c0_0 = arith.constant 0 : index
    %0 = vector.load %arg1[%c0, %c0_0] : memref<1152x256xf32, #tpu.memory_space<vmem>>, vector<1152x256xf32>
    %c0_1 = arith.constant 0 : index
    %c0_2 = arith.constant 0 : index
    %1 = vector.load %arg2[%c0_1, %c0_2] : memref<256x32xf32, #tpu.memory_space<vmem>>, vector<256x32xf32>
    %cst = arith.constant dense<0.000000e+00> : vector<1152x32xf32>
    %2 = tpu.matmul %0, %1, %cst {dimension_numbers = #tpu.dot_dimension_numbers<[1], [0], [0], [1], [0, 0, 1, 1], [], []>} : vector<1152x256xf32>, vector<256x32xf32>, vector<1152x32xf32> -> vector<1152x32xf32>
    %c0_3 = arith.constant 0 : index
    %c0_4 = arith.constant 0 : index
    %3 = vector.load %arg3[%c0_3, %c0_4] : memref<1x32xf32, #tpu.memory_space<vmem>>, vector<1x32xf32>
    %4 = vector.broadcast %3 : vector<1x32xf32> to vector<1152x32xf32>
    %5 = arith.addf %2, %4 : vector<1152x32xf32>
    %cst_5 = arith.constant 0.000000e+00 : f32
    %6 = vector.broadcast %cst_5 : f32 to vector<1152x32xf32>
    %7 = arith.maximumf %5, %6 : vector<1152x32xf32>
    %c0_6 = arith.constant 0 : index
    %c0_7 = arith.constant 0 : index
    %8 = vector.load %arg4[%c0_6, %c0_7] : memref<512x64xf32, #tpu.memory_space<vmem>>, vector<512x64xf32>
    %9 = vector.extract_strided_slice %7 {offsets = [0, 0], sizes = [72, 32], strides = [1, 1]} : vector<1152x32xf32> to vector<72x32xf32>
    %10 = vector.extract_strided_slice %8 {offsets = [0, 0], sizes = [32, 64], strides = [1, 1]} : vector<512x64xf32> to vector<32x64xf32>
    %cst_8 = arith.constant dense<0.000000e+00> : vector<72x64xf32>
    %11 = tpu.matmul %9, %10, %cst_8 {dimension_numbers = #tpu.dot_dimension_numbers<[1], [0], [0], [1], [0, 0, 1, 1], [], []>} : vector<72x32xf32>, vector<32x64xf32>, vector<72x64xf32> -> vector<72x64xf32>
    %12 = vector.extract_strided_slice %7 {offsets = [72, 0], sizes = [72, 32], strides = [1, 1]} : vector<1152x32xf32> to vector<72x32xf32>
    %13 = vector.extract_strided_slice %8 {offsets = [32, 0], sizes = [32, 64], strides = [1, 1]} : vector<512x64xf32> to vector<32x64xf32>
    %cst_9 = arith.constant dense<0.000000e+00> : vector<72x64xf32>
    %14 = tpu.matmul %12, %13, %cst_9 {dimension_numbers = #tpu.dot_dimension_numbers<[1], [0], [0], [1], [0, 0, 1, 1], [], []>} : vector<72x32xf32>, vector<32x64xf32>, vector<72x64xf32> -> vector<72x64xf32>
    %15 = arith.addf %11, %14 : vector<72x64xf32>
    %16 = vector.extract_strided_slice %7 {offsets = [144, 0], sizes = [72, 32], strides = [1, 1]} : vector<1152x32xf32> to vector<72x32xf32>
    %17 = vector.extract_strided_slice %8 {offsets = [64, 0], sizes = [32, 64], strides = [1, 1]} : vector<512x64xf32> to vector<32x64xf32>
    %cst_10 = arith.constant dense<0.000000e+00> : vector<72x64xf32>
    %18 = tpu.matmul %16, %17, %cst_10 {dimension_numbers = #tpu.dot_dimension_numbers<[1], [0], [0], [1], [0, 0, 1, 1], [], []>} : vector<72x32xf32>, vector<32x64xf32>, vector<72x64xf32> -> vector<72x64xf32>
    %19 = arith.addf %15, %18 : vector<72x64xf32>
    %20 = vector.extract_strided_slice %7 {offsets = [216, 0], sizes = [72, 32], strides = [1, 1]} : vector<1152x32xf32> to vector<72x32xf32>
    %21 = vector.extract_strided_slice %8 {offsets = [96, 0], sizes = [32, 64], strides = [1, 1]} : vector<512x64xf32> to vector<32x64xf32>
    %cst_11 = arith.constant dense<0.000000e+00> : vector<72x64xf32>
    %22 = tpu.matmul %20, %21, %cst_11 {dimension_numbers = #tpu.dot_dimension_numbers<[1], [0], [0], [1], [0, 0, 1, 1], [], []>} : vector<72x32xf32>, vector<32x64xf32>, vector<72x64xf32> -> vector<72x64xf32>
    %23 = arith.addf %19, %22 : vector<72x64xf32>
    %24 = vector.extract_strided_slice %7 {offsets = [288, 0], sizes = [72, 32], strides = [1, 1]} : vector<1152x32xf32> to vector<72x32xf32>
    %25 = vector.extract_strided_slice %8 {offsets = [128, 0], sizes = [32, 64], strides = [1, 1]} : vector<512x64xf32> to vector<32x64xf32>
    %cst_12 = arith.constant dense<0.000000e+00> : vector<72x64xf32>
    %26 = tpu.matmul %24, %25, %cst_12 {dimension_numbers = #tpu.dot_dimension_numbers<[1], [0], [0], [1], [0, 0, 1, 1], [], []>} : vector<72x32xf32>, vector<32x64xf32>, vector<72x64xf32> -> vector<72x64xf32>
    %27 = arith.addf %23, %26 : vector<72x64xf32>
    %28 = vector.extract_strided_slice %7 {offsets = [360, 0], sizes = [72, 32], strides = [1, 1]} : vector<1152x32xf32> to vector<72x32xf32>
    %29 = vector.extract_strided_slice %8 {offsets = [160, 0], sizes = [32, 64], strides = [1, 1]} : vector<512x64xf32> to vector<32x64xf32>
    %cst_13 = arith.constant dense<0.000000e+00> : vector<72x64xf32>
    %30 = tpu.matmul %28, %29, %cst_13 {dimension_numbers = #tpu.dot_dimension_numbers<[1], [0], [0], [1], [0, 0, 1, 1], [], []>} : vector<72x32xf32>, vector<32x64xf32>, vector<72x64xf32> -> vector<72x64xf32>
    %31 = arith.addf %27, %30 : vector<72x64xf32>
    %32 = vector.extract_strided_slice %7 {offsets = [432, 0], sizes = [72, 32], strides = [1, 1]} : vector<1152x32xf32> to vector<72x32xf32>
    %33 = vector.extract_strided_slice %8 {offsets = [192, 0], sizes = [32, 64], strides = [1, 1]} : vector<512x64xf32> to vector<32x64xf32>
    %cst_14 = arith.constant dense<0.000000e+00> : vector<72x64xf32>
    %34 = tpu.matmul %32, %33, %cst_14 {dimension_numbers = #tpu.dot_dimension_numbers<[1], [0], [0], [1], [0, 0, 1, 1], [], []>} : vector<72x32xf32>, vector<32x64xf32>, vector<72x64xf32> -> vector<72x64xf32>
    %35 = arith.addf %31, %34 : vector<72x64xf32>
    %36 = vector.extract_strided_slice %7 {offsets = [504, 0], sizes = [72, 32], strides = [1, 1]} : vector<1152x32xf32> to vector<72x32xf32>
    %37 = vector.extract_strided_slice %8 {offsets = [224, 0], sizes = [32, 64], strides = [1, 1]} : vector<512x64xf32> to vector<32x64xf32>
    %cst_15 = arith.constant dense<0.000000e+00> : vector<72x64xf32>
    %38 = tpu.matmul %36, %37, %cst_15 {dimension_numbers = #tpu.dot_dimension_numbers<[1], [0], [0], [1], [0, 0, 1, 1], [], []>} : vector<72x32xf32>, vector<32x64xf32>, vector<72x64xf32> -> vector<72x64xf32>
    %39 = arith.addf %35, %38 : vector<72x64xf32>
    %40 = vector.extract_strided_slice %7 {offsets = [576, 0], sizes = [72, 32], strides = [1, 1]} : vector<1152x32xf32> to vector<72x32xf32>
    %41 = vector.extract_strided_slice %8 {offsets = [256, 0], sizes = [32, 64], strides = [1, 1]} : vector<512x64xf32> to vector<32x64xf32>
    %cst_16 = arith.constant dense<0.000000e+00> : vector<72x64xf32>
    %42 = tpu.matmul %40, %41, %cst_16 {dimension_numbers = #tpu.dot_dimension_numbers<[1], [0], [0], [1], [0, 0, 1, 1], [], []>} : vector<72x32xf32>, vector<32x64xf32>, vector<72x64xf32> -> vector<72x64xf32>
    %43 = arith.addf %39, %42 : vector<72x64xf32>
    %44 = vector.extract_strided_slice %7 {offsets = [648, 0], sizes = [72, 32], strides = [1, 1]} : vector<1152x32xf32> to vector<72x32xf32>
    %45 = vector.extract_strided_slice %8 {offsets = [288, 0], sizes = [32, 64], strides = [1, 1]} : vector<512x64xf32> to vector<32x64xf32>
    %cst_17 = arith.constant dense<0.000000e+00> : vector<72x64xf32>
    %46 = tpu.matmul %44, %45, %cst_17 {dimension_numbers = #tpu.dot_dimension_numbers<[1], [0], [0], [1], [0, 0, 1, 1], [], []>} : vector<72x32xf32>, vector<32x64xf32>, vector<72x64xf32> -> vector<72x64xf32>
    %47 = arith.addf %43, %46 : vector<72x64xf32>
    %48 = vector.extract_strided_slice %7 {offsets = [720, 0], sizes = [72, 32], strides = [1, 1]} : vector<1152x32xf32> to vector<72x32xf32>
    %49 = vector.extract_strided_slice %8 {offsets = [320, 0], sizes = [32, 64], strides = [1, 1]} : vector<512x64xf32> to vector<32x64xf32>
    %cst_18 = arith.constant dense<0.000000e+00> : vector<72x64xf32>
    %50 = tpu.matmul %48, %49, %cst_18 {dimension_numbers = #tpu.dot_dimension_numbers<[1], [0], [0], [1], [0, 0, 1, 1], [], []>} : vector<72x32xf32>, vector<32x64xf32>, vector<72x64xf32> -> vector<72x64xf32>
    %51 = arith.addf %47, %50 : vector<72x64xf32>
    %52 = vector.extract_strided_slice %7 {offsets = [792, 0], sizes = [72, 32], strides = [1, 1]} : vector<1152x32xf32> to vector<72x32xf32>
    %53 = vector.extract_strided_slice %8 {offsets = [352, 0], sizes = [32, 64], strides = [1, 1]} : vector<512x64xf32> to vector<32x64xf32>
    %cst_19 = arith.constant dense<0.000000e+00> : vector<72x64xf32>
    %54 = tpu.matmul %52, %53, %cst_19 {dimension_numbers = #tpu.dot_dimension_numbers<[1], [0], [0], [1], [0, 0, 1, 1], [], []>} : vector<72x32xf32>, vector<32x64xf32>, vector<72x64xf32> -> vector<72x64xf32>
    %55 = arith.addf %51, %54 : vector<72x64xf32>
    %56 = vector.extract_strided_slice %7 {offsets = [864, 0], sizes = [72, 32], strides = [1, 1]} : vector<1152x32xf32> to vector<72x32xf32>
    %57 = vector.extract_strided_slice %8 {offsets = [384, 0], sizes = [32, 64], strides = [1, 1]} : vector<512x64xf32> to vector<32x64xf32>
    %cst_20 = arith.constant dense<0.000000e+00> : vector<72x64xf32>
    %58 = tpu.matmul %56, %57, %cst_20 {dimension_numbers = #tpu.dot_dimension_numbers<[1], [0], [0], [1], [0, 0, 1, 1], [], []>} : vector<72x32xf32>, vector<32x64xf32>, vector<72x64xf32> -> vector<72x64xf32>
    %59 = arith.addf %55, %58 : vector<72x64xf32>
    %60 = vector.extract_strided_slice %7 {offsets = [936, 0], sizes = [72, 32], strides = [1, 1]} : vector<1152x32xf32> to vector<72x32xf32>
    %61 = vector.extract_strided_slice %8 {offsets = [416, 0], sizes = [32, 64], strides = [1, 1]} : vector<512x64xf32> to vector<32x64xf32>
    %cst_21 = arith.constant dense<0.000000e+00> : vector<72x64xf32>
    %62 = tpu.matmul %60, %61, %cst_21 {dimension_numbers = #tpu.dot_dimension_numbers<[1], [0], [0], [1], [0, 0, 1, 1], [], []>} : vector<72x32xf32>, vector<32x64xf32>, vector<72x64xf32> -> vector<72x64xf32>
    %63 = arith.addf %59, %62 : vector<72x64xf32>
    %64 = vector.extract_strided_slice %7 {offsets = [1008, 0], sizes = [72, 32], strides = [1, 1]} : vector<1152x32xf32> to vector<72x32xf32>
    %65 = vector.extract_strided_slice %8 {offsets = [448, 0], sizes = [32, 64], strides = [1, 1]} : vector<512x64xf32> to vector<32x64xf32>
    %cst_22 = arith.constant dense<0.000000e+00> : vector<72x64xf32>
    %66 = tpu.matmul %64, %65, %cst_22 {dimension_numbers = #tpu.dot_dimension_numbers<[1], [0], [0], [1], [0, 0, 1, 1], [], []>} : vector<72x32xf32>, vector<32x64xf32>, vector<72x64xf32> -> vector<72x64xf32>
    %67 = arith.addf %63, %66 : vector<72x64xf32>
    %68 = vector.extract_strided_slice %7 {offsets = [1080, 0], sizes = [72, 32], strides = [1, 1]} : vector<1152x32xf32> to vector<72x32xf32>
    %69 = vector.extract_strided_slice %8 {offsets = [480, 0], sizes = [32, 64], strides = [1, 1]} : vector<512x64xf32> to vector<32x64xf32>
    %cst_23 = arith.constant dense<0.000000e+00> : vector<72x64xf32>
    %70 = tpu.matmul %68, %69, %cst_23 {dimension_numbers = #tpu.dot_dimension_numbers<[1], [0], [0], [1], [0, 0, 1, 1], [], []>} : vector<72x32xf32>, vector<32x64xf32>, vector<72x64xf32> -> vector<72x64xf32>
    %71 = arith.addf %67, %70 : vector<72x64xf32>
    %c0_24 = arith.constant 0 : index
    %c0_25 = arith.constant 0 : index
    %72 = vector.load %arg5[%c0_24, %c0_25] : memref<1x64xf32, #tpu.memory_space<vmem>>, vector<1x64xf32>
    %73 = vector.broadcast %72 : vector<1x64xf32> to vector<72x64xf32>
    %74 = arith.addf %71, %73 : vector<72x64xf32>
    %cst_26 = arith.constant 0.000000e+00 : f32
    %75 = vector.broadcast %cst_26 : f32 to vector<72x64xf32>
    %76 = arith.maximumf %74, %75 : vector<72x64xf32>
    %c0_27 = arith.constant 0 : index
    %c0_28 = arith.constant 0 : index
    %77 = vector.load %arg6[%c0_27, %c0_28] : memref<576x64xf32, #tpu.memory_space<vmem>>, vector<576x64xf32>
    %78 = vector.extract_strided_slice %76 {offsets = [0, 0], sizes = [8, 64], strides = [1, 1]} : vector<72x64xf32> to vector<8x64xf32>
    %79 = vector.extract_strided_slice %77 {offsets = [0, 0], sizes = [64, 64], strides = [1, 1]} : vector<576x64xf32> to vector<64x64xf32>
    %cst_29 = arith.constant dense<0.000000e+00> : vector<8x64xf32>
    %80 = tpu.matmul %78, %79, %cst_29 {dimension_numbers = #tpu.dot_dimension_numbers<[1], [0], [0], [1], [0, 0, 1, 1], [], []>} : vector<8x64xf32>, vector<64x64xf32>, vector<8x64xf32> -> vector<8x64xf32>
    %81 = vector.extract_strided_slice %76 {offsets = [8, 0], sizes = [8, 64], strides = [1, 1]} : vector<72x64xf32> to vector<8x64xf32>
    %82 = vector.extract_strided_slice %77 {offsets = [64, 0], sizes = [64, 64], strides = [1, 1]} : vector<576x64xf32> to vector<64x64xf32>
    %cst_30 = arith.constant dense<0.000000e+00> : vector<8x64xf32>
    %83 = tpu.matmul %81, %82, %cst_30 {dimension_numbers = #tpu.dot_dimension_numbers<[1], [0], [0], [1], [0, 0, 1, 1], [], []>} : vector<8x64xf32>, vector<64x64xf32>, vector<8x64xf32> -> vector<8x64xf32>
    %84 = arith.addf %80, %83 : vector<8x64xf32>
    %85 = vector.extract_strided_slice %76 {offsets = [16, 0], sizes = [8, 64], strides = [1, 1]} : vector<72x64xf32> to vector<8x64xf32>
    %86 = vector.extract_strided_slice %77 {offsets = [128, 0], sizes = [64, 64], strides = [1, 1]} : vector<576x64xf32> to vector<64x64xf32>
    %cst_31 = arith.constant dense<0.000000e+00> : vector<8x64xf32>
    %87 = tpu.matmul %85, %86, %cst_31 {dimension_numbers = #tpu.dot_dimension_numbers<[1], [0], [0], [1], [0, 0, 1, 1], [], []>} : vector<8x64xf32>, vector<64x64xf32>, vector<8x64xf32> -> vector<8x64xf32>
    %88 = arith.addf %84, %87 : vector<8x64xf32>
    %89 = vector.extract_strided_slice %76 {offsets = [24, 0], sizes = [8, 64], strides = [1, 1]} : vector<72x64xf32> to vector<8x64xf32>
    %90 = vector.extract_strided_slice %77 {offsets = [192, 0], sizes = [64, 64], strides = [1, 1]} : vector<576x64xf32> to vector<64x64xf32>
    %cst_32 = arith.constant dense<0.000000e+00> : vector<8x64xf32>
    %91 = tpu.matmul %89, %90, %cst_32 {dimension_numbers = #tpu.dot_dimension_numbers<[1], [0], [0], [1], [0, 0, 1, 1], [], []>} : vector<8x64xf32>, vector<64x64xf32>, vector<8x64xf32> -> vector<8x64xf32>
    %92 = arith.addf %88, %91 : vector<8x64xf32>
    %93 = vector.extract_strided_slice %76 {offsets = [32, 0], sizes = [8, 64], strides = [1, 1]} : vector<72x64xf32> to vector<8x64xf32>
    %94 = vector.extract_strided_slice %77 {offsets = [256, 0], sizes = [64, 64], strides = [1, 1]} : vector<576x64xf32> to vector<64x64xf32>
    %cst_33 = arith.constant dense<0.000000e+00> : vector<8x64xf32>
    %95 = tpu.matmul %93, %94, %cst_33 {dimension_numbers = #tpu.dot_dimension_numbers<[1], [0], [0], [1], [0, 0, 1, 1], [], []>} : vector<8x64xf32>, vector<64x64xf32>, vector<8x64xf32> -> vector<8x64xf32>
    %96 = arith.addf %92, %95 : vector<8x64xf32>
    %97 = vector.extract_strided_slice %76 {offsets = [40, 0], sizes = [8, 64], strides = [1, 1]} : vector<72x64xf32> to vector<8x64xf32>
    %98 = vector.extract_strided_slice %77 {offsets = [320, 0], sizes = [64, 64], strides = [1, 1]} : vector<576x64xf32> to vector<64x64xf32>
    %cst_34 = arith.constant dense<0.000000e+00> : vector<8x64xf32>
    %99 = tpu.matmul %97, %98, %cst_34 {dimension_numbers = #tpu.dot_dimension_numbers<[1], [0], [0], [1], [0, 0, 1, 1], [], []>} : vector<8x64xf32>, vector<64x64xf32>, vector<8x64xf32> -> vector<8x64xf32>
    %100 = arith.addf %96, %99 : vector<8x64xf32>
    %101 = vector.extract_strided_slice %76 {offsets = [48, 0], sizes = [8, 64], strides = [1, 1]} : vector<72x64xf32> to vector<8x64xf32>
    %102 = vector.extract_strided_slice %77 {offsets = [384, 0], sizes = [64, 64], strides = [1, 1]} : vector<576x64xf32> to vector<64x64xf32>
    %cst_35 = arith.constant dense<0.000000e+00> : vector<8x64xf32>
    %103 = tpu.matmul %101, %102, %cst_35 {dimension_numbers = #tpu.dot_dimension_numbers<[1], [0], [0], [1], [0, 0, 1, 1], [], []>} : vector<8x64xf32>, vector<64x64xf32>, vector<8x64xf32> -> vector<8x64xf32>
    %104 = arith.addf %100, %103 : vector<8x64xf32>
    %105 = vector.extract_strided_slice %76 {offsets = [56, 0], sizes = [8, 64], strides = [1, 1]} : vector<72x64xf32> to vector<8x64xf32>
    %106 = vector.extract_strided_slice %77 {offsets = [448, 0], sizes = [64, 64], strides = [1, 1]} : vector<576x64xf32> to vector<64x64xf32>
    %cst_36 = arith.constant dense<0.000000e+00> : vector<8x64xf32>
    %107 = tpu.matmul %105, %106, %cst_36 {dimension_numbers = #tpu.dot_dimension_numbers<[1], [0], [0], [1], [0, 0, 1, 1], [], []>} : vector<8x64xf32>, vector<64x64xf32>, vector<8x64xf32> -> vector<8x64xf32>
    %108 = arith.addf %104, %107 : vector<8x64xf32>
    %109 = vector.extract_strided_slice %76 {offsets = [64, 0], sizes = [8, 64], strides = [1, 1]} : vector<72x64xf32> to vector<8x64xf32>
    %110 = vector.extract_strided_slice %77 {offsets = [512, 0], sizes = [64, 64], strides = [1, 1]} : vector<576x64xf32> to vector<64x64xf32>
    %cst_37 = arith.constant dense<0.000000e+00> : vector<8x64xf32>
    %111 = tpu.matmul %109, %110, %cst_37 {dimension_numbers = #tpu.dot_dimension_numbers<[1], [0], [0], [1], [0, 0, 1, 1], [], []>} : vector<8x64xf32>, vector<64x64xf32>, vector<8x64xf32> -> vector<8x64xf32>
    %112 = arith.addf %108, %111 : vector<8x64xf32>
    %c0_38 = arith.constant 0 : index
    %c0_39 = arith.constant 0 : index
    %113 = vector.load %arg7[%c0_38, %c0_39] : memref<1x64xf32, #tpu.memory_space<vmem>>, vector<1x64xf32>
    %114 = vector.broadcast %113 : vector<1x64xf32> to vector<8x64xf32>
    %115 = arith.addf %112, %114 : vector<8x64xf32>
    %cst_40 = arith.constant 0.000000e+00 : f32
    %116 = vector.broadcast %cst_40 : f32 to vector<8x64xf32>
    %117 = arith.maximumf %115, %116 : vector<8x64xf32>
    %c0_41 = arith.constant 0 : index
    %c0_42 = arith.constant 0 : index
    %118 = vector.load %arg8[%c0_41, %c0_42] : memref<64x512xf32, #tpu.memory_space<vmem>>, vector<64x512xf32>
    %cst_43 = arith.constant dense<0.000000e+00> : vector<8x512xf32>
    %119 = tpu.matmul %117, %118, %cst_43 {dimension_numbers = #tpu.dot_dimension_numbers<[1], [0], [0], [1], [0, 0, 1, 1], [], []>} : vector<8x64xf32>, vector<64x512xf32>, vector<8x512xf32> -> vector<8x512xf32>
    %c0_44 = arith.constant 0 : index
    %c0_45 = arith.constant 0 : index
    %120 = vector.load %arg9[%c0_44, %c0_45] : memref<1x512xf32, #tpu.memory_space<vmem>>, vector<1x512xf32>
    %121 = vector.broadcast %120 : vector<1x512xf32> to vector<8x512xf32>
    %122 = arith.addf %119, %121 : vector<8x512xf32>
    %cst_46 = arith.constant 0.000000e+00 : f32
    %123 = vector.broadcast %cst_46 : f32 to vector<8x512xf32>
    %124 = arith.maximumf %122, %123 : vector<8x512xf32>
    %125 = vector.extract_strided_slice %124 {offsets = [0, 0], sizes = [8, 256], strides = [1, 1]} : vector<8x512xf32> to vector<8x256xf32>
    %c0_47 = arith.constant 0 : index
    %c0_48 = arith.constant 0 : index
    %126 = vector.load %arg10[%c0_47, %c0_48] : memref<256x6xf32, #tpu.memory_space<vmem>>, vector<256x6xf32>
    %cst_49 = arith.constant dense<0.000000e+00> : vector<8x6xf32>
    %127 = tpu.matmul %125, %126, %cst_49 {dimension_numbers = #tpu.dot_dimension_numbers<[1], [0], [0], [1], [0, 0, 1, 1], [], []>} : vector<8x256xf32>, vector<256x6xf32>, vector<8x6xf32> -> vector<8x6xf32>
    %c0_50 = arith.constant 0 : index
    %c0_51 = arith.constant 0 : index
    %128 = vector.load %arg11[%c0_50, %c0_51] : memref<1x6xf32, #tpu.memory_space<vmem>>, vector<1x6xf32>
    %129 = vector.broadcast %128 : vector<1x6xf32> to vector<8x6xf32>
    %130 = arith.addf %127, %129 : vector<8x6xf32>
    %131 = vector.extract_strided_slice %124 {offsets = [0, 256], sizes = [8, 256], strides = [1, 1]} : vector<8x512xf32> to vector<8x256xf32>
    %c0_52 = arith.constant 0 : index
    %c0_53 = arith.constant 0 : index
    %132 = vector.load %arg12[%c0_52, %c0_53] : memref<256x1xf32, #tpu.memory_space<vmem>>, vector<256x1xf32>
    %cst_54 = arith.constant dense<0.000000e+00> : vector<8x1xf32>
    %133 = tpu.matmul %131, %132, %cst_54 {dimension_numbers = #tpu.dot_dimension_numbers<[1], [0], [0], [1], [0, 0, 1, 1], [], []>} : vector<8x256xf32>, vector<256x1xf32>, vector<8x1xf32> -> vector<8x1xf32>
    %c0_55 = arith.constant 0 : index
    %c0_56 = arith.constant 0 : index
    %134 = vector.load %arg13[%c0_55, %c0_56] : memref<1x1xf32, #tpu.memory_space<vmem>>, vector<1x1xf32>
    %135 = vector.broadcast %134 : vector<1x1xf32> to vector<8x1xf32>
    %136 = arith.addf %133, %135 : vector<8x1xf32>
    %137 = vector.broadcast %136 : vector<8x1xf32> to vector<8x6xf32>
    %138 = arith.addf %137, %130 : vector<8x6xf32>
    %cst_57 = arith.constant dense<0.000000e+00> : vector<8xf32>
    %139 = vector.multi_reduction <add>, %130, %cst_57 [1] : vector<8x6xf32> to vector<8xf32>
    %140 = vector.shape_cast %139 : vector<8xf32> to vector<8x1xf32>
    %cst_58 = arith.constant 6.000000e+00 : f32
    %141 = vector.broadcast %cst_58 : f32 to vector<8x1xf32>
    %142 = arith.divf %140, %141 : vector<8x1xf32>
    %143 = vector.broadcast %142 : vector<8x1xf32> to vector<8x6xf32>
    %144 = arith.subf %138, %143 : vector<8x6xf32>
    %c0_59 = arith.constant 0 : index
    %c0_60 = arith.constant 0 : index
    %145 = vector.load %arg14[%c0_59, %c0_60] : memref<8x6xf32, #tpu.memory_space<vmem>>, vector<8x6xf32>
    tpu.vector_store %arg14[%c0_59, %c0_60], %144 {strides = array<i32>} : memref<8x6xf32, #tpu.memory_space<vmem>>, vector<8x6xf32>,
    return
  }
  func.func @transform_0(%arg0: i32) -> (i32, i32) {
    %c0_i32 = arith.constant 0 : i32
    %c0_i32_0 = arith.constant 0 : i32
    %c0_i32_1 = arith.constant 0 : i32
    return %c0_i32, %c0_i32_0 : i32, i32
  }
  func.func @transform_1(%arg0: i32) -> (i32, i32) {
    %c0_i32 = arith.constant 0 : i32
    %c0_i32_0 = arith.constant 0 : i32
    %c0_i32_1 = arith.constant 0 : i32
    return %c0_i32, %c0_i32_0 : i32, i32
  }
  func.func @transform_2(%arg0: i32) -> (i32, i32) {
    %c0_i32 = arith.constant 0 : i32
    %c0_i32_0 = arith.constant 0 : i32
    %c0_i32_1 = arith.constant 0 : i32
    return %c0_i32, %c0_i32_0 : i32, i32
  }
  func.func @transform_3(%arg0: i32) -> (i32, i32) {
    %c0_i32 = arith.constant 0 : i32
    %c0_i32_0 = arith.constant 0 : i32
    %c0_i32_1 = arith.constant 0 : i32
    return %c0_i32, %c0_i32_0 : i32, i32
  }
  func.func @transform_4(%arg0: i32) -> (i32, i32) {
    %c0_i32 = arith.constant 0 : i32
    %c0_i32_0 = arith.constant 0 : i32
    %c0_i32_1 = arith.constant 0 : i32
    return %c0_i32, %c0_i32_0 : i32, i32
  }
  func.func @transform_5(%arg0: i32) -> (i32, i32) {
    %c0_i32 = arith.constant 0 : i32
    %c0_i32_0 = arith.constant 0 : i32
    %c0_i32_1 = arith.constant 0 : i32
    return %c0_i32, %c0_i32_0 : i32, i32
  }
  func.func @transform_6(%arg0: i32) -> (i32, i32) {
    %c0_i32 = arith.constant 0 : i32
    %c0_i32_0 = arith.constant 0 : i32
    %c0_i32_1 = arith.constant 0 : i32
    return %c0_i32, %c0_i32_0 : i32, i32
  }
  func.func @transform_7(%arg0: i32) -> (i32, i32) {
    %c0_i32 = arith.constant 0 : i32
    %c0_i32_0 = arith.constant 0 : i32
    %c0_i32_1 = arith.constant 0 : i32
    return %c0_i32, %c0_i32_0 : i32, i32
  }
  func.func @transform_8(%arg0: i32) -> (i32, i32) {
    %c0_i32 = arith.constant 0 : i32
    %c0_i32_0 = arith.constant 0 : i32
    %c0_i32_1 = arith.constant 0 : i32
    return %c0_i32, %c0_i32_0 : i32, i32
  }
  func.func @transform_9(%arg0: i32) -> (i32, i32) {
    %c0_i32 = arith.constant 0 : i32
    %c0_i32_0 = arith.constant 0 : i32
    %c0_i32_1 = arith.constant 0 : i32
    return %c0_i32, %c0_i32_0 : i32, i32
  }
  func.func @transform_10(%arg0: i32) -> (i32, i32) {
    %c0_i32 = arith.constant 0 : i32
    %c0_i32_0 = arith.constant 0 : i32
    %c0_i32_1 = arith.constant 0 : i32
    return %c0_i32, %c0_i32_0 : i32, i32
  }
  func.func @transform_11(%arg0: i32) -> (i32, i32) {
    %c0_i32 = arith.constant 0 : i32
    %c0_i32_0 = arith.constant 0 : i32
    %c0_i32_1 = arith.constant 0 : i32
    return %c0_i32, %c0_i32_0 : i32, i32
  }
  func.func @transform_12(%arg0: i32) -> (i32, i32) {
    %c0_i32 = arith.constant 0 : i32
    %c0_i32_0 = arith.constant 0 : i32
    %c0_i32_1 = arith.constant 0 : i32
    return %c0_i32, %c0_i32_0 : i32, i32
  }
  func.func @transform_13(%arg0: i32) -> (i32, i32) {
    %c0_i32 = arith.constant 0 : i32
    %c0_i32_0 = arith.constant 0 : i32
    %c0_i32_1 = arith.constant 0 : i32
    return %c0_i32, %c0_i32_0 : i32, i32
  }
}

</mosaic_0001>

<bundles_post_ra>
// kernel: dueling_dqn_forward.1
= control target key start
LH: loop header
LB: loop body
LE: loop exit
PB: predicated region body
PF: predicated region fallthrough
CT: control target
= control target key end

     0   :  { %s6308_s0 = inlined_call_operand.vmem [shape: f32[1152,256], index: 0, kind: input, shape index: {}]   ;;  %s6309_s1 = inlined_call_operand.vmem [shape: f32[256,32], index: 1, kind: input, shape index: {}]   ;;  %s6310_s2 = inlined_call_operand.vmem [shape: f32[1,32], index: 2, kind: input, shape index: {}]   ;;  %s6311_s3 = inlined_call_operand.vmem [shape: f32[512,64], index: 3, kind: input, shape index: {}]   ;;  %s6312_s4 = inlined_call_operand.vmem [shape: f32[1,64], index: 4, kind: input, shape index: {}]   ;;  %s6313_s5 = inlined_call_operand.vmem [shape: f32[576,64], index: 5, kind: input, shape index: {}]   ;;  %s6314_s6 = inlined_call_operand.vmem [shape: f32[1,64], index: 6, kind: input, shape index: {}]   ;;  %s6315_s7 = inlined_call_operand.vmem [shape: f32[64,512], index: 7, kind: input, shape index: {}]   ;;  %s6316_s8 = inlined_call_operand.vmem [shape: f32[1,512], index: 8, kind: input, shape index: {}]   ;;  %s6317_s9 = inlined_call_operand.vmem [shape: f32[256,6], index: 9, kind: input, shape index: {}]   ;;  %s6318_s10 = inlined_call_operand.vmem [shape: f32[1,6], index: 10, kind: input, shape index: {}]   ;;  %s6319_s11 = inlined_call_operand.vmem [shape: f32[256,1], index: 11, kind: input, shape index: {}]   ;;  %s6320_s12 = inlined_call_operand.<no memory space> [shape: f32[1,1], index: 12, kind: input, shape index: {}]   ;;  %s6321_s13 = inlined_call_operand.hbm [shape: f32[8,6], index: 13, kind: output, shape index: {}]  }
   0x1   :  { %v18_v0 = vstv %s6320_s12 }
   0x2   :  { %19 = vst [vmem:[#allocation2] sm:$0x1] %v18_v0 }
   0x3   :  { %v350_v1 = vld [vmem:[%s6309_s1 + $0x78] sm:$0xff]  ;;  %v349_v2 = vld [vmem:[%s6309_s1 + $0x70] sm:$0xff]  ;;  %v348_v5 = vld [vmem:[%s6309_s1 + $0x68] sm:$0xff] }
   0x4   :  { %v3702_v3 = vld [vmem:[%s6309_s1 + $0xf8] sm:$0xff]  ;;  %371 = vmatpush.msra.mxu0 %v350_v1  ;;  %3529 = vmatpush.msra.mxu3 %v350_v1  ;;  %v3707_v4 = vld [vmem:[%s6309_s1 + $0xf0] sm:$0xff]  ;;  %v3717_v6 = vld [vmem:[%s6309_s1 + $0xe8] sm:$0xff] }
   0x5   :  { %820 = vmatpush.msra.mxu1 %v3702_v3  ;;  %3545 = vmatpush.msra.mxu2 %v3702_v3  ;;  %v347_v7 = vld [vmem:[%s6309_s1 + $0x60] sm:$0xff]  ;;  %v346_v9 = vld [vmem:[%s6309_s1 + $0x58] sm:$0xff]  ;;  %v345_v11 = vld [vmem:[%s6309_s1 + $0x50] sm:$0xff] }
   0x6   :  { %372 = vmatpush.msra.mxu0 %v349_v2  ;;  %3530 = vmatpush.msra.mxu3 %v349_v2  ;;  %v3727_v8 = vld [vmem:[%s6309_s1 + $0xe0] sm:$0xff]  ;;  %v3737_v10 = vld [vmem:[%s6309_s1 + $0xd8] sm:$0xff]  ;;  %v3747_v12 = vld [vmem:[%s6309_s1 + $0xd0] sm:$0xff] }
   0x7   :  { %821 = vmatpush.msra.mxu1 %v3707_v4  ;;  %3547 = vmatpush.msra.mxu2 %v3707_v4  ;;  %v344_v13 = vld [vmem:[%s6309_s1 + $0x48] sm:$0xff]  ;;  %v343_v15 = vld [vmem:[%s6309_s1 + $0x40] sm:$0xff]  ;;  %v342_v16 = vld [vmem:[%s6309_s1 + $0x38] sm:$0xff] }
   0x8   :  { %373 = vmatpush.msra.mxu0 %v348_v5  ;;  %3531 = vmatpush.msra.mxu3 %v348_v5  ;;  %v3757_v14 = vld [vmem:[%s6309_s1 + $0xc8] sm:$0xff]  ;;  %v3770_v17 = vld [vmem:[%s6309_s1 + $0xc0] sm:$0xff]  ;;  %v3777_v18 = vld [vmem:[%s6309_s1 + $0xb8] sm:$0xff] }
   0x9   :  { %822 = vmatpush.msra.mxu1 %v3717_v6  ;;  %3549 = vmatpush.msra.mxu2 %v3717_v6 }
   0xa   :  { %374 = vmatpush.msra.mxu0 %v347_v7  ;;  %3532 = vmatpush.msra.mxu3 %v347_v7 }
   0xb   :  { %823 = vmatpush.msra.mxu1 %v3727_v8  ;;  %3551 = vmatpush.msra.mxu2 %v3727_v8 }
   0xc   :  { %375 = vmatpush.msra.mxu0 %v346_v9  ;;  %3533 = vmatpush.msra.mxu3 %v346_v9 }
   0xd   :  { %824 = vmatpush.msra.mxu1 %v3737_v10  ;;  %3553 = vmatpush.msra.mxu2 %v3737_v10 }
   0xe   :  { %376 = vmatpush.msra.mxu0 %v345_v11  ;;  %3534 = vmatpush.msra.mxu3 %v345_v11 }
   0xf   :  { %825 = vmatpush.msra.mxu1 %v3747_v12  ;;  %3555 = vmatpush.msra.mxu2 %v3747_v12 }
  0x10   :  { %377 = vmatpush.msra.mxu0 %v344_v13  ;;  %3535 = vmatpush.msra.mxu3 %v344_v13 }
  0x11   :  { %826 = vmatpush.msra.mxu1 %v3757_v14  ;;  %3557 = vmatpush.msra.mxu2 %v3757_v14 }
  0x12   :  { %378 = vmatpush.msra.mxu0 %v343_v15  ;;  %3536 = vmatpush.msra.mxu3 %v343_v15 }
  0x13   :  { %20 = vsyncpa [#allocation4], 0  ;;  %827 = vmatpush.msra.mxu1 %v3770_v17  ;;  %v341_v19 = vld [vmem:[%s6309_s1 + $0x30] sm:$0xff]  ;;  %3559 = vmatpush.msra.mxu2 %v3770_v17  ;;  %v340_v21 = vld [vmem:[%s6309_s1 + $0x28] sm:$0xff]  ;;  %vm1477_vm0 = vcmask 261120   ;;  %vm2834_vm1 = vcmask 523264  }
  0x14   :  { %379 = vmatpush.msra.mxu0 %v342_v16  ;;  %3537 = vmatpush.msra.mxu3 %v342_v16  ;;  %v3787_v20 = vld [vmem:[%s6309_s1 + $0xb0] sm:$0xff]  ;;  %v3797_v22 = vld [vmem:[%s6309_s1 + $0xa8] sm:$0xff]  ;;  %v339_v23 = vld [vmem:[%s6309_s1 + $0x20] sm:$0xff]  ;;  %vm3342_vm2 = vcmask 48128  }
  0x15   :  { %828 = vmatpush.msra.mxu1 %v3777_v18  ;;  %3561 = vmatpush.msra.mxu2 %v3777_v18  ;;  %v3807_v24 = vld [vmem:[%s6309_s1 + $0xa0] sm:$0xff]  ;;  %v338_v25 = vld [vmem:[%s6309_s1 + $0x18] sm:$0xff]  ;;  %v337_v27 = vld [vmem:[%s6309_s1 + $0x10] sm:$0xff] }
  0x16   :  { %380 = vmatpush.msra.mxu0 %v341_v19  ;;  %3538 = vmatpush.msra.mxu3 %v341_v19  ;;  %v3817_v26 = vld [vmem:[%s6309_s1 + $0x98] sm:$0xff]  ;;  %v3827_v28 = vld [vmem:[%s6309_s1 + $0x90] sm:$0xff]  ;;  %v336_v29 = vld [vmem:[%s6309_s1 + $0x8] sm:$0xff] }
  0x17   :  { %829 = vmatpush.msra.mxu1 %v3787_v20  ;;  %3563 = vmatpush.msra.mxu2 %v3787_v20  ;;  %v352_v30 = vld [vmem:[%s6309_s1 + $0x88] sm:$0xff]  ;;  %v335_v31 = vld [vmem:[%s6309_s1] sm:$0xff]  ;;  %v49_v37 = vld [vmem:[%s6308_s0 + $0x10] sm:$0xff] }
  0x18   :  { %381 = vmatpush.msra.mxu0 %v340_v21  ;;  %3539 = vmatpush.msra.mxu3 %v340_v21  ;;  %v47_v32 = vld [vmem:[%s6308_s0] sm:$0xff]  ;;  %v48_v35 = vld [vmem:[%s6308_s0 + $0x8] sm:$0xff]  ;;  %v285_v38 = vld [vmem:[%s6308_s0 + $0x770] sm:$0xff] }
  0x19   :  { %830 = vmatpush.msra.mxu1 %v3797_v22  ;;  %3565 = vmatpush.msra.mxu2 %v3797_v22  ;;  %v283_v33 = vld [vmem:[%s6308_s0 + $0x760] sm:$0xff]  ;;  %v284_v36 = vld [vmem:[%s6308_s0 + $0x768] sm:$0xff]  ;;  %v50_v39 = vld [vmem:[%s6308_s0 + $0x18] sm:$0xff] }
  0x1a   :  { %382 = vmatpush.msra.mxu0 %v339_v23  ;;  %3540 = vmatpush.msra.mxu3 %v339_v23  ;;  %v351_v34 = vld [vmem:[%s6309_s1 + $0x80] sm:$0xff]  ;;  %v286_v40 = vld [vmem:[%s6308_s0 + $0x778] sm:$0xff]  ;;  %v52_v43 = vld [vmem:[%s6308_s0 + $0x28] sm:$0xff] }
  0x1b   :  { %831 = vmatpush.msra.mxu1 %v3807_v24  ;;  %3567 = vmatpush.msra.mxu2 %v3807_v24  ;;  %v51_v41 = vld [vmem:[%s6308_s0 + $0x20] sm:$0xff]  ;;  %v288_v44 = vld [vmem:[%s6308_s0 + $0x788] sm:$0xff]  ;;  %v53_v45 = vld [vmem:[%s6308_s0 + $0x30] sm:$0xff] }
  0x1c   :  { %383 = vmatpush.msra.mxu0 %v338_v25  ;;  %3541 = vmatpush.msra.mxu3 %v338_v25  ;;  %v287_v42 = vld [vmem:[%s6308_s0 + $0x780] sm:$0xff]  ;;  %v289_v46 = vld [vmem:[%s6308_s0 + $0x790] sm:$0xff]  ;;  %v54_v47 = vld [vmem:[%s6308_s0 + $0x38] sm:$0xff] }
  0x1d   :  { %832 = vmatpush.msra.mxu1 %v3817_v26  ;;  %3569 = vmatpush.msra.mxu2 %v3817_v26  ;;  %v290_v48 = vld [vmem:[%s6308_s0 + $0x798] sm:$0xff]  ;;  %v55_v49 = vld [vmem:[%s6308_s0 + $0x40] sm:$0xff]  ;;  %v56_v51 = vld [vmem:[%s6308_s0 + $0x48] sm:$0xff] }
  0x1e   :  { %384 = vmatpush.msra.mxu0 %v337_v27  ;;  %3542 = vmatpush.msra.mxu3 %v337_v27  ;;  %v291_v50 = vld [vmem:[%s6308_s0 + $0x7a0] sm:$0xff]  ;;  %v292_v52 = vld [vmem:[%s6308_s0 + $0x7a8] sm:$0xff]  ;;  %v57_v53 = vld [vmem:[%s6308_s0 + $0x50] sm:$0xff] }
  0x1f   :  { %833 = vmatpush.msra.mxu1 %v3827_v28  ;;  %3571 = vmatpush.msra.mxu2 %v3827_v28  ;;  %v293_v54 = vld [vmem:[%s6308_s0 + $0x7b0] sm:$0xff]  ;;  %v58_v55 = vld [vmem:[%s6308_s0 + $0x58] sm:$0xff]  ;;  %v59_v57 = vld [vmem:[%s6308_s0 + $0x60] sm:$0xff] }
  0x20   :  { %385 = vmatpush.msra.mxu0 %v336_v29  ;;  %3543 = vmatpush.msra.mxu3 %v336_v29  ;;  %v294_v56 = vld [vmem:[%s6308_s0 + $0x7b8] sm:$0xff]  ;;  %v295_v58 = vld [vmem:[%s6308_s0 + $0x7c0] sm:$0xff]  ;;  %v60_v59 = vld [vmem:[%s6308_s0 + $0x68] sm:$0xff] }
  0x21   :  { %834 = vmatpush.msra.mxu1 %v352_v30  ;;  %3573 = vmatpush.msra.mxu2 %v352_v30  ;;  %v296_v60 = vld [vmem:[%s6308_s0 + $0x7c8] sm:$0xff]  ;;  %v61_v61 = vld [vmem:[%s6308_s0 + $0x70] sm:$0xff]  ;;  %v62_v63 = vld [vmem:[%s6308_s0 + $0x78] sm:$0xff] }
  0x22   :  { %386 = vmatpush.msra.mxu0 %v335_v31  ;;  %3544 = vmatpush.msra.mxu3 %v335_v31  ;;  %v297_v62 = vld [vmem:[%s6308_s0 + $0x7d0] sm:$0xff]  ;;  %v298_v0 = vld [vmem:[%s6308_s0 + $0x7d8] sm:$0xff]  ;;  %v63_v1 = vld [vmem:[%s6308_s0 + $0x80] sm:$0xff] }
  0x23   :  { %387 = vmatmul.f32.vlgmr.msra.gmra.mxu0 %v47_v32  ;;  %741 = vmatmul.f32.vlgmr.msra.gmra.mxu3 %v283_v33  ;;  %v299_v2 = vld [vmem:[%s6308_s0 + $0x7e0] sm:$0xff]  ;;  %v65_v5 = vld [vmem:[%s6308_s0 + $0x90] sm:$0xff]  ;;  %v66_v7 = vld [vmem:[%s6308_s0 + $0x98] sm:$0xff] }
  0x24   :  { %835 = vmatpush.msra.mxu1 %v351_v34  ;;  %3575 = vmatpush.msra.mxu2 %v351_v34  ;;  %v67_v9 = vld [vmem:[%s6308_s0 + $0xa0] sm:$0xff]  ;;  %v68_v11 = vld [vmem:[%s6308_s0 + $0xa8] sm:$0xff]  ;;  %v69_v13 = vld [vmem:[%s6308_s0 + $0xb0] sm:$0xff] }
  0x25   :  { %836 = vmatmul.f32.vlgmr.msra.gmra.mxu1 %v48_v35  ;;  %1190 = vmatmul.f32.vlgmr.msra.gmra.mxu2 %v284_v36  ;;  %v70_v15 = vld [vmem:[%s6308_s0 + $0xb8] sm:$0xff]  ;;  %v72_v19 = vld [vmem:[%s6308_s0 + $0xc8] sm:$0xff]  ;;  %v73_v21 = vld [vmem:[%s6308_s0 + $0xd0] sm:$0xff] }
  0x26   :  { %3546 = vmatpush.msrb.mxu3 %v3702_v3  ;;  %v64_v3 = vld [vmem:[%s6308_s0 + $0x88] sm:$0xff]  ;;  %v306_v16 = vld [vmem:[%s6308_s0 + $0x818] sm:$0xff]  ;;  %v75_v25 = vld [vmem:[%s6308_s0 + $0xe0] sm:$0xff] }
  0x27   :  { %v74_v23 = vld [vmem:[%s6308_s0 + $0xd8] sm:$0xff]  ;;  %v76_v27 = vld [vmem:[%s6308_s0 + $0xe8] sm:$0xff]  ;;  %v77_v29 = vld [vmem:[%s6308_s0 + $0xf0] sm:$0xff] }
  0x28   :  { %3548 = vmatpush.msrb.mxu3 %v3707_v4  ;;  %v300_v4 = vld [vmem:[%s6308_s0 + $0x7e8] sm:$0xff]  ;;  %v78_v31 = vld [vmem:[%s6308_s0 + $0xf8] sm:$0xff]  ;;  %v315_v35 = vld [vmem:[%s6308_s0 + $0x860] sm:$0xff] }
  0x29   :  { %v314_v32 = vld [vmem:[%s6308_s0 + $0x858] sm:$0xff] }
  0x2a   :  { %3550 = vmatpush.msrb.mxu3 %v3717_v6  ;;  %v301_v6 = vld [vmem:[%s6308_s0 + $0x7f0] sm:$0xff] }
  0x2b   :  { %390 = vmatmul.f32.gmra.mxu0 %v49_v37  ;;  %744 = vmatmul.f32.gmra.mxu3 %v285_v38  ;;  %v80_v37 = vld [vmem:[%s6308_s0 + $0x108] sm:$0xff] }
  0x2c   :  { %3552 = vmatpush.msrb.mxu3 %v3727_v8  ;;  %v302_v8 = vld [vmem:[%s6308_s0 + $0x7f8] sm:$0xff]  ;;  %v316_v38 = vld [vmem:[%s6308_s0 + $0x868] sm:$0xff] }
  0x2d   :  { %839 = vmatmul.f32.gmra.mxu1 %v50_v39  ;;  %1193 = vmatmul.f32.gmra.mxu2 %v286_v40  ;;  %v4070_v39 = vld [vmem:[%s6310_s2] ss:$0 sm:$0xff] }
  0x2e   :  { %3554 = vmatpush.msrb.mxu3 %v3737_v10  ;;  %v303_v10 = vld [vmem:[%s6308_s0 + $0x800] sm:$0xff] }
  0x30   :  { %3556 = vmatpush.msrb.mxu3 %v3747_v12  ;;  %v304_v12 = vld [vmem:[%s6308_s0 + $0x808] sm:$0xff] }
  0x32   :  { %3558 = vmatpush.msrb.mxu3 %v3757_v14  ;;  %v305_v14 = vld [vmem:[%s6308_s0 + $0x810] sm:$0xff] }
  0x33   :  { %393 = vmatmul.f32.gmra.mxu0 %v51_v41  ;;  %747 = vmatmul.f32.gmra.mxu3 %v287_v42 }
  0x34   :  { %3560 = vmatpush.msrb.mxu3 %v3770_v17  ;;  %v71_v17 = vld [vmem:[%s6308_s0 + $0xc0] sm:$0xff] }
  0x35   :  { %842 = vmatmul.f32.gmra.mxu1 %v52_v43  ;;  %1196 = vmatmul.f32.gmra.mxu2 %v288_v44  ;;  %v81_v44 = vld [vmem:[%s6308_s0 + $0x110] sm:$0xff] }
  0x36   :  { %3562 = vmatpush.msrb.mxu3 %v3777_v18  ;;  %v307_v18 = vld [vmem:[%s6308_s0 + $0x820] sm:$0xff] }
  0x38   :  { %3564 = vmatpush.msrb.mxu3 %v3787_v20  ;;  %v308_v20 = vld [vmem:[%s6308_s0 + $0x828] sm:$0xff] }
  0x3a   :  { %3566 = vmatpush.msrb.mxu3 %v3797_v22  ;;  %v309_v22 = vld [vmem:[%s6308_s0 + $0x830] sm:$0xff] }
  0x3b   :  { %396 = vmatmul.f32.gmra.mxu0 %v53_v45  ;;  %750 = vmatmul.f32.gmra.mxu3 %v289_v46  ;;  %v317_v45 = vld [vmem:[%s6308_s0 + $0x870] sm:$0xff] }
  0x3c   :  { %3568 = vmatpush.msrb.mxu3 %v3807_v24  ;;  %v310_v24 = vld [vmem:[%s6308_s0 + $0x838] sm:$0xff] }
  0x3d   :  { %845 = vmatmul.f32.gmra.mxu1 %v54_v47  ;;  %1199 = vmatmul.f32.gmra.mxu2 %v290_v48  ;;  %v82_v48 = vld [vmem:[%s6308_s0 + $0x118] sm:$0xff] }
  0x3e   :  { %3570 = vmatpush.msrb.mxu3 %v3817_v26  ;;  %v311_v26 = vld [vmem:[%s6308_s0 + $0x840] sm:$0xff] }
  0x40   :  { %3572 = vmatpush.msrb.mxu3 %v3827_v28  ;;  %v312_v28 = vld [vmem:[%s6308_s0 + $0x848] sm:$0xff] }
  0x42   :  { %3574 = vmatpush.msrb.mxu3 %v352_v30  ;;  %v313_v30 = vld [vmem:[%s6308_s0 + $0x850] sm:$0xff] }
  0x43   :  { %399 = vmatmul.f32.gmra.mxu0 %v55_v49  ;;  %753 = vmatmul.f32.gmra.mxu3 %v291_v50  ;;  %v318_v49 = vld [vmem:[%s6308_s0 + $0x878] sm:$0xff] }
  0x44   :  { %3576 = vmatpush.msrb.mxu3 %v351_v34  ;;  %v79_v34 = vld [vmem:[%s6308_s0 + $0x100] sm:$0xff] }
  0x45   :  { %848 = vmatmul.f32.gmra.mxu1 %v56_v51  ;;  %1202 = vmatmul.f32.gmra.mxu2 %v292_v52 }
  0x4b   :  { %402 = vmatmul.f32.gmra.mxu0 %v57_v53  ;;  %756 = vmatmul.f32.gmra.mxu3 %v293_v54  ;;  %v83_v54 = vld [vmem:[%s6308_s0 + $0x120] sm:$0xff] }
  0x4d   :  { %851 = vmatmul.f32.gmra.mxu1 %v58_v55  ;;  %1205 = vmatmul.f32.gmra.mxu2 %v294_v56  ;;  %v319_v55 = vld [vmem:[%s6308_s0 + $0x880] sm:$0xff] }
  0x53   :  { %405 = vmatmul.f32.gmra.mxu0 %v59_v57  ;;  %759 = vmatmul.f32.gmra.mxu3 %v295_v58  ;;  %v84_v58 = vld [vmem:[%s6308_s0 + $0x128] sm:$0xff] }
  0x55   :  { %854 = vmatmul.f32.gmra.mxu1 %v60_v59  ;;  %1208 = vmatmul.f32.gmra.mxu2 %v296_v60  ;;  %v320_v59 = vld [vmem:[%s6308_s0 + $0x888] sm:$0xff] }
  0x5b   :  { %408 = vmatmul.f32.gmra.mxu0 %v61_v61  ;;  %762 = vmatmul.f32.gmra.mxu3 %v297_v62 }
  0x5d   :  { %857 = vmatmul.f32.gmra.mxu1 %v62_v63  ;;  %1211 = vmatmul.f32.gmra.mxu2 %v298_v0  ;;  %v85_v0 = vld [vmem:[%s6308_s0 + $0x130] sm:$0xff] }
  0x63   :  { %411 = vmatmul.f32.gmra.mxu0 %v63_v1  ;;  %765 = vmatmul.f32.gmra.mxu3 %v299_v2  ;;  %v321_v1 = vld [vmem:[%s6308_s0 + $0x890] sm:$0xff] }
  0x65   :  { %860 = vmatmul.f32.gmra.mxu1 %v64_v3  ;;  %1214 = vmatmul.f32.gmra.mxu2 %v300_v4  ;;  %v86_v4 = vld [vmem:[%s6308_s0 + $0x138] sm:$0xff] }
  0x6b   :  { %414 = vmatmul.f32.gmra.mxu0 %v65_v5  ;;  %768 = vmatmul.f32.gmra.mxu3 %v301_v6  ;;  %v322_v5 = vld [vmem:[%s6308_s0 + $0x898] sm:$0xff] }
  0x6d   :  { %863 = vmatmul.f32.gmra.mxu1 %v66_v7  ;;  %1217 = vmatmul.f32.gmra.mxu2 %v302_v8 }
  0x73   :  { %417 = vmatmul.f32.gmra.mxu0 %v67_v9  ;;  %771 = vmatmul.f32.gmra.mxu3 %v303_v10  ;;  %v87_v10 = vld [vmem:[%s6308_s0 + $0x140] sm:$0xff] }
  0x75   :  { %866 = vmatmul.f32.gmra.mxu1 %v68_v11  ;;  %1220 = vmatmul.f32.gmra.mxu2 %v304_v12  ;;  %v323_v11 = vld [vmem:[%s6308_s0 + $0x8a0] sm:$0xff] }
  0x7b   :  { %420 = vmatmul.f32.gmra.mxu0 %v69_v13  ;;  %774 = vmatmul.f32.gmra.mxu3 %v305_v14  ;;  %v88_v14 = vld [vmem:[%s6308_s0 + $0x148] sm:$0xff] }
  0x7d   :  { %869 = vmatmul.f32.gmra.mxu1 %v70_v15  ;;  %1223 = vmatmul.f32.gmra.mxu2 %v306_v16  ;;  %v324_v15 = vld [vmem:[%s6308_s0 + $0x8a8] sm:$0xff] }
  0x83   :  { %423 = vmatmul.f32.gmra.mxu0 %v71_v17  ;;  %777 = vmatmul.f32.gmra.mxu3 %v307_v18  ;;  %v1420_v18 = vld [vmem:[%s6311_s3 + $0x38] sm:$0xff] }
  0x84   :  { %1517 = vmatpush.msrb.mxu2 %v1420_v18 }
  0x85   :  { %872 = vmatmul.f32.gmra.mxu1 %v72_v19  ;;  %1226 = vmatmul.f32.gmra.mxu2 %v308_v20 }
  0x8b   :  { %426 = vmatmul.f32.gmra.mxu0 %v73_v21  ;;  %780 = vmatmul.f32.gmra.mxu3 %v309_v22  ;;  %v89_v21 = vld [vmem:[%s6308_s0 + $0x150] sm:$0xff] }
  0x8c   :  { %v325_v22 = vld [vmem:[%s6308_s0 + $0x8b0] sm:$0xff] }
  0x8d   :  { %875 = vmatmul.f32.gmra.mxu1 %v74_v23  ;;  %1229 = vmatmul.f32.gmra.mxu2 %v310_v24  ;;  %v1419_v24 = vld [vmem:[%s6311_s3 + $0x30] sm:$0xff] }
  0x8e   :  { %1518 = vmatpush.msrb.mxu2 %v1419_v24 }
  0x93   :  { %429 = vmatmul.f32.gmra.mxu0 %v75_v25  ;;  %783 = vmatmul.f32.gmra.mxu3 %v311_v26  ;;  %v90_v26 = vld [vmem:[%s6308_s0 + $0x158] sm:$0xff] }
  0x95   :  { %878 = vmatmul.f32.gmra.mxu1 %v76_v27  ;;  %1232 = vmatmul.f32.gmra.mxu2 %v312_v28  ;;  %v326_v27 = vld [vmem:[%s6308_s0 + $0x8b8] sm:$0xff]  ;;  %v1418_v28 = vld [vmem:[%s6311_s3 + $0x28] sm:$0xff] }
  0x96   :  { %1519 = vmatpush.msrb.mxu2 %v1418_v28 }
  0x9b   :  { %432 = vmatmul.f32.gmra.mxu0 %v77_v29  ;;  %786 = vmatmul.f32.gmra.mxu3 %v313_v30  ;;  %v1417_v29 = vld [vmem:[%s6311_s3 + $0x20] sm:$0xff] }
  0x9c   :  { %1520 = vmatpush.msrb.mxu2 %v1417_v29 }
  0x9d   :  { %881 = vmatmul.f32.gmra.mxu1 %v78_v31  ;;  %1235 = vmatmul.f32.gmra.mxu2 %v314_v32 }
  0xa0   :  { %v4051_v33 = vpop.f32.mrf.mxu0 }
  0xa2   :  { %v4059_v36 = vpop.f32.mrf.mxu1 }
  0xa3   :  { %435 = vmatmul.f32.gmra.mxu0 %v79_v34  ;;  %789 = vmatmul.f32.gmra.mxu3 %v315_v35  ;;  %v91_v35 = vld [vmem:[%s6308_s0 + $0x160] sm:$0xff] }
  0xa5   :  { %884 = vmatmul.f32.gmra.mxu1 %v80_v37  ;;  %1238 = vmatmul.f32.gmra.mxu2 %v316_v38  ;;  %v327_v37 = vld [vmem:[%s6308_s0 + $0x8c0] sm:$0xff] }
  0xa6   :  { %v742_v40 = vpop.f32.mrf.mxu3 }
  0xa7   :  { %v743_v41 = vadd.f32 %v4070_v39, %v742_v40 }
  0xa8   :  { %v4073_v42 = vpop.f32.mrf.mxu0  ;;  %v1191_v43 = vpop.f32.mrf.mxu2 }
  0xa9   :  { %v4081_v46 = vadd.f32 %v1191_v43, %v743_v41  ;;  %v92_v41 = vld [vmem:[%s6308_s0 + $0x168] sm:$0xff] }
  0xaa   :  { %v4083_v47 = vpop.f32.mrf.mxu1  ;;  %v328_v43 = vld [vmem:[%s6308_s0 + $0x8c8] sm:$0xff] }
  0xab   :  { %438 = vmatmul.f32.gmra.mxu0 %v81_v44  ;;  %792 = vmatmul.f32.gmra.mxu3 %v317_v45  ;;  %v1416_v44 = vld [vmem:[%s6311_s3 + $0x18] sm:$0xff]  ;;  %v1415_v45 = vld [vmem:[%s6311_s3 + $0x10] sm:$0xff] }
  0xac   :  { %1588 = vmatpush.msra.mxu3 %v1416_v44 }
  0xad   :  { %887 = vmatmul.f32.gmra.mxu1 %v82_v48  ;;  %1241 = vmatmul.f32.gmra.mxu2 %v318_v49 }
  0xae   :  { %v745_v50 = vpop.f32.mrf.mxu3  ;;  %1589 = vmatpush.msra.mxu3 %v1415_v45 }
  0xaf   :  { %v746_v51 = vadd.f32 %v4070_v39, %v745_v50  ;;  %v1414_v50 = vld [vmem:[%s6311_s3 + $0x8] sm:$0xff] }
  0xb0   :  { %v4092_v52 = vpop.f32.mrf.mxu0  ;;  %v1194_v53 = vpop.f32.mrf.mxu2  ;;  %1590 = vmatpush.msra.mxu3 %v1414_v50 }
  0xb1   :  { %v4100_v56 = vadd.f32 %v1194_v53, %v746_v51 }
  0xb2   :  { %v4102_v57 = vpop.f32.mrf.mxu1 }
  0xb3   :  { %441 = vmatmul.f32.gmra.mxu0 %v83_v54  ;;  %795 = vmatmul.f32.gmra.mxu3 %v319_v55  ;;  %v93_v54 = vld [vmem:[%s6308_s0 + $0x170] sm:$0xff] }
  0xb4   :  { %v329_v55 = vld [vmem:[%s6308_s0 + $0x8d0] sm:$0xff] }
  0xb5   :  { %890 = vmatmul.f32.gmra.mxu1 %v84_v58  ;;  %1244 = vmatmul.f32.gmra.mxu2 %v320_v59  ;;  %v1413_v59 = vld [vmem:[%s6311_s3] sm:$0xff] }
  0xb6   :  { %v748_v60 = vpop.f32.mrf.mxu3  ;;  %1591 = vmatpush.msra.mxu3 %v1413_v59 }
  0xb7   :  { %v749_v61 = vadd.f32 %v4070_v39, %v748_v60 }
  0xb8   :  { %v4111_v62 = vpop.f32.mrf.mxu0  ;;  %v1197_v63 = vpop.f32.mrf.mxu2 }
  0xb9   :  { %v4119_v2 = vadd.f32 %v1197_v63, %v749_v61  ;;  %v94_v61 = vld [vmem:[%s6308_s0 + $0x178] sm:$0xff] }
  0xba   :  { %v4121_v3 = vpop.f32.mrf.mxu1  ;;  %v330_v63 = vld [vmem:[%s6308_s0 + $0x8d8] sm:$0xff] }
  0xbb   :  { %444 = vmatmul.f32.gmra.mxu0 %v85_v0  ;;  %798 = vmatmul.f32.gmra.mxu3 %v321_v1 }
  0xbd   :  { %893 = vmatmul.f32.gmra.mxu1 %v86_v4  ;;  %1247 = vmatmul.f32.gmra.mxu2 %v322_v5 }
  0xbe   :  { %v751_v6 = vpop.f32.mrf.mxu3 }
  0xbf   :  { %v752_v7 = vadd.f32 %v4070_v39, %v751_v6  ;;  %v95_v6 = vld [vmem:[%s6308_s0 + $0x180] sm:$0xff] }
  0xc0   :  { %v4130_v8 = vpop.f32.mrf.mxu0  ;;  %v1200_v9 = vpop.f32.mrf.mxu2 }
  0xc1   :  { %v4138_v12 = vadd.f32 %v1200_v9, %v752_v7  ;;  %v331_v7 = vld [vmem:[%s6308_s0 + $0x8e0] sm:$0xff] }
  0xc2   :  { %v4140_v13 = vpop.f32.mrf.mxu1 }
  0xc3   :  { %447 = vmatmul.f32.gmra.mxu0 %v87_v10  ;;  %801 = vmatmul.f32.gmra.mxu3 %v323_v11  ;;  %v96_v11 = vld [vmem:[%s6308_s0 + $0x188] sm:$0xff] }
  0xc5   :  { %896 = vmatmul.f32.gmra.mxu1 %v88_v14  ;;  %1250 = vmatmul.f32.gmra.mxu2 %v324_v15  ;;  %v332_v14 = vld [vmem:[%s6308_s0 + $0x8e8] sm:$0xff] }
  0xc6   :  { %v754_v16 = vpop.f32.mrf.mxu3 }
  0xc7   :  { %v755_v17 = vadd.f32 %v4070_v39, %v754_v16 }
  0xc8   :  { %v4152_v19 = vpop.f32.mrf.mxu0  ;;  %v1203_v20 = vpop.f32.mrf.mxu2 }
  0xc9   :  { %v4160_v23 = vadd.f32 %v1203_v20, %v755_v17  ;;  %v97_v20 = vld [vmem:[%s6308_s0 + $0x190] sm:$0xff] }
  0xca   :  { %v4165_v25 = vpop.f32.mrf.mxu1 }
  0xcb   :  { %450 = vmatmul.f32.gmra.mxu0 %v89_v21  ;;  %804 = vmatmul.f32.gmra.mxu3 %v325_v22  ;;  %v333_v21 = vld [vmem:[%s6308_s0 + $0x8f0] sm:$0xff] }
  0xcd   :  { %899 = vmatmul.f32.gmra.mxu1 %v90_v26  ;;  %1253 = vmatmul.f32.gmra.mxu2 %v326_v27  ;;  %v98_v27 = vld [vmem:[%s6308_s0 + $0x198] sm:$0xff] }
  0xce   :  { %v757_v30 = vpop.f32.mrf.mxu3 }
  0xcf   :  { %v758_v31 = vadd.f32 %v4070_v39, %v757_v30 }
  0xd0   :  { %v4180_v32 = vpop.f32.mrf.mxu0  ;;  %v1206_v34 = vpop.f32.mrf.mxu2 }
  0xd1   :  { %v4188_v38 = vadd.f32 %v1206_v34, %v758_v31 }
  0xd2   :  { %v4190_v40 = vpop.f32.mrf.mxu1 }
  0xd3   :  { %453 = vmatmul.f32.gmra.mxu0 %v91_v35  ;;  %807 = vmatmul.f32.gmra.mxu3 %v327_v37  ;;  %v99_v37 = vld [vmem:[%s6308_s0 + $0x1a0] sm:$0xff] }
  0xd5   :  { %902 = vmatmul.f32.gmra.mxu1 %v92_v41  ;;  %1256 = vmatmul.f32.gmra.mxu2 %v328_v43  ;;  %v334_v41 = vld [vmem:[%s6308_s0 + $0x8f8] sm:$0xff]  ;;  %v389_v43 = vadd.f32 %v4070_v39, %v4051_v33 }
  0xd6   :  { %v760_v48 = vpop.f32.mrf.mxu3 }
  0xd7   :  { %v761_v49 = vadd.f32 %v4070_v39, %v760_v48 }
  0xd8   :  { %v4208_v51 = vpop.f32.mrf.mxu0  ;;  %v1209_v53 = vpop.f32.mrf.mxu2 }
  0xd9   :  { %v4216_v58 = vadd.f32 %v1209_v53, %v761_v49  ;;  %v100_v49 = vld [vmem:[%s6308_s0 + $0x1a8] sm:$0xff]  ;;  %v838_v53 = vadd.f32 %v4059_v36, %v389_v43 }
  0xda   :  { %v4221_v60 = vpop.f32.mrf.mxu1 }
  0xdb   :  { %456 = vmatmul.f32.gmra.mxu0 %v93_v54  ;;  %810 = vmatmul.f32.gmra.mxu3 %v329_v55 }
  0xdd   :  { %905 = vmatmul.f32.gmra.mxu1 %v94_v61  ;;  %1259 = vmatmul.f32.gmra.mxu2 %v330_v63  ;;  %v101_v63 = vld [vmem:[%s6308_s0 + $0x1b0] sm:$0xff] }
  0xde   :  { %v763_v0 = vpop.f32.mrf.mxu3 }
  0xdf   :  { %v764_v1 = vadd.f32 %v4070_v39, %v763_v0  ;;  %v1269_v0 = vmax.f32 %v838_v53, 0.0  ;;  %v107_v53 = vld [vmem:[%s6308_s0 + $0x1e0] sm:$0xff] }
  0xe0   :  { %v4230_v4 = vpop.f32.mrf.mxu0  ;;  %v1212_v5 = vpop.f32.mrf.mxu2 }
  0xe1   :  { %v4238_v9 = vadd.f32 %v1212_v5, %v764_v1  ;;  %v392_v1 = vadd.f32 %v4070_v39, %v4073_v42 }
  0xe2   :  { %v4240_v10 = vpop.f32.mrf.mxu1 }
  0xe3   :  { %459 = vmatmul.f32.gmra.mxu0 %v95_v6  ;;  %813 = vmatmul.f32.gmra.mxu3 %v331_v7  ;;  %v102_v7 = vld [vmem:[%s6308_s0 + $0x1b8] sm:$0xff] }
  0xe5   :  { %908 = vmatmul.f32.gmra.mxu1 %v96_v11  ;;  %1262 = vmatmul.f32.gmra.mxu2 %v332_v14  ;;  %v841_v14 = vadd.f32 %v4083_v47, %v392_v1 }
  0xe6   :  { %v766_v15 = vpop.f32.mrf.mxu3 }
  0xe7   :  { %v767_v16 = vadd.f32 %v4070_v39, %v766_v15 }
  0xe8   :  { %v415_v17 = vpop.f32.mrf.mxu0  ;;  %v1215_v18 = vpop.f32.mrf.mxu2 }
  0xe9   :  { %v416_v22 = vadd.f32 %v4070_v39, %v415_v17  ;;  %v4256_v24 = vadd.f32 %v1215_v18, %v767_v16 }
  0xea   :  { %v864_v26 = vpop.f32.mrf.mxu1 }
  0xeb   :  { %v865_v28 = vadd.f32 %v864_v26, %v416_v22  ;;  %462 = vmatmul.f32.gmra.mxu0 %v97_v20  ;;  %816 = vmatmul.f32.gmra.mxu3 %v333_v21  ;;  %v103_v20 = vld [vmem:[%s6308_s0 + $0x1c0] sm:$0xff]  ;;  %v1270_v21 = vmax.f32 %v841_v14, 0.0  ;;  %v395_v22 = vadd.f32 %v4070_v39, %v4092_v52  ;;  %v404_v14 = vadd.f32 %v4070_v39, %v4152_v19 }
  0xec   :  { %v111_v19 = vld [vmem:[%s6308_s0 + $0x200] sm:$0xff] }
  0xed   :  { %v1278_v29 = vmax.f32 %v865_v28, 0.0  ;;  %911 = vmatmul.f32.gmra.mxu1 %v98_v27  ;;  %v104_v28 = vld [vmem:[%s6308_s0 + $0x1c8] sm:$0xff] }
  0xee   :  { %v769_v30 = vpop.f32.mrf.mxu3 }
  0xef   :  { %v770_v31 = vadd.f32 %v4070_v39, %v769_v30  ;;  %3372 = vmatmul.msk.f32.vlgmr.msrb.gmra.mxu2 %vm1477_vm0, %v1278_v29  ;;  %v844_v30 = vadd.f32 %v4102_v57, %v395_v22  ;;  %v106_v57 = vld [vmem:[%s6308_s0 + $0x1d8] sm:$0xff]  ;;  %v407_v22 = vadd.f32 %v4070_v39, %v4180_v32  ;;  %v113_v32 = vld [vmem:[%s6308_s0 + $0x210] sm:$0xff] }
  0xf0   :  { %v418_v34 = vpop.f32.mrf.mxu0  ;;  %v1218_v35 = vpop.f32.mrf.mxu2 }
  0xf1   :  { %v419_v44 = vadd.f32 %v4070_v39, %v418_v34  ;;  %v4272_v45 = vadd.f32 %v1218_v35, %v770_v31  ;;  %v105_v34 = vld [vmem:[%s6308_s0 + $0x1d0] sm:$0xff]  ;;  %v1271_v35 = vmax.f32 %v844_v30, 0.0 }
  0xf2   :  { %v867_v48 = vpop.f32.mrf.mxu1 }
  0xf3   :  { %v868_v50 = vadd.f32 %v867_v48, %v419_v44  ;;  %465 = vmatmul.f32.gmra.mxu0 %v99_v37  ;;  %1265 = vmatmul.f32.vlgmr.msrb.gmra.mxu3 %v334_v41  ;;  %v398_v37 = vadd.f32 %v4070_v39, %v4111_v62  ;;  %v1424_v62 = vld [vmem:[%s6311_s3 + $0x58] sm:$0xff] }
  0xf4   :  { %1659 = vmatpush.msra.mxu2 %v1424_v62 }
  0xf5   :  { %v1279_v54 = vmax.f32 %v868_v50, 0.0  ;;  %914 = vmatmul.f32.gmra.mxu1 %v100_v49  ;;  %v847_v48 = vadd.f32 %v4121_v3, %v398_v37 }
  0xf6   :  { %v772_v55 = vpop.f32.mrf.mxu3 }
  0xf7   :  { %v773_v59 = vadd.f32 %v4070_v39, %v772_v55  ;;  %3373 = vmatmul.msk.f32.gmra.mxu2 %vm1477_vm0, %v1279_v54  ;;  %v1272_v54 = vmax.f32 %v847_v48, 0.0  ;;  %v401_v55 = vadd.f32 %v4070_v39, %v4130_v8  ;;  %v1422_v8 = vld [vmem:[%s6311_s3 + $0x48] sm:$0xff] }
  0xf8   :  { %v421_v33 = vpop.f32.mrf.mxu0  ;;  %v1221_v61 = vpop.f32.mrf.mxu2 }
  0xf9   :  { %v422_v5 = vadd.f32 %v4070_v39, %v421_v33  ;;  %v4286_v36 = vadd.f32 %v1221_v61, %v773_v59  ;;  %v1423_v59 = vld [vmem:[%s6311_s3 + $0x50] sm:$0xff]  ;;  %v108_v61 = vld [vmem:[%s6308_s0 + $0x1e8] sm:$0xff] }
  0xfa   :  { %v870_v6 = vpop.f32.mrf.mxu1  ;;  %1660 = vmatpush.msra.mxu2 %v1423_v59 }
  0xfb   :  { %v871_v11 = vadd.f32 %v870_v6, %v422_v5  ;;  %468 = vmatmul.f32.gmra.mxu0 %v101_v63  ;;  %3381 = vmatmul.msk.f32.vlgmr.msra.gmra.mxu3 %vm1477_vm0, %v1269_v0  ;;  %v850_v0 = vadd.f32 %v4140_v13, %v401_v55  ;;  %v1421_v5 = vld [vmem:[%s6311_s3 + $0x40] sm:$0xff] }
  0xfc   :  { %1661 = vmatpush.msra.mxu2 %v1422_v8 }
  0xfd   :  { %v1280_v15 = vmax.f32 %v871_v11, 0.0  ;;  %917 = vmatmul.f32.gmra.mxu1 %v102_v7  ;;  %v109_v7 = vld [vmem:[%s6308_s0 + $0x1f0] sm:$0xff]  ;;  %v1273_v11 = vmax.f32 %v850_v0, 0.0 }
  0xfe   :  { %v775_v16 = vpop.f32.mrf.mxu3  ;;  %1662 = vmatpush.msra.mxu2 %v1421_v5  ;;  %v119_v5 = vld [vmem:[%s6308_s0 + $0x240] sm:$0xff] }
  0xff   :  { %v776_v42 = vadd.f32 %v4070_v39, %v775_v16  ;;  %3374 = vmatmul.msk.f32.gmra.mxu2 %vm1477_vm0, %v1280_v15  ;;  %v110_v16 = vld [vmem:[%s6308_s0 + $0x1f8] sm:$0xff] }
 0x100   :  { %v424_v17 = vpop.f32.mrf.mxu0  ;;  %v1224_v18 = vpop.f32.mrf.mxu2 }
 0x101   :  { %v425_v26 = vadd.f32 %v4070_v39, %v424_v17  ;;  %v4301_v47 = vadd.f32 %v1224_v18, %v776_v42  ;;  %v853_v17 = vadd.f32 %v4165_v25, %v404_v14  ;;  %v112_v25 = vld [vmem:[%s6308_s0 + $0x208] sm:$0xff] }
 0x102   :  { %v873_v27 = vpop.f32.mrf.mxu1 }
 0x103   :  { %v874_v29 = vadd.f32 %v873_v27, %v425_v26  ;;  %471 = vmatmul.f32.gmra.mxu0 %v103_v20  ;;  %3382 = vmatmul.msk.f32.gmra.mxu3 %vm1477_vm0, %v1270_v21  ;;  %v1274_v21 = vmax.f32 %v853_v17, 0.0 }
 0x105   :  { %v1281_v31 = vmax.f32 %v874_v29, 0.0  ;;  %920 = vmatmul.f32.gmra.mxu1 %v104_v28  ;;  %v856_v29 = vadd.f32 %v4190_v40, %v407_v22  ;;  %v114_v40 = vld [vmem:[%s6308_s0 + $0x218] sm:$0xff] }
 0x107   :  { %3375 = vmatmul.msk.f32.gmra.mxu2 %vm1477_vm0, %v1281_v31 }
 0x108   :  { %v427_v52 = vpop.f32.mrf.mxu0  ;;  %v4400_v8 = vpop.f32.mrf.mxu2 }
 0x109   :  { %v428_v41 = vadd.f32 %v4070_v39, %v427_v52  ;;  %v1275_v52 = vmax.f32 %v856_v29, 0.0  ;;  %v124_v29 = vld [vmem:[%s6308_s0 + $0x268] sm:$0xff] }
 0x10a   :  { %v876_v43 = vpop.f32.mrf.mxu1 }
 0x10b   :  { %v877_v44 = vadd.f32 %v876_v43, %v428_v41  ;;  %474 = vmatmul.f32.gmra.mxu0 %v105_v34  ;;  %3383 = vmatmul.msk.f32.gmra.mxu3 %vm1477_vm0, %v1271_v35  ;;  %v410_v34 = vadd.f32 %v4070_v39, %v4208_v51  ;;  %v115_v51 = vld [vmem:[%s6308_s0 + $0x220] sm:$0xff] }
 0x10d   :  { %v1282_v49 = vmax.f32 %v877_v44, 0.0  ;;  %923 = vmatmul.f32.gmra.mxu1 %v106_v57  ;;  %v859_v43 = vadd.f32 %v4221_v60, %v410_v34  ;;  %v116_v60 = vld [vmem:[%s6308_s0 + $0x228] sm:$0xff]  ;;  %v125_v34 = vld [vmem:[%s6308_s0 + $0x270] sm:$0xff] }
 0x10f   :  { %3376 = vmatmul.msk.f32.gmra.mxu2 %vm1477_vm0, %v1282_v49  ;;  %v1276_v48 = vmax.f32 %v859_v43, 0.0  ;;  %v413_v49 = vadd.f32 %v4070_v39, %v4230_v4  ;;  %v117_v4 = vld [vmem:[%s6308_s0 + $0x230] sm:$0xff]  ;;  %v126_v43 = vld [vmem:[%s6308_s0 + $0x278] sm:$0xff] }
 0x110   :  { %v430_v50 = vpop.f32.mrf.mxu0 }
 0x111   :  { %v431_v3 = vadd.f32 %v4070_v39, %v430_v50 }
 0x112   :  { %v879_v33 = vpop.f32.mrf.mxu1 }
 0x113   :  { %v880_v63 = vadd.f32 %v879_v33, %v431_v3  ;;  %477 = vmatmul.f32.gmra.mxu0 %v107_v53  ;;  %3384 = vmatmul.msk.f32.gmra.mxu3 %vm1477_vm0, %v1272_v54  ;;  %v862_v54 = vadd.f32 %v4240_v10, %v413_v49 }
 0x115   :  { %v1283_v1 = vmax.f32 %v880_v63, 0.0  ;;  %926 = vmatmul.f32.gmra.mxu1 %v108_v61  ;;  %v1277_v59 = vmax.f32 %v862_v54, 0.0  ;;  %v118_v63 = vld [vmem:[%s6308_s0 + $0x238] sm:$0xff] }
 0x117   :  { %3377 = vmatmul.msk.f32.gmra.mxu2 %vm1477_vm0, %v1283_v1 }
 0x118   :  { %v433_v6 = vpop.f32.mrf.mxu0 }
 0x119   :  { %v434_v13 = vadd.f32 %v4070_v39, %v433_v6 }
 0x11a   :  { %v882_v15 = vpop.f32.mrf.mxu1 }
 0x11b   :  { %v883_v42 = vadd.f32 %v882_v15, %v434_v13  ;;  %480 = vmatmul.f32.gmra.mxu0 %v109_v7  ;;  %3385 = vmatmul.msk.f32.gmra.mxu3 %vm1477_vm0, %v1273_v11  ;;  %v120_v11 = vld [vmem:[%s6308_s0 + $0x248] sm:$0xff]  ;;  %v4411_v13 = vpop.f32.mrf.mxu2 }
 0x11d   :  { %v1284_v18 = vmax.f32 %v883_v42, 0.0  ;;  %929 = vmatmul.f32.gmra.mxu1 %v110_v16  ;;  %v121_v42 = vld [vmem:[%s6308_s0 + $0x250] sm:$0xff] }
 0x11f   :  { %3378 = vmatmul.msk.f32.gmra.mxu2 %vm1477_vm0, %v1284_v18 }
 0x120   :  { %v436_v20 = vpop.f32.mrf.mxu0 }
 0x121   :  { %v437_v26 = vadd.f32 %v4070_v39, %v436_v20  ;;  %v122_v20 = vld [vmem:[%s6308_s0 + $0x258] sm:$0xff] }
 0x122   :  { %v885_v27 = vpop.f32.mrf.mxu1 }
 0x123   :  { %v886_v28 = vadd.f32 %v885_v27, %v437_v26  ;;  %483 = vmatmul.f32.gmra.mxu0 %v111_v19  ;;  %3386 = vmatmul.msk.f32.gmra.mxu3 %vm1477_vm0, %v1274_v21  ;;  %v4421_v22 = vpop.f32.mrf.mxu2  ;;  %v123_v27 = vld [vmem:[%s6308_s0 + $0x260] sm:$0xff] }
 0x125   :  { %v1285_v30 = vmax.f32 %v886_v28, 0.0  ;;  %932 = vmatmul.f32.gmra.mxu1 %v112_v25 }
 0x127   :  { %3379 = vmatmul.msk.f32.gmra.mxu2 %vm1477_vm0, %v1285_v30 }
 0x128   :  { %v439_v31 = vpop.f32.mrf.mxu0 }
 0x129   :  { %v440_v35 = vadd.f32 %v4070_v39, %v439_v31 }
 0x12a   :  { %v888_v37 = vpop.f32.mrf.mxu1 }
 0x12b   :  { %v889_v41 = vadd.f32 %v888_v37, %v440_v35  ;;  %486 = vmatmul.f32.gmra.mxu0 %v113_v32  ;;  %3387 = vmatmul.msk.f32.gmra.mxu3 %vm1477_vm0, %v1275_v52  ;;  %v1428_v32 = vld [vmem:[%s6311_s3 + $0x78] sm:$0xff]  ;;  %v4438_v35 = vpop.f32.mrf.mxu2 }
 0x12c   :  { %1739 = vmatpush.msrb.mxu3 %v1428_v32 }
 0x12d   :  { %v1286_v57 = vmax.f32 %v889_v41, 0.0  ;;  %935 = vmatmul.f32.gmra.mxu1 %v114_v40  ;;  %v1427_v40 = vld [vmem:[%s6311_s3 + $0x70] sm:$0xff] }
 0x12e   :  { %1740 = vmatpush.msrb.mxu3 %v1427_v40 }
 0x12f   :  { %3380 = vmatmul.msk.f32.gmra.mxu2 %vm1477_vm0, %v1286_v57 }
 0x130   :  { %v442_v44 = vpop.f32.mrf.mxu0 }
 0x131   :  { %v443_v62 = vadd.f32 %v4070_v39, %v442_v44  ;;  %v1426_v44 = vld [vmem:[%s6311_s3 + $0x68] sm:$0xff] }
 0x132   :  { %v891_v50 = vpop.f32.mrf.mxu1  ;;  %1741 = vmatpush.msrb.mxu3 %v1426_v44 }
 0x133   :  { %v892_v53 = vadd.f32 %v891_v50, %v443_v62  ;;  %489 = vmatmul.f32.gmra.mxu0 %v115_v51  ;;  %3388 = vmatmul.msk.f32.gmra.mxu3 %vm1477_vm0, %v1276_v48  ;;  %v1425_v48 = vld [vmem:[%s6311_s3 + $0x60] sm:$0xff]  ;;  %v4461_v54 = vpop.f32.mrf.mxu2 }
 0x134   :  { %1742 = vmatpush.msrb.mxu3 %v1425_v48  ;;  %v127_v62 = vld [vmem:[%s6308_s0 + $0x280] sm:$0xff] }
 0x135   :  { %v1287_v55 = vmax.f32 %v892_v53, 0.0  ;;  %938 = vmatmul.f32.gmra.mxu1 %v116_v60  ;;  %v128_v53 = vld [vmem:[%s6308_s0 + $0x288] sm:$0xff] }
 0x137   :  { %3390 = vmatmul.msk.f32.vlgmr.msra.gmra.mxu2 %vm1477_vm0, %v1287_v55 }
 0x138   :  { %v445_v3 = vpop.f32.mrf.mxu0 }
 0x139   :  { %v446_v33 = vadd.f32 %v4070_v39, %v445_v3 }
 0x13a   :  { %v894_v61 = vpop.f32.mrf.mxu1 }
 0x13b   :  { %v895_v10 = vadd.f32 %v894_v61, %v446_v33  ;;  %492 = vmatmul.f32.gmra.mxu0 %v117_v4  ;;  %3389 = vmatmul.msk.f32.gmra.mxu3 %vm1477_vm0, %v1277_v59  ;;  %v129_v59 = vld [vmem:[%s6308_s0 + $0x290] sm:$0xff] }
 0x13d   :  { %v1288_v0 = vmax.f32 %v895_v10, 0.0  ;;  %941 = vmatmul.f32.gmra.mxu1 %v118_v63  ;;  %v130_v63 = vld [vmem:[%s6308_s0 + $0x298] sm:$0xff] }
 0x13f   :  { %3391 = vmatmul.msk.f32.gmra.mxu2 %vm1477_vm0, %v1288_v0  ;;  %v4471_v0 = vpop.f32.mrf.mxu2 }
 0x140   :  { %v448_v1 = vpop.f32.mrf.mxu0 }
 0x141   :  { %v449_v6 = vadd.f32 %v4070_v39, %v448_v1 }
 0x142   :  { %v897_v7 = vpop.f32.mrf.mxu1 }
 0x143   :  { %v898_v14 = vadd.f32 %v897_v7, %v449_v6  ;;  %495 = vmatmul.f32.gmra.mxu0 %v119_v5  ;;  %v4473_v5 = vpop.f32.mrf.mxu3  ;;  %v131_v7 = vld [vmem:[%s6308_s0 + $0x2a0] sm:$0xff] }
 0x145   :  { %v1289_v15 = vmax.f32 %v898_v14, 0.0  ;;  %944 = vmatmul.f32.gmra.mxu1 %v120_v11 }
 0x147   :  { %3392 = vmatmul.msk.f32.gmra.mxu2 %vm1477_vm0, %v1289_v15  ;;  %v132_v15 = vld [vmem:[%s6308_s0 + $0x2a8] sm:$0xff] }
 0x148   :  { %v451_v16 = vpop.f32.mrf.mxu0 }
 0x149   :  { %v452_v17 = vadd.f32 %v4070_v39, %v451_v16 }
 0x14a   :  { %v900_v18 = vpop.f32.mrf.mxu1 }
 0x14b   :  { %v901_v19 = vadd.f32 %v900_v18, %v452_v17  ;;  %498 = vmatmul.f32.gmra.mxu0 %v121_v42  ;;  %v4483_v17 = vpop.f32.mrf.mxu2 }
 0x14d   :  { %v1290_v21 = vmax.f32 %v901_v19, 0.0  ;;  %947 = vmatmul.f32.gmra.mxu1 %v122_v20  ;;  %v133_v20 = vld [vmem:[%s6308_s0 + $0x2b0] sm:$0xff]  ;;  %v4489_v19 = vpop.f32.mrf.mxu3 }
 0x14f   :  { %3393 = vmatmul.msk.f32.gmra.mxu2 %vm1477_vm0, %v1290_v21 }
 0x150   :  { %v454_v26 = vpop.f32.mrf.mxu0 }
 0x151   :  { %v455_v25 = vadd.f32 %v4070_v39, %v454_v26 }
 0x152   :  { %v903_v28 = vpop.f32.mrf.mxu1 }
 0x153   :  { %v904_v30 = vadd.f32 %v903_v28, %v455_v25  ;;  %501 = vmatmul.f32.gmra.mxu0 %v123_v27  ;;  %v134_v27 = vld [vmem:[%s6308_s0 + $0x2b8] sm:$0xff] }
 0x155   :  { %v1291_v31 = vmax.f32 %v904_v30, 0.0  ;;  %950 = vmatmul.f32.gmra.mxu1 %v124_v29  ;;  %v135_v30 = vld [vmem:[%s6308_s0 + $0x2c0] sm:$0xff] }
 0x157   :  { %3394 = vmatmul.msk.f32.gmra.mxu2 %vm1477_vm0, %v1291_v31 }
 0x158   :  { %v457_v52 = vpop.f32.mrf.mxu0 }
 0x159   :  { %v458_v37 = vadd.f32 %v4070_v39, %v457_v52  ;;  %v136_v52 = vld [vmem:[%s6308_s0 + $0x2c8] sm:$0xff] }
 0x15a   :  { %v906_v41 = vpop.f32.mrf.mxu1 }
 0x15b   :  { %v907_v57 = vadd.f32 %v906_v41, %v458_v37  ;;  %504 = vmatmul.f32.gmra.mxu0 %v125_v34  ;;  %v4503_v34 = vpop.f32.mrf.mxu3 }
 0x15d   :  { %v1292_v51 = vmax.f32 %v907_v57, 0.0  ;;  %953 = vmatmul.f32.gmra.mxu1 %v126_v43  ;;  %v137_v43 = vld [vmem:[%s6308_s0 + $0x2d0] sm:$0xff] }
 0x15f   :  { %3395 = vmatmul.msk.f32.gmra.mxu2 %vm1477_vm0, %v1292_v51  ;;  %v138_v51 = vld [vmem:[%s6308_s0 + $0x2d8] sm:$0xff] }
 0x160   :  { %v460_v49 = vpop.f32.mrf.mxu0 }
 0x161   :  { %v461_v50 = vadd.f32 %v4070_v39, %v460_v49 }
 0x162   :  { %v909_v60 = vpop.f32.mrf.mxu1 }
 0x163   :  { %v910_v55 = vadd.f32 %v909_v60, %v461_v50  ;;  %507 = vmatmul.f32.gmra.mxu0 %v127_v62  ;;  %v4513_v49 = vpop.f32.mrf.mxu3  ;;  %v139_v60 = vld [vmem:[%s6308_s0 + $0x2e0] sm:$0xff] }
 0x165   :  { %v1293_v3 = vmax.f32 %v910_v55, 0.0  ;;  %956 = vmatmul.f32.gmra.mxu1 %v128_v53 }
 0x167   :  { %3396 = vmatmul.msk.f32.gmra.mxu2 %vm1477_vm0, %v1293_v3  ;;  %v140_v3 = vld [vmem:[%s6308_s0 + $0x2e8] sm:$0xff] }
 0x168   :  { %v463_v4 = vpop.f32.mrf.mxu0 }
 0x169   :  { %v464_v33 = vadd.f32 %v4070_v39, %v463_v4 }
 0x16a   :  { %v912_v61 = vpop.f32.mrf.mxu1 }
 0x16b   :  { %v913_v10 = vadd.f32 %v912_v61, %v464_v33  ;;  %510 = vmatmul.f32.gmra.mxu0 %v129_v59  ;;  %v4523_v33 = vpop.f32.mrf.mxu3 }
 0x16d   :  { %v1294_v1 = vmax.f32 %v913_v10, 0.0  ;;  %959 = vmatmul.f32.gmra.mxu1 %v130_v63  ;;  %v141_v63 = vld [vmem:[%s6308_s0 + $0x2f0] sm:$0xff] }
 0x16f   :  { %3397 = vmatmul.msk.f32.gmra.mxu2 %vm1477_vm0, %v1294_v1 }
 0x170   :  { %v466_v6 = vpop.f32.mrf.mxu0 }
 0x171   :  { %v467_v11 = vadd.f32 %v4070_v39, %v466_v6  ;;  %v142_v6 = vld [vmem:[%s6308_s0 + $0x2f8] sm:$0xff] }
 0x172   :  { %v915_v14 = vpop.f32.mrf.mxu1 }
 0x173   :  { %v916_v16 = vadd.f32 %v915_v14, %v467_v11  ;;  %513 = vmatmul.f32.gmra.mxu0 %v131_v7  ;;  %v1432_v14 = vld [vmem:[%s6311_s3 + $0x98] sm:$0xff] }
 0x174   :  { %1819 = vmatpush.msrb.mxu2 %v1432_v14 }
 0x175   :  { %v1295_v42 = vmax.f32 %v916_v16, 0.0  ;;  %962 = vmatmul.f32.gmra.mxu1 %v132_v15  ;;  %v143_v16 = vld [vmem:[%s6308_s0 + $0x300] sm:$0xff] }
 0x177   :  { %3398 = vmatmul.msk.f32.gmra.mxu2 %vm1477_vm0, %v1295_v42  ;;  %v4540_v42 = vpop.f32.mrf.mxu3 }
 0x178   :  { %v469_v18 = vpop.f32.mrf.mxu0 }
 0x179   :  { %v470_v21 = vadd.f32 %v4070_v39, %v469_v18 }
 0x17a   :  { %v918_v26 = vpop.f32.mrf.mxu1 }
 0x17b   :  { %v919_v25 = vadd.f32 %v918_v26, %v470_v21  ;;  %516 = vmatmul.f32.gmra.mxu0 %v133_v20  ;;  %v1431_v20 = vld [vmem:[%s6311_s3 + $0x90] sm:$0xff]  ;;  %v144_v26 = vld [vmem:[%s6308_s0 + $0x308] sm:$0xff] }
 0x17c   :  { %1820 = vmatpush.msrb.mxu2 %v1431_v20 }
 0x17d   :  { %v1296_v28 = vmax.f32 %v919_v25, 0.0  ;;  %965 = vmatmul.f32.gmra.mxu1 %v134_v27  ;;  %v1430_v25 = vld [vmem:[%s6311_s3 + $0x88] sm:$0xff] }
 0x17e   :  { %1821 = vmatpush.msrb.mxu2 %v1430_v25 }
 0x17f   :  { %3399 = vmatmul.msk.f32.vlgmr.msrb.gmra.mxu3 %vm1477_vm0, %v1296_v28 }
 0x180   :  { %v472_v29 = vpop.f32.mrf.mxu0 }
 0x181   :  { %v473_v31 = vadd.f32 %v4070_v39, %v472_v29  ;;  %v1429_v29 = vld [vmem:[%s6311_s3 + $0x80] sm:$0xff] }
 0x182   :  { %v921_v32 = vpop.f32.mrf.mxu1  ;;  %1822 = vmatpush.msrb.mxu2 %v1429_v29  ;;  %v154_v29 = vld [vmem:[%s6308_s0 + $0x358] sm:$0xff] }
 0x183   :  { %v922_v37 = vadd.f32 %v921_v32, %v473_v31  ;;  %519 = vmatmul.f32.gmra.mxu0 %v135_v30  ;;  %v145_v31 = vld [vmem:[%s6308_s0 + $0x310] sm:$0xff] }
 0x185   :  { %v1297_v40 = vmax.f32 %v922_v37, 0.0  ;;  %968 = vmatmul.f32.gmra.mxu1 %v136_v52  ;;  %v146_v37 = vld [vmem:[%s6308_s0 + $0x318] sm:$0xff] }
 0x187   :  { %3400 = vmatmul.msk.f32.gmra.mxu3 %vm1477_vm0, %v1297_v40  ;;  %v4563_v40 = vpop.f32.mrf.mxu3 }
 0x188   :  { %v475_v41 = vpop.f32.mrf.mxu0 }
 0x189   :  { %v476_v57 = vadd.f32 %v4070_v39, %v475_v41 }
 0x18a   :  { %v924_v44 = vpop.f32.mrf.mxu1 }
 0x18b   :  { %v925_v48 = vadd.f32 %v924_v44, %v476_v57  ;;  %522 = vmatmul.f32.gmra.mxu0 %v137_v43  ;;  %v147_v44 = vld [vmem:[%s6308_s0 + $0x320] sm:$0xff] }
 0x18d   :  { %v1298_v62 = vmax.f32 %v925_v48, 0.0  ;;  %971 = vmatmul.f32.gmra.mxu1 %v138_v51 }
 0x18f   :  { %3401 = vmatmul.msk.f32.gmra.mxu3 %vm1477_vm0, %v1298_v62  ;;  %v148_v62 = vld [vmem:[%s6308_s0 + $0x328] sm:$0xff] }
 0x190   :  { %v478_v50 = vpop.f32.mrf.mxu0 }
 0x191   :  { %v479_v53 = vadd.f32 %v4070_v39, %v478_v50 }
 0x192   :  { %v927_v55 = vpop.f32.mrf.mxu1 }
 0x193   :  { %v928_v4 = vadd.f32 %v927_v55, %v479_v53  ;;  %525 = vmatmul.f32.gmra.mxu0 %v139_v60  ;;  %v4573_v60 = vpop.f32.mrf.mxu3  ;;  %v4575_v55 = vpop.f32.mrf.mxu2 }
 0x195   :  { %v1299_v59 = vmax.f32 %v928_v4, 0.0  ;;  %974 = vmatmul.f32.gmra.mxu1 %v140_v3  ;;  %v149_v4 = vld [vmem:[%s6308_s0 + $0x330] sm:$0xff] }
 0x197   :  { %3402 = vmatmul.msk.f32.gmra.mxu3 %vm1477_vm0, %v1299_v59 }
 0x198   :  { %v481_v61 = vpop.f32.mrf.mxu0 }
 0x199   :  { %v482_v10 = vadd.f32 %v4070_v39, %v481_v61 }
 0x19a   :  { %v930_v1 = vpop.f32.mrf.mxu1 }
 0x19b   :  { %v931_v7 = vadd.f32 %v930_v1, %v482_v10  ;;  %528 = vmatmul.f32.gmra.mxu0 %v141_v63  ;;  %v150_v63 = vld [vmem:[%s6308_s0 + $0x338] sm:$0xff]  ;;  %v4591_v14 = vpop.f32.mrf.mxu2 }
 0x19d   :  { %v1300_v11 = vmax.f32 %v931_v7, 0.0  ;;  %977 = vmatmul.f32.gmra.mxu1 %v142_v6  ;;  %v4585_v6 = vpop.f32.mrf.mxu3 }
 0x19f   :  { %3403 = vmatmul.msk.f32.gmra.mxu3 %vm1477_vm0, %v1300_v11  ;;  %v151_v11 = vld [vmem:[%s6308_s0 + $0x340] sm:$0xff] }
 0x1a0   :  { %v484_v15 = vpop.f32.mrf.mxu0 }
 0x1a1   :  { %v485_v18 = vadd.f32 %v4070_v39, %v484_v15 }
 0x1a2   :  { %v933_v21 = vpop.f32.mrf.mxu1 }
 0x1a3   :  { %v934_v27 = vadd.f32 %v933_v21, %v485_v18  ;;  %531 = vmatmul.f32.gmra.mxu0 %v143_v16  ;;  %v152_v18 = vld [vmem:[%s6308_s0 + $0x348] sm:$0xff] }
 0x1a5   :  { %v1301_v28 = vmax.f32 %v934_v27, 0.0  ;;  %980 = vmatmul.f32.gmra.mxu1 %v144_v26  ;;  %v153_v27 = vld [vmem:[%s6308_s0 + $0x350] sm:$0xff] }
 0x1a7   :  { %3404 = vmatmul.msk.f32.gmra.mxu3 %vm1477_vm0, %v1301_v28 }
 0x1a8   :  { %v487_v30 = vpop.f32.mrf.mxu0 }
 0x1a9   :  { %v488_v32 = vadd.f32 %v4070_v39, %v487_v30  ;;  %v4610_v30 = vpop.f32.mrf.mxu2 }
 0x1aa   :  { %v936_v52 = vpop.f32.mrf.mxu1 }
 0x1ab   :  { %v937_v41 = vadd.f32 %v936_v52, %v488_v32  ;;  %534 = vmatmul.f32.gmra.mxu0 %v145_v31 }
 0x1ad   :  { %v1302_v43 = vmax.f32 %v937_v41, 0.0  ;;  %983 = vmatmul.f32.gmra.mxu1 %v146_v37  ;;  %v155_v37 = vld [vmem:[%s6308_s0 + $0x360] sm:$0xff] }
 0x1af   :  { %3405 = vmatmul.msk.f32.gmra.mxu3 %vm1477_vm0, %v1302_v43 }
 0x1b0   :  { %v490_v57 = vpop.f32.mrf.mxu0 }
 0x1b1   :  { %v491_v51 = vadd.f32 %v4070_v39, %v490_v57  ;;  %v156_v57 = vld [vmem:[%s6308_s0 + $0x368] sm:$0xff] }
 0x1b2   :  { %v939_v48 = vpop.f32.mrf.mxu1 }
 0x1b3   :  { %v940_v50 = vadd.f32 %v939_v48, %v491_v51  ;;  %537 = vmatmul.f32.gmra.mxu0 %v147_v44  ;;  %v4620_v51 = vpop.f32.mrf.mxu2 }
 0x1b5   :  { %v1303_v53 = vmax.f32 %v940_v50, 0.0  ;;  %986 = vmatmul.f32.gmra.mxu1 %v148_v62  ;;  %v157_v50 = vld [vmem:[%s6308_s0 + $0x370] sm:$0xff] }
 0x1b7   :  { %3406 = vmatmul.msk.f32.gmra.mxu3 %vm1477_vm0, %v1303_v53 }
 0x1b8   :  { %v493_v3 = vpop.f32.mrf.mxu0 }
 0x1b9   :  { %v494_v59 = vadd.f32 %v4070_v39, %v493_v3 }
 0x1ba   :  { %v942_v61 = vpop.f32.mrf.mxu1 }
 0x1bb   :  { %v943_v10 = vadd.f32 %v942_v61, %v494_v59  ;;  %540 = vmatmul.f32.gmra.mxu0 %v149_v4  ;;  %v158_v4 = vld [vmem:[%s6308_s0 + $0x378] sm:$0xff] }
 0x1bd   :  { %v1304_v1 = vmax.f32 %v943_v10, 0.0  ;;  %989 = vmatmul.f32.gmra.mxu1 %v150_v63  ;;  %v4630_v63 = vpop.f32.mrf.mxu2 }
 0x1bf   :  { %3407 = vmatmul.msk.f32.gmra.mxu3 %vm1477_vm0, %v1304_v1  ;;  %v159_v1 = vld [vmem:[%s6308_s0 + $0x380] sm:$0xff] }
 0x1c0   :  { %v496_v7 = vpop.f32.mrf.mxu0 }
 0x1c1   :  { %v497_v15 = vadd.f32 %v4070_v39, %v496_v7  ;;  %v4604_v39 = vld [vmem:[%s6310_s2] ss:$0 sm:$0xff] }
 0x1c2   :  { %v945_v16 = vpop.f32.mrf.mxu1 }
 0x1c3   :  { %v946_v20 = vadd.f32 %v945_v16, %v497_v15  ;;  %543 = vmatmul.f32.gmra.mxu0 %v151_v11  ;;  %v160_v15 = vld [vmem:[%s6308_s0 + $0x388] sm:$0xff] }
 0x1c5   :  { %v1305_v21 = vmax.f32 %v946_v20, 0.0  ;;  %992 = vmatmul.f32.gmra.mxu1 %v152_v18  ;;  %v1436_v20 = vld [vmem:[%s6311_s3 + $0xb8] sm:$0xff] }
 0x1c6   :  { %1899 = vmatpush.msra.mxu3 %v1436_v20  ;;  %v167_v20 = vld [vmem:[%s6308_s0 + $0x3c0] sm:$0xff] }
 0x1c7   :  { %3408 = vmatmul.msk.f32.vlgmr.msrb.gmra.mxu2 %vm1477_vm0, %v1305_v21 }
 0x1c8   :  { %v499_v26 = vpop.f32.mrf.mxu0 }
 0x1c9   :  { %v500_v25 = vadd.f32 %v4604_v39, %v499_v26  ;;  %v161_v26 = vld [vmem:[%s6308_s0 + $0x390] sm:$0xff] }
 0x1ca   :  { %v948_v28 = vpop.f32.mrf.mxu1 }
 0x1cb   :  { %v949_v31 = vadd.f32 %v948_v28, %v500_v25  ;;  %546 = vmatmul.f32.gmra.mxu0 %v153_v27  ;;  %v4647_v27 = vpop.f32.mrf.mxu2  ;;  %v1435_v28 = vld [vmem:[%s6311_s3 + $0xb0] sm:$0xff] }
 0x1cc   :  { %1900 = vmatpush.msra.mxu3 %v1435_v28 }
 0x1cd   :  { %v1306_v32 = vmax.f32 %v949_v31, 0.0  ;;  %995 = vmatmul.f32.gmra.mxu1 %v154_v29  ;;  %v162_v31 = vld [vmem:[%s6308_s0 + $0x398] sm:$0xff] }
 0x1cf   :  { %3409 = vmatmul.msk.f32.gmra.mxu2 %vm1477_vm0, %v1306_v32 }
 0x1d0   :  { %v502_v52 = vpop.f32.mrf.mxu0 }
 0x1d1   :  { %v503_v41 = vadd.f32 %v4604_v39, %v502_v52  ;;  %v1434_v52 = vld [vmem:[%s6311_s3 + $0xa8] sm:$0xff] }
 0x1d2   :  { %v951_v43 = vpop.f32.mrf.mxu1  ;;  %1901 = vmatpush.msra.mxu3 %v1434_v52  ;;  %v169_v52 = vld [vmem:[%s6308_s0 + $0x3d0] sm:$0xff] }
 0x1d3   :  { %v952_v44 = vadd.f32 %v951_v43, %v503_v41  ;;  %549 = vmatmul.f32.gmra.mxu0 %v155_v37  ;;  %v1433_v41 = vld [vmem:[%s6311_s3 + $0xa0] sm:$0xff] }
 0x1d4   :  { %1902 = vmatpush.msra.mxu3 %v1433_v41 }
 0x1d5   :  { %v1307_v48 = vmax.f32 %v952_v44, 0.0  ;;  %998 = vmatmul.f32.gmra.mxu1 %v156_v57  ;;  %v163_v57 = vld [vmem:[%s6308_s0 + $0x3a0] sm:$0xff] }
 0x1d7   :  { %3410 = vmatmul.msk.f32.gmra.mxu2 %vm1477_vm0, %v1307_v48 }
 0x1d8   :  { %v505_v62 = vpop.f32.mrf.mxu0 }
 0x1d9   :  { %v506_v53 = vadd.f32 %v4604_v39, %v505_v62  ;;  %v164_v62 = vld [vmem:[%s6308_s0 + $0x3a8] sm:$0xff] }
 0x1da   :  { %v954_v3 = vpop.f32.mrf.mxu1 }
 0x1db   :  { %v955_v59 = vadd.f32 %v954_v3, %v506_v53  ;;  %552 = vmatmul.f32.gmra.mxu0 %v157_v50  ;;  %v4670_v50 = vpop.f32.mrf.mxu2 }
 0x1dc   :  { %6322 = vst [vmem:[#allocation6_spill] sm:$0xff] %v4670_v50 }
 0x1dd   :  { %v1308_v61 = vmax.f32 %v955_v59, 0.0  ;;  %1001 = vmatmul.f32.gmra.mxu1 %v158_v4  ;;  %v165_v59 = vld [vmem:[%s6308_s0 + $0x3b0] sm:$0xff] }
 0x1df   :  { %3411 = vmatmul.msk.f32.gmra.mxu2 %vm1477_vm0, %v1308_v61 }
 0x1e0   :  { %v508_v10 = vpop.f32.mrf.mxu0 }
 0x1e1   :  { %v509_v7 = vadd.f32 %v4604_v39, %v508_v10 }
 0x1e2   :  { %v957_v11 = vpop.f32.mrf.mxu1 }
 0x1e3   :  { %v958_v16 = vadd.f32 %v957_v11, %v509_v7  ;;  %555 = vmatmul.f32.gmra.mxu0 %v159_v1  ;;  %v166_v1 = vld [vmem:[%s6308_s0 + $0x3b8] sm:$0xff]  ;;  %v4680_v11 = vpop.f32.mrf.mxu2 }
 0x1e4   :  { %6323 = vst [vmem:[#allocation7_spill] sm:$0xff] %v4680_v11 }
 0x1e5   :  { %v1309_v18 = vmax.f32 %v958_v16, 0.0  ;;  %1004 = vmatmul.f32.gmra.mxu1 %v160_v15  ;;  %v4682_v16 = vpop.f32.mrf.mxu3 }
 0x1e7   :  { %3412 = vmatmul.msk.f32.gmra.mxu2 %vm1477_vm0, %v1309_v18 }
 0x1e8   :  { %v511_v21 = vpop.f32.mrf.mxu0 }
 0x1e9   :  { %v512_v25 = vadd.f32 %v4604_v39, %v511_v21 }
 0x1ea   :  { %v960_v29 = vpop.f32.mrf.mxu1 }
 0x1eb   :  { %v961_v32 = vadd.f32 %v960_v29, %v512_v25  ;;  %558 = vmatmul.f32.gmra.mxu0 %v161_v26  ;;  %v168_v25 = vld [vmem:[%s6308_s0 + $0x3c8] sm:$0xff] }
 0x1ed   :  { %v1310_v37 = vmax.f32 %v961_v32, 0.0  ;;  %1007 = vmatmul.f32.gmra.mxu1 %v162_v31  ;;  %v4692_v31 = vpop.f32.mrf.mxu2 }
 0x1ee   :  { %6324 = vst [vmem:[#allocation8_spill] sm:$0xff] %v4692_v31 }
 0x1ef   :  { %3413 = vmatmul.msk.f32.gmra.mxu2 %vm1477_vm0, %v1310_v37  ;;  %v4698_v37 = vpop.f32.mrf.mxu3 }
 0x1f0   :  { %v514_v43 = vpop.f32.mrf.mxu0 }
 0x1f1   :  { %v515_v44 = vadd.f32 %v4604_v39, %v514_v43 }
 0x1f2   :  { %v963_v48 = vpop.f32.mrf.mxu1 }
 0x1f3   :  { %v964_v53 = vadd.f32 %v963_v48, %v515_v44  ;;  %561 = vmatmul.f32.gmra.mxu0 %v163_v57  ;;  %v170_v57 = vld [vmem:[%s6308_s0 + $0x3d8] sm:$0xff] }
 0x1f5   :  { %v1311_v3 = vmax.f32 %v964_v53, 0.0  ;;  %1010 = vmatmul.f32.gmra.mxu1 %v164_v62  ;;  %v171_v53 = vld [vmem:[%s6308_s0 + $0x3e0] sm:$0xff] }
 0x1f7   :  { %3414 = vmatmul.msk.f32.gmra.mxu2 %vm1477_vm0, %v1311_v3 }
 0x1f8   :  { %v517_v4 = vpop.f32.mrf.mxu0 }
 0x1f9   :  { %v518_v61 = vadd.f32 %v4604_v39, %v517_v4 }
 0x1fa   :  { %v966_v10 = vpop.f32.mrf.mxu1 }
 0x1fb   :  { %v967_v7 = vadd.f32 %v966_v10, %v518_v61  ;;  %564 = vmatmul.f32.gmra.mxu0 %v165_v59  ;;  %v172_v59 = vld [vmem:[%s6308_s0 + $0x3e8] sm:$0xff]  ;;  %v4712_v61 = vpop.f32.mrf.mxu3 }
 0x1fd   :  { %v1312_v15 = vmax.f32 %v967_v7, 0.0  ;;  %1013 = vmatmul.f32.gmra.mxu1 %v166_v1 }
 0x1ff   :  { %3415 = vmatmul.msk.f32.gmra.mxu2 %vm1477_vm0, %v1312_v15  ;;  %v173_v15 = vld [vmem:[%s6308_s0 + $0x3f0] sm:$0xff] }
 0x200   :  { %v520_v18 = vpop.f32.mrf.mxu0 }
 0x201   :  { %v521_v21 = vadd.f32 %v4604_v39, %v520_v18 }
 0x202   :  { %v969_v26 = vpop.f32.mrf.mxu1 }
 0x203   :  { %v970_v28 = vadd.f32 %v969_v26, %v521_v21  ;;  %567 = vmatmul.f32.gmra.mxu0 %v167_v20  ;;  %v174_v21 = vld [vmem:[%s6308_s0 + $0x3f8] sm:$0xff] }
 0x205   :  { %v1313_v29 = vmax.f32 %v970_v28, 0.0  ;;  %1016 = vmatmul.f32.gmra.mxu1 %v168_v25  ;;  %v4722_v25 = vpop.f32.mrf.mxu3 }
 0x207   :  { %3416 = vmatmul.msk.f32.gmra.mxu2 %vm1477_vm0, %v1313_v29 }
 0x208   :  { %v523_v32 = vpop.f32.mrf.mxu0 }
 0x209   :  { %v524_v41 = vadd.f32 %v4604_v39, %v523_v32  ;;  %v175_v32 = vld [vmem:[%s6308_s0 + $0x400] sm:$0xff] }
 0x20a   :  { %v972_v43 = vpop.f32.mrf.mxu1 }
 0x20b   :  { %v973_v44 = vadd.f32 %v972_v43, %v524_v41  ;;  %570 = vmatmul.f32.gmra.mxu0 %v169_v52  ;;  %v176_v43 = vld [vmem:[%s6308_s0 + $0x408] sm:$0xff] }
 0x20d   :  { %v1314_v48 = vmax.f32 %v973_v44, 0.0  ;;  %1019 = vmatmul.f32.gmra.mxu1 %v170_v57 }
 0x20f   :  { %3417 = vmatmul.msk.f32.vlgmr.msra.gmra.mxu3 %vm1477_vm0, %v1314_v48  ;;  %v4732_v48 = vpop.f32.mrf.mxu3 }
 0x210   :  { %v526_v62 = vpop.f32.mrf.mxu0 }
 0x211   :  { %v527_v3 = vadd.f32 %v4604_v39, %v526_v62 }
 0x212   :  { %v975_v4 = vpop.f32.mrf.mxu1 }
 0x213   :  { %v976_v10 = vadd.f32 %v975_v4, %v527_v3  ;;  %573 = vmatmul.f32.gmra.mxu0 %v171_v53  ;;  %v177_v53 = vld [vmem:[%s6308_s0 + $0x410] sm:$0xff] }
 0x215   :  { %v1315_v1 = vmax.f32 %v976_v10, 0.0  ;;  %1022 = vmatmul.f32.gmra.mxu1 %v172_v59  ;;  %v178_v59 = vld [vmem:[%s6308_s0 + $0x418] sm:$0xff] }
 0x217   :  { %3418 = vmatmul.msk.f32.gmra.mxu3 %vm1477_vm0, %v1315_v1 }
 0x218   :  { %v529_v7 = vpop.f32.mrf.mxu0 }
 0x219   :  { %v530_v18 = vadd.f32 %v4604_v39, %v529_v7  ;;  %v1440_v7 = vld [vmem:[%s6311_s3 + $0xd8] sm:$0xff] }
 0x21a   :  { %v978_v20 = vpop.f32.mrf.mxu1  ;;  %1979 = vmatpush.msra.mxu2 %v1440_v7  ;;  %v183_v7 = vld [vmem:[%s6308_s0 + $0x440] sm:$0xff] }
 0x21b   :  { %v979_v26 = vadd.f32 %v978_v20, %v530_v18  ;;  %576 = vmatmul.f32.gmra.mxu0 %v173_v15  ;;  %v179_v18 = vld [vmem:[%s6308_s0 + $0x420] sm:$0xff]  ;;  %v4749_v20 = vpop.f32.mrf.mxu3 }
 0x21d   :  { %v1316_v28 = vmax.f32 %v979_v26, 0.0  ;;  %1025 = vmatmul.f32.gmra.mxu1 %v174_v21  ;;  %v1439_v26 = vld [vmem:[%s6311_s3 + $0xd0] sm:$0xff] }
 0x21e   :  { %1980 = vmatpush.msra.mxu2 %v1439_v26 }
 0x21f   :  { %3419 = vmatmul.msk.f32.gmra.mxu3 %vm1477_vm0, %v1316_v28 }
 0x220   :  { %v532_v29 = vpop.f32.mrf.mxu0 }
 0x221   :  { %v533_v52 = vadd.f32 %v4604_v39, %v532_v29  ;;  %v180_v29 = vld [vmem:[%s6308_s0 + $0x428] sm:$0xff] }
 0x222   :  { %v981_v41 = vpop.f32.mrf.mxu1 }
 0x223   :  { %v982_v57 = vadd.f32 %v981_v41, %v533_v52  ;;  %579 = vmatmul.f32.gmra.mxu0 %v175_v32  ;;  %v1438_v52 = vld [vmem:[%s6311_s3 + $0xc8] sm:$0xff] }
 0x224   :  { %1981 = vmatpush.msra.mxu2 %v1438_v52 }
 0x225   :  { %v1317_v44 = vmax.f32 %v982_v57, 0.0  ;;  %1028 = vmatmul.f32.gmra.mxu1 %v176_v43  ;;  %v1437_v43 = vld [vmem:[%s6311_s3 + $0xc0] sm:$0xff] }
 0x226   :  { %1982 = vmatpush.msra.mxu2 %v1437_v43 }
 0x227   :  { %3420 = vmatmul.msk.f32.gmra.mxu3 %vm1477_vm0, %v1317_v44  ;;  %v181_v44 = vld [vmem:[%s6308_s0 + $0x430] sm:$0xff] }
 0x228   :  { %v535_v62 = vpop.f32.mrf.mxu0 }
 0x229   :  { %v536_v3 = vadd.f32 %v4604_v39, %v535_v62 }
 0x22a   :  { %v984_v4 = vpop.f32.mrf.mxu1 }
 0x22b   :  { %v985_v10 = vadd.f32 %v984_v4, %v536_v3  ;;  %582 = vmatmul.f32.gmra.mxu0 %v177_v53  ;;  %v182_v3 = vld [vmem:[%s6308_s0 + $0x438] sm:$0xff]  ;;  %v4772_v4 = vpop.f32.mrf.mxu3 }
 0x22c   :  { %6325 = vst [vmem:[#allocation9_spill] sm:$0xff] %v4772_v4  ;;  %v214_v4 = vld [vmem:[%s6308_s0 + $0x538] sm:$0xff] }
 0x22d   :  { %v1318_v1 = vmax.f32 %v985_v10, 0.0  ;;  %1031 = vmatmul.f32.gmra.mxu1 %v178_v59 }
 0x22f   :  { %3421 = vmatmul.msk.f32.gmra.mxu3 %vm1477_vm0, %v1318_v1 }
 0x230   :  { %v538_v15 = vpop.f32.mrf.mxu0 }
 0x231   :  { %v539_v21 = vadd.f32 %v4604_v39, %v538_v15 }
 0x232   :  { %v987_v28 = vpop.f32.mrf.mxu1 }
 0x233   :  { %v988_v32 = vadd.f32 %v987_v28, %v539_v21  ;;  %585 = vmatmul.f32.gmra.mxu0 %v179_v18  ;;  %v184_v21 = vld [vmem:[%s6308_s0 + $0x448] sm:$0xff]  ;;  %v4782_v28 = vpop.f32.mrf.mxu3 }
 0x234   :  { %6326 = vst [vmem:[#allocation10_spill] sm:$0xff] %v4782_v28  ;;  %v206_v28 = vld [vmem:[%s6308_s0 + $0x4f8] sm:$0xff] }
 0x235   :  { %v1319_v41 = vmax.f32 %v988_v32, 0.0  ;;  %1034 = vmatmul.f32.gmra.mxu1 %v180_v29  ;;  %v4784_v32 = vpop.f32.mrf.mxu2 }
 0x237   :  { %3422 = vmatmul.msk.f32.gmra.mxu3 %vm1477_vm0, %v1319_v41  ;;  %v185_v41 = vld [vmem:[%s6308_s0 + $0x450] sm:$0xff] }
 0x238   :  { %v541_v57 = vpop.f32.mrf.mxu0 }
 0x239   :  { %v542_v62 = vadd.f32 %v4604_v39, %v541_v57 }
 0x23a   :  { %v990_v53 = vpop.f32.mrf.mxu1 }
 0x23b   :  { %v991_v59 = vadd.f32 %v990_v53, %v542_v62  ;;  %588 = vmatmul.f32.gmra.mxu0 %v181_v44  ;;  %v186_v44 = vld [vmem:[%s6308_s0 + $0x458] sm:$0xff] }
 0x23d   :  { %v1320_v10 = vmax.f32 %v991_v59, 0.0  ;;  %1037 = vmatmul.f32.gmra.mxu1 %v182_v3  ;;  %v4794_v3 = vpop.f32.mrf.mxu3 }
 0x23e   :  { %6327 = vst [vmem:[#allocation11_spill] sm:$0xff] %v4794_v3  ;;  %v202_v3 = vld [vmem:[%s6308_s0 + $0x4d8] sm:$0xff] }
 0x23f   :  { %3423 = vmatmul.msk.f32.gmra.mxu3 %vm1477_vm0, %v1320_v10  ;;  %v187_v10 = vld [vmem:[%s6308_s0 + $0x460] sm:$0xff] }
 0x240   :  { %v544_v1 = vpop.f32.mrf.mxu0 }
 0x241   :  { %v545_v15 = vadd.f32 %v4604_v39, %v544_v1  ;;  %v4800_v1 = vpop.f32.mrf.mxu2 }
 0x242   :  { %v993_v18 = vpop.f32.mrf.mxu1 }
 0x243   :  { %v994_v26 = vadd.f32 %v993_v18, %v545_v15  ;;  %591 = vmatmul.f32.gmra.mxu0 %v183_v7  ;;  %v188_v18 = vld [vmem:[%s6308_s0 + $0x468] sm:$0xff] }
 0x245   :  { %v1321_v29 = vmax.f32 %v994_v26, 0.0  ;;  %1040 = vmatmul.f32.gmra.mxu1 %v184_v21 }
 0x247   :  { %3424 = vmatmul.msk.f32.gmra.mxu3 %vm1477_vm0, %v1321_v29 }
 0x248   :  { %v547_v52 = vpop.f32.mrf.mxu0 }
 0x249   :  { %v548_v43 = vadd.f32 %v4604_v39, %v547_v52  ;;  %v189_v52 = vld [vmem:[%s6308_s0 + $0x470] sm:$0xff] }
 0x24a   :  { %v996_v57 = vpop.f32.mrf.mxu1 }
 0x24b   :  { %v997_v62 = vadd.f32 %v996_v57, %v548_v43  ;;  %594 = vmatmul.f32.gmra.mxu0 %v185_v41  ;;  %v190_v57 = vld [vmem:[%s6308_s0 + $0x478] sm:$0xff] }
 0x24d   :  { %v1322_v53 = vmax.f32 %v997_v62, 0.0  ;;  %1043 = vmatmul.f32.gmra.mxu1 %v186_v44  ;;  %v4814_v44 = vpop.f32.mrf.mxu2 }
 0x24e   :  { %6328 = vst [vmem:[#allocation12_spill] sm:$0xff] %v4814_v44 }
 0x24f   :  { %3425 = vmatmul.msk.f32.gmra.mxu3 %vm1477_vm0, %v1322_v53 }
 0x250   :  { %v550_v59 = vpop.f32.mrf.mxu0 }
 0x251   :  { %v551_v7 = vadd.f32 %v4604_v39, %v550_v59 }
 0x252   :  { %v999_v15 = vpop.f32.mrf.mxu1 }
 0x253   :  { %v1000_v21 = vadd.f32 %v999_v15, %v551_v7  ;;  %597 = vmatmul.f32.gmra.mxu0 %v187_v10  ;;  %v191_v10 = vld [vmem:[%s6308_s0 + $0x480] sm:$0xff] }
 0x255   :  { %v1323_v26 = vmax.f32 %v1000_v21, 0.0  ;;  %1046 = vmatmul.f32.gmra.mxu1 %v188_v18  ;;  %v192_v18 = vld [vmem:[%s6308_s0 + $0x488] sm:$0xff] }
 0x257   :  { %3426 = vmatmul.msk.f32.vlgmr.msra.gmra.mxu2 %vm1477_vm0, %v1323_v26  ;;  %v4824_v26 = vpop.f32.mrf.mxu2 }
 0x258   :  { %v553_v29 = vpop.f32.mrf.mxu0  ;;  %6329 = vst [vmem:[#allocation13_spill] sm:$0xff] %v4824_v26 }
 0x259   :  { %v554_v41 = vadd.f32 %v4604_v39, %v553_v29 }
 0x25a   :  { %v1002_v43 = vpop.f32.mrf.mxu1 }
 0x25b   :  { %v1003_v62 = vadd.f32 %v1002_v43, %v554_v41  ;;  %600 = vmatmul.f32.gmra.mxu0 %v189_v52  ;;  %v193_v41 = vld [vmem:[%s6308_s0 + $0x490] sm:$0xff] }
 0x25d   :  { %v1324_v53 = vmax.f32 %v1003_v62, 0.0  ;;  %1049 = vmatmul.f32.gmra.mxu1 %v190_v57  ;;  %v194_v62 = vld [vmem:[%s6308_s0 + $0x498] sm:$0xff] }
 0x25f   :  { %3427 = vmatmul.msk.f32.gmra.mxu2 %vm1477_vm0, %v1324_v53 }
 0x260   :  { %v556_v59 = vpop.f32.mrf.mxu0 }
 0x261   :  { %v557_v7 = vadd.f32 %v4604_v39, %v556_v59 }
 0x262   :  { %v1005_v15 = vpop.f32.mrf.mxu1 }
 0x263   :  { %v1006_v21 = vadd.f32 %v1005_v15, %v557_v7  ;;  %603 = vmatmul.f32.gmra.mxu0 %v191_v10  ;;  %v4834_v10 = vpop.f32.mrf.mxu2  ;;  %v195_v15 = vld [vmem:[%s6308_s0 + $0x4a0] sm:$0xff] }
 0x264   :  { %6330 = vst [vmem:[#allocation14_spill] sm:$0xff] %v4834_v10  ;;  %v230_v10 = vld [vmem:[%s6308_s0 + $0x5b8] sm:$0xff] }
 0x265   :  { %v1325_v29 = vmax.f32 %v1006_v21, 0.0  ;;  %1052 = vmatmul.f32.gmra.mxu1 %v192_v18 }
 0x267   :  { %3428 = vmatmul.msk.f32.gmra.mxu2 %vm1477_vm0, %v1325_v29  ;;  %v196_v29 = vld [vmem:[%s6308_s0 + $0x4a8] sm:$0xff] }
 0x268   :  { %v559_v52 = vpop.f32.mrf.mxu0 }
 0x269   :  { %v560_v43 = vadd.f32 %v4604_v39, %v559_v52 }
 0x26a   :  { %v1008_v57 = vpop.f32.mrf.mxu1 }
 0x26b   :  { %v1009_v53 = vadd.f32 %v1008_v57, %v560_v43  ;;  %606 = vmatmul.f32.gmra.mxu0 %v193_v41  ;;  %v1444_v43 = vld [vmem:[%s6311_s3 + $0xf8] sm:$0xff] }
 0x26c   :  { %2059 = vmatpush.msrb.mxu3 %v1444_v43 }
 0x26d   :  { %v1326_v59 = vmax.f32 %v1009_v53, 0.0  ;;  %1055 = vmatmul.f32.gmra.mxu1 %v194_v62  ;;  %v197_v62 = vld [vmem:[%s6308_s0 + $0x4b0] sm:$0xff]  ;;  %v4851_v53 = vpop.f32.mrf.mxu2 }
 0x26e   :  { %6331 = vst [vmem:[#allocation15_spill] sm:$0xff] %v4851_v53 }
 0x26f   :  { %3429 = vmatmul.msk.f32.gmra.mxu2 %vm1477_vm0, %v1326_v59 }
 0x270   :  { %v562_v7 = vpop.f32.mrf.mxu0 }
 0x271   :  { %v563_v18 = vadd.f32 %v4604_v39, %v562_v7  ;;  %v1443_v7 = vld [vmem:[%s6311_s3 + $0xf0] sm:$0xff] }
 0x272   :  { %v1011_v21 = vpop.f32.mrf.mxu1  ;;  %2060 = vmatpush.msrb.mxu3 %v1443_v7  ;;  %v200_v7 = vld [vmem:[%s6308_s0 + $0x4c8] sm:$0xff] }
 0x273   :  { %v1012_v52 = vadd.f32 %v1011_v21, %v563_v18  ;;  %609 = vmatmul.f32.gmra.mxu0 %v195_v15  ;;  %v198_v18 = vld [vmem:[%s6308_s0 + $0x4b8] sm:$0xff] }
 0x275   :  { %v1327_v41 = vmax.f32 %v1012_v52, 0.0  ;;  %1058 = vmatmul.f32.gmra.mxu1 %v196_v29  ;;  %v1442_v29 = vld [vmem:[%s6311_s3 + $0xe8] sm:$0xff] }
 0x276   :  { %2061 = vmatpush.msrb.mxu3 %v1442_v29 }
 0x277   :  { %3430 = vmatmul.msk.f32.gmra.mxu2 %vm1477_vm0, %v1327_v41  ;;  %v1441_v41 = vld [vmem:[%s6311_s3 + $0xe0] sm:$0xff] }
 0x278   :  { %v565_v57 = vpop.f32.mrf.mxu0  ;;  %2062 = vmatpush.msrb.mxu3 %v1441_v41 }
 0x279   :  { %v566_v59 = vadd.f32 %v4604_v39, %v565_v57  ;;  %v199_v57 = vld [vmem:[%s6308_s0 + $0x4c0] sm:$0xff] }
 0x27a   :  { %v1014_v15 = vpop.f32.mrf.mxu1 }
 0x27b   :  { %v1015_v21 = vadd.f32 %v1014_v15, %v566_v59  ;;  %612 = vmatmul.f32.gmra.mxu0 %v197_v62  ;;  %v4874_v15 = vpop.f32.mrf.mxu2 }
 0x27c   :  { %6332 = vst [vmem:[#allocation16_spill] sm:$0xff] %v4874_v15  ;;  %v212_v15 = vld [vmem:[%s6308_s0 + $0x528] sm:$0xff] }
 0x27d   :  { %v1328_v52 = vmax.f32 %v1015_v21, 0.0  ;;  %1061 = vmatmul.f32.gmra.mxu1 %v198_v18 }
 0x27f   :  { %3431 = vmatmul.msk.f32.gmra.mxu2 %vm1477_vm0, %v1328_v52  ;;  %v201_v52 = vld [vmem:[%s6308_s0 + $0x4d0] sm:$0xff] }
 0x280   :  { %v568_v43 = vpop.f32.mrf.mxu0 }
 0x281   :  { %v569_v62 = vadd.f32 %v4604_v39, %v568_v43 }
 0x282   :  { %v1017_v59 = vpop.f32.mrf.mxu1 }
 0x283   :  { %v1018_v18 = vadd.f32 %v1017_v59, %v569_v62  ;;  %615 = vmatmul.f32.gmra.mxu0 %v199_v57  ;;  %v4884_v62 = vpop.f32.mrf.mxu2 }
 0x284   :  { %6333 = vst [vmem:[#allocation17_spill] sm:$0xff] %v4884_v62 }
 0x285   :  { %v1329_v21 = vmax.f32 %v1018_v18, 0.0  ;;  %1064 = vmatmul.f32.gmra.mxu1 %v200_v7  ;;  %v203_v7 = vld [vmem:[%s6308_s0 + $0x4e0] sm:$0xff]  ;;  %v4890_v18 = vpop.f32.mrf.mxu3 }
 0x287   :  { %3432 = vmatmul.msk.f32.gmra.mxu2 %vm1477_vm0, %v1329_v21 }
 0x288   :  { %v571_v29 = vpop.f32.mrf.mxu0 }
 0x289   :  { %v572_v41 = vadd.f32 %v4604_v39, %v571_v29 }
 0x28a   :  { %v1020_v43 = vpop.f32.mrf.mxu1 }
 0x28b   :  { %v1021_v31 = vadd.f32 %v1020_v43, %v572_v41  ;;  %618 = vmatmul.f32.gmra.mxu0 %v201_v52  ;;  %v204_v52 = vld [vmem:[%s6308_s0 + $0x4e8] sm:$0xff] }
 0x28d   :  { %v1330_v57 = vmax.f32 %v1021_v31, 0.0  ;;  %1067 = vmatmul.f32.gmra.mxu1 %v202_v3  ;;  %v4896_v3 = vpop.f32.mrf.mxu2 }
 0x28e   :  { %6334 = vst [vmem:[#allocation18_spill] sm:$0xff] %v4896_v3  ;;  %v208_v3 = vld [vmem:[%s6308_s0 + $0x508] sm:$0xff] }
 0x28f   :  { %3433 = vmatmul.msk.f32.gmra.mxu2 %vm1477_vm0, %v1330_v57  ;;  %v205_v57 = vld [vmem:[%s6308_s0 + $0x4f0] sm:$0xff] }
 0x290   :  { %v574_v59 = vpop.f32.mrf.mxu0 }
 0x291   :  { %v575_v21 = vadd.f32 %v4604_v39, %v574_v59 }
 0x292   :  { %v1023_v29 = vpop.f32.mrf.mxu1 }
 0x293   :  { %v1024_v41 = vadd.f32 %v1023_v29, %v575_v21  ;;  %621 = vmatmul.f32.gmra.mxu0 %v203_v7  ;;  %v4906_v21 = vpop.f32.mrf.mxu3 }
 0x295   :  { %v1331_v31 = vmax.f32 %v1024_v41, 0.0  ;;  %1070 = vmatmul.f32.gmra.mxu1 %v204_v52  ;;  %v207_v41 = vld [vmem:[%s6308_s0 + $0x500] sm:$0xff] }
 0x297   :  { %3434 = vmatmul.msk.f32.gmra.mxu2 %vm1477_vm0, %v1331_v31 }
 0x298   :  { %v577_v43 = vpop.f32.mrf.mxu0 }
 0x299   :  { %v578_v59 = vadd.f32 %v4604_v39, %v577_v43 }
 0x29a   :  { %v1026_v62 = vpop.f32.mrf.mxu1 }
 0x29b   :  { %v1027_v7 = vadd.f32 %v1026_v62, %v578_v59  ;;  %624 = vmatmul.f32.gmra.mxu0 %v205_v57  ;;  %v4916_v62 = vpop.f32.mrf.mxu3  ;;  %v209_v59 = vld [vmem:[%s6308_s0 + $0x510] sm:$0xff] }
 0x29c   :  { %6335 = vst [vmem:[#allocation19_spill] sm:$0xff] %v4916_v62 }
 0x29d   :  { %v1332_v29 = vmax.f32 %v1027_v7, 0.0  ;;  %1073 = vmatmul.f32.gmra.mxu1 %v206_v28 }
 0x29f   :  { %3435 = vmatmul.msk.f32.vlgmr.msrb.gmra.mxu3 %vm1477_vm0, %v1332_v29 }
 0x2a0   :  { %v580_v52 = vpop.f32.mrf.mxu0 }
 0x2a1   :  { %v581_v31 = vadd.f32 %v4604_v39, %v580_v52  ;;  %v210_v52 = vld [vmem:[%s6308_s0 + $0x518] sm:$0xff] }
 0x2a2   :  { %v1029_v43 = vpop.f32.mrf.mxu1 }
 0x2a3   :  { %v1030_v11 = vadd.f32 %v1029_v43, %v581_v31  ;;  %627 = vmatmul.f32.gmra.mxu0 %v207_v41  ;;  %v211_v43 = vld [vmem:[%s6308_s0 + $0x520] sm:$0xff] }
 0x2a5   :  { %v1333_v57 = vmax.f32 %v1030_v11, 0.0  ;;  %1076 = vmatmul.f32.gmra.mxu1 %v208_v3  ;;  %v4926_v11 = vpop.f32.mrf.mxu3 }
 0x2a6   :  { %6336 = vst [vmem:[#allocation20_spill] sm:$0xff] %v4926_v11 }
 0x2a7   :  { %3436 = vmatmul.msk.f32.gmra.mxu3 %vm1477_vm0, %v1333_v57 }
 0x2a8   :  { %v583_v28 = vpop.f32.mrf.mxu0 }
 0x2a9   :  { %v584_v7 = vadd.f32 %v4604_v39, %v583_v28 }
 0x2aa   :  { %v1032_v29 = vpop.f32.mrf.mxu1 }
 0x2ab   :  { %v1033_v31 = vadd.f32 %v1032_v29, %v584_v7  ;;  %630 = vmatmul.f32.gmra.mxu0 %v209_v59 }
 0x2ad   :  { %v1334_v41 = vmax.f32 %v1033_v31, 0.0  ;;  %1079 = vmatmul.f32.gmra.mxu1 %v210_v52  ;;  %v213_v52 = vld [vmem:[%s6308_s0 + $0x530] sm:$0xff]  ;;  %v4940_v31 = vpop.f32.mrf.mxu3 }
 0x2ae   :  { %6337 = vst [vmem:[#allocation21_spill] sm:$0xff] %v4940_v31 }
 0x2af   :  { %3437 = vmatmul.msk.f32.gmra.mxu3 %vm1477_vm0, %v1334_v41 }
 0x2b0   :  { %v586_v3 = vpop.f32.mrf.mxu0 }
 0x2b1   :  { %v587_v57 = vadd.f32 %v4604_v39, %v586_v3 }
 0x2b2   :  { %v1035_v28 = vpop.f32.mrf.mxu1 }
 0x2b3   :  { %v1036_v7 = vadd.f32 %v1035_v28, %v587_v57  ;;  %633 = vmatmul.f32.gmra.mxu0 %v211_v43 }
 0x2b5   :  { %v1335_v59 = vmax.f32 %v1036_v7, 0.0  ;;  %1082 = vmatmul.f32.gmra.mxu1 %v212_v15  ;;  %v1448_v15 = vld [vmem:[%s6311_s3 + $0x118] sm:$0xff]  ;;  %v215_v7 = vld [vmem:[%s6308_s0 + $0x540] sm:$0xff] }
 0x2b6   :  { %2139 = vmatpush.msrb.mxu2 %v1448_v15  ;;  %v1445_v15 = vld [vmem:[%s6311_s3 + $0x100] sm:$0xff] }
 0x2b7   :  { %3438 = vmatmul.msk.f32.gmra.mxu3 %vm1477_vm0, %v1335_v59 }
 0x2b8   :  { %v589_v29 = vpop.f32.mrf.mxu0 }
 0x2b9   :  { %v590_v41 = vadd.f32 %v4604_v39, %v589_v29  ;;  %v1447_v29 = vld [vmem:[%s6311_s3 + $0x110] sm:$0xff] }
 0x2ba   :  { %v1038_v3 = vpop.f32.mrf.mxu1  ;;  %2140 = vmatpush.msrb.mxu2 %v1447_v29 }
 0x2bb   :  { %v1039_v57 = vadd.f32 %v1038_v3, %v590_v41  ;;  %636 = vmatmul.f32.gmra.mxu0 %v213_v52  ;;  %v4960_v41 = vpop.f32.mrf.mxu3 }
 0x2bc   :  { %6338 = vst [vmem:[#allocation22_spill] sm:$0xff] %v4960_v41  ;;  %v220_v41 = vld [vmem:[%s6308_s0 + $0x568] sm:$0xff] }
 0x2bd   :  { %v1336_v43 = vmax.f32 %v1039_v57, 0.0  ;;  %1085 = vmatmul.f32.gmra.mxu1 %v214_v4  ;;  %v216_v4 = vld [vmem:[%s6308_s0 + $0x548] sm:$0xff] }
 0x2be   :  { %v1446_v57 = vld [vmem:[%s6311_s3 + $0x108] sm:$0xff] }
 0x2bf   :  { %3439 = vmatmul.msk.f32.gmra.mxu3 %vm1477_vm0, %v1336_v43  ;;  %2141 = vmatpush.msrb.mxu2 %v1446_v57 }
 0x2c0   :  { %v592_v28 = vpop.f32.mrf.mxu0 }
 0x2c1   :  { %v593_v59 = vadd.f32 %v4604_v39, %v592_v28  ;;  %2142 = vmatpush.msrb.mxu2 %v1445_v15  ;;  %v219_v15 = vld [vmem:[%s6308_s0 + $0x560] sm:$0xff] }
 0x2c2   :  { %v1041_v52 = vpop.f32.mrf.mxu1 }
 0x2c3   :  { %v1042_v3 = vadd.f32 %v1041_v52, %v593_v59  ;;  %639 = vmatmul.f32.gmra.mxu0 %v215_v7  ;;  %v217_v59 = vld [vmem:[%s6308_s0 + $0x550] sm:$0xff]  ;;  %v218_v52 = vld [vmem:[%s6308_s0 + $0x558] sm:$0xff] }
 0x2c5   :  { %v1337_v43 = vmax.f32 %v1042_v3, 0.0  ;;  %1088 = vmatmul.f32.gmra.mxu1 %v216_v4  ;;  %v4976_v4 = vpop.f32.mrf.mxu3 }
 0x2c6   :  { %6339 = vst [vmem:[#allocation23_spill] sm:$0xff] %v4976_v4  ;;  %v224_v4 = vld [vmem:[%s6308_s0 + $0x588] sm:$0xff] }
 0x2c7   :  { %3440 = vmatmul.msk.f32.gmra.mxu3 %vm1477_vm0, %v1337_v43 }
 0x2c8   :  { %v595_v28 = vpop.f32.mrf.mxu0 }
 0x2c9   :  { %v596_v7 = vadd.f32 %v4604_v39, %v595_v28 }
 0x2ca   :  { %v1044_v29 = vpop.f32.mrf.mxu1 }
 0x2cb   :  { %v1045_v3 = vadd.f32 %v1044_v29, %v596_v7  ;;  %642 = vmatmul.f32.gmra.mxu0 %v217_v59 }
 0x2cd   :  { %v1338_v57 = vmax.f32 %v1045_v3, 0.0  ;;  %1091 = vmatmul.f32.gmra.mxu1 %v218_v52  ;;  %v4986_v7 = vpop.f32.mrf.mxu3  ;;  %v221_v52 = vld [vmem:[%s6308_s0 + $0x570] sm:$0xff]  ;;  %v4992_v3 = vpop.f32.mrf.mxu2 }
 0x2ce   :  { %6340 = vst [vmem:[#allocation24_spill] sm:$0xff] %v4986_v7 }
 0x2cf   :  { %3441 = vmatmul.msk.f32.gmra.mxu3 %vm1477_vm0, %v1338_v57 }
 0x2d0   :  { %v598_v43 = vpop.f32.mrf.mxu0 }
 0x2d1   :  { %v599_v28 = vadd.f32 %v4604_v39, %v598_v43 }
 0x2d2   :  { %v1047_v50 = vpop.f32.mrf.mxu1 }
 0x2d3   :  { %v1048_v53 = vadd.f32 %v1047_v50, %v599_v28  ;;  %645 = vmatmul.f32.gmra.mxu0 %v219_v15  ;;  %v222_v50 = vld [vmem:[%s6308_s0 + $0x578] sm:$0xff] }
 0x2d5   :  { %v1339_v59 = vmax.f32 %v1048_v53, 0.0  ;;  %1094 = vmatmul.f32.gmra.mxu1 %v220_v41  ;;  %v4998_v41 = vpop.f32.mrf.mxu3 }
 0x2d6   :  { %6341 = vst [vmem:[#allocation25_spill] sm:$0xff] %v4998_v41  ;;  %v226_v41 = vld [vmem:[%s6308_s0 + $0x598] sm:$0xff] }
 0x2d7   :  { %3442 = vmatmul.msk.f32.gmra.mxu3 %vm1477_vm0, %v1339_v59  ;;  %v223_v59 = vld [vmem:[%s6308_s0 + $0x580] sm:$0xff] }
 0x2d8   :  { %v601_v29 = vpop.f32.mrf.mxu0 }
 0x2d9   :  { %v602_v57 = vadd.f32 %v4604_v39, %v601_v29 }
 0x2da   :  { %v1050_v43 = vpop.f32.mrf.mxu1 }
 0x2db   :  { %v1051_v15 = vadd.f32 %v1050_v43, %v602_v57  ;;  %648 = vmatmul.f32.gmra.mxu0 %v221_v52  ;;  %v5008_v57 = vpop.f32.mrf.mxu2 }
 0x2dd   :  { %v1340_v53 = vmax.f32 %v1051_v15, 0.0  ;;  %1097 = vmatmul.f32.gmra.mxu1 %v222_v50  ;;  %v225_v15 = vld [vmem:[%s6308_s0 + $0x590] sm:$0xff] }
 0x2df   :  { %3443 = vmatmul.msk.f32.gmra.mxu3 %vm1477_vm0, %v1340_v53 }
 0x2e0   :  { %v604_v28 = vpop.f32.mrf.mxu0 }
 0x2e1   :  { %v605_v29 = vadd.f32 %v4604_v39, %v604_v28 }
 0x2e2   :  { %v1053_v7 = vpop.f32.mrf.mxu1 }
 0x2e3   :  { %v1054_v52 = vadd.f32 %v1053_v7, %v605_v29  ;;  %651 = vmatmul.f32.gmra.mxu0 %v223_v59  ;;  %v5018_v7 = vpop.f32.mrf.mxu2  ;;  %v227_v29 = vld [vmem:[%s6308_s0 + $0x5a0] sm:$0xff] }
 0x2e4   :  { %6342 = vst [vmem:[#allocation26_spill] sm:$0xff] %v5018_v7 }
 0x2e5   :  { %v1341_v43 = vmax.f32 %v1054_v52, 0.0  ;;  %1100 = vmatmul.f32.gmra.mxu1 %v224_v4 }
 0x2e7   :  { %3444 = vmatmul.msk.f32.vlgmr.msrb.gmra.mxu2 %vm1477_vm0, %v1341_v43 }
 0x2e8   :  { %v607_v50 = vpop.f32.mrf.mxu0 }
 0x2e9   :  { %v608_v53 = vadd.f32 %v4604_v39, %v607_v50  ;;  %v228_v50 = vld [vmem:[%s6308_s0 + $0x5a8] sm:$0xff] }
 0x2ea   :  { %v1056_v28 = vpop.f32.mrf.mxu1 }
 0x2eb   :  { %v1057_v31 = vadd.f32 %v1056_v28, %v608_v53  ;;  %654 = vmatmul.f32.gmra.mxu0 %v225_v15  ;;  %v229_v28 = vld [vmem:[%s6308_s0 + $0x5b0] sm:$0xff] }
 0x2ed   :  { %v1342_v59 = vmax.f32 %v1057_v31, 0.0  ;;  %1103 = vmatmul.f32.gmra.mxu1 %v226_v41  ;;  %v5028_v31 = vpop.f32.mrf.mxu2 }
 0x2ee   :  { %6343 = vst [vmem:[#allocation27_spill] sm:$0xff] %v5028_v31  ;;  %v232_v31 = vld [vmem:[%s6308_s0 + $0x5c8] sm:$0xff] }
 0x2ef   :  { %3445 = vmatmul.msk.f32.gmra.mxu2 %vm1477_vm0, %v1342_v59 }
 0x2f0   :  { %v610_v4 = vpop.f32.mrf.mxu0 }
 0x2f1   :  { %v611_v52 = vadd.f32 %v4604_v39, %v610_v4 }
 0x2f2   :  { %v1059_v43 = vpop.f32.mrf.mxu1 }
 0x2f3   :  { %v1060_v53 = vadd.f32 %v1059_v43, %v611_v52  ;;  %657 = vmatmul.f32.gmra.mxu0 %v227_v29 }
 0x2f5   :  { %v1343_v15 = vmax.f32 %v1060_v53, 0.0  ;;  %1106 = vmatmul.f32.gmra.mxu1 %v228_v50  ;;  %v231_v50 = vld [vmem:[%s6308_s0 + $0x5c0] sm:$0xff]  ;;  %v5042_v53 = vpop.f32.mrf.mxu2 }
 0x2f6   :  { %6344 = vst [vmem:[#allocation28_spill] sm:$0xff] %v5042_v53  ;;  %v238_v53 = vld [vmem:[%s6308_s0 + $0x5f8] sm:$0xff] }
 0x2f7   :  { %3446 = vmatmul.msk.f32.gmra.mxu2 %vm1477_vm0, %v1343_v15 }
 0x2f8   :  { %v613_v41 = vpop.f32.mrf.mxu0 }
 0x2f9   :  { %v614_v59 = vadd.f32 %v4604_v39, %v613_v41 }
 0x2fa   :  { %v1062_v4 = vpop.f32.mrf.mxu1 }
 0x2fb   :  { %v1063_v52 = vadd.f32 %v1062_v4, %v614_v59  ;;  %660 = vmatmul.f32.gmra.mxu0 %v229_v28 }
 0x2fd   :  { %v1344_v29 = vmax.f32 %v1063_v52, 0.0  ;;  %1109 = vmatmul.f32.gmra.mxu1 %v230_v10  ;;  %v1452_v10 = vld [vmem:[%s6311_s3 + $0x138] sm:$0xff]  ;;  %v233_v52 = vld [vmem:[%s6308_s0 + $0x5d0] sm:$0xff] }
 0x2fe   :  { %2219 = vmatpush.msra.mxu3 %v1452_v10  ;;  %v1449_v10 = vld [vmem:[%s6311_s3 + $0x120] sm:$0xff] }
 0x2ff   :  { %3447 = vmatmul.msk.f32.gmra.mxu2 %vm1477_vm0, %v1344_v29 }
 0x300   :  { %v616_v43 = vpop.f32.mrf.mxu0 }
 0x301   :  { %v617_v15 = vadd.f32 %v4604_v39, %v616_v43  ;;  %v1451_v43 = vld [vmem:[%s6311_s3 + $0x130] sm:$0xff] }
 0x302   :  { %v1065_v41 = vpop.f32.mrf.mxu1  ;;  %2220 = vmatpush.msra.mxu3 %v1451_v43 }
 0x303   :  { %v1066_v59 = vadd.f32 %v1065_v41, %v617_v15  ;;  %663 = vmatmul.f32.gmra.mxu0 %v231_v50  ;;  %v5062_v15 = vpop.f32.mrf.mxu2 }
 0x304   :  { %6345 = vst [vmem:[#allocation29_spill] sm:$0xff] %v5062_v15 }
 0x305   :  { %v1345_v28 = vmax.f32 %v1066_v59, 0.0  ;;  %1112 = vmatmul.f32.gmra.mxu1 %v232_v31  ;;  %v234_v31 = vld [vmem:[%s6308_s0 + $0x5d8] sm:$0xff]  ;;  %v1450_v59 = vld [vmem:[%s6311_s3 + $0x128] sm:$0xff] }
 0x306   :  { %2221 = vmatpush.msra.mxu3 %v1450_v59 }
 0x307   :  { %3448 = vmatmul.msk.f32.gmra.mxu2 %vm1477_vm0, %v1345_v28 }
 0x308   :  { %v619_v4 = vpop.f32.mrf.mxu0  ;;  %2222 = vmatpush.msra.mxu3 %v1449_v10  ;;  %v237_v10 = vld [vmem:[%s6308_s0 + $0x5f0] sm:$0xff] }
 0x309   :  { %v620_v29 = vadd.f32 %v4604_v39, %v619_v4 }
 0x30a   :  { %v1068_v50 = vpop.f32.mrf.mxu1 }
 0x30b   :  { %v1069_v41 = vadd.f32 %v1068_v50, %v620_v29  ;;  %666 = vmatmul.f32.gmra.mxu0 %v233_v52  ;;  %v235_v29 = vld [vmem:[%s6308_s0 + $0x5e0] sm:$0xff]  ;;  %v236_v50 = vld [vmem:[%s6308_s0 + $0x5e8] sm:$0xff] }
 0x30d   :  { %v1346_v28 = vmax.f32 %v1069_v41, 0.0  ;;  %1115 = vmatmul.f32.gmra.mxu1 %v234_v31  ;;  %v5078_v31 = vpop.f32.mrf.mxu2 }
 0x30e   :  { %6346 = vst [vmem:[#allocation30_spill] sm:$0xff] %v5078_v31  ;;  %v242_v31 = vld [vmem:[%s6308_s0 + $0x618] sm:$0xff] }
 0x30f   :  { %3449 = vmatmul.msk.f32.gmra.mxu2 %vm1477_vm0, %v1346_v28 }
 0x310   :  { %v622_v4 = vpop.f32.mrf.mxu0 }
 0x311   :  { %v623_v52 = vadd.f32 %v4604_v39, %v622_v4 }
 0x312   :  { %v1071_v43 = vpop.f32.mrf.mxu1 }
 0x313   :  { %v1072_v41 = vadd.f32 %v1071_v43, %v623_v52  ;;  %669 = vmatmul.f32.gmra.mxu0 %v235_v29 }
 0x315   :  { %v1347_v59 = vmax.f32 %v1072_v41, 0.0  ;;  %1118 = vmatmul.f32.gmra.mxu1 %v236_v50  ;;  %v5088_v52 = vpop.f32.mrf.mxu2  ;;  %v239_v50 = vld [vmem:[%s6308_s0 + $0x600] sm:$0xff]  ;;  %v5094_v41 = vpop.f32.mrf.mxu3 }
 0x316   :  { %6347 = vst [vmem:[#allocation31_spill] sm:$0xff] %v5088_v52 }
 0x317   :  { %3450 = vmatmul.msk.f32.gmra.mxu2 %vm1477_vm0, %v1347_v59 }
 0x318   :  { %v625_v28 = vpop.f32.mrf.mxu0 }
 0x319   :  { %v626_v4 = vadd.f32 %v4604_v39, %v625_v28  ;;  %v5099_v39 = vld [vmem:[%s6310_s2] ss:$0 sm:$0xff] }
 0x31a   :  { %v1074_v15 = vpop.f32.mrf.mxu1 }
 0x31b   :  { %v1075_v11 = vadd.f32 %v1074_v15, %v626_v4  ;;  %672 = vmatmul.f32.gmra.mxu0 %v237_v10 }
 0x31d   :  { %v1348_v29 = vmax.f32 %v1075_v11, 0.0  ;;  %1121 = vmatmul.f32.gmra.mxu1 %v238_v53  ;;  %v240_v11 = vld [vmem:[%s6308_s0 + $0x608] sm:$0xff]  ;;  %v5105_v10 = vpop.f32.mrf.mxu2 }
 0x31e   :  { %6348 = vst [vmem:[#allocation32_spill] sm:$0xff] %v5105_v10  ;;  %v244_v10 = vld [vmem:[%s6308_s0 + $0x628] sm:$0xff] }
 0x31f   :  { %3451 = vmatmul.msk.f32.gmra.mxu2 %vm1477_vm0, %v1348_v29  ;;  %v241_v29 = vld [vmem:[%s6308_s0 + $0x610] sm:$0xff] }
 0x320   :  { %v628_v43 = vpop.f32.mrf.mxu0 }
 0x321   :  { %v629_v15 = vadd.f32 %v5099_v39, %v628_v43 }
 0x322   :  { %v1077_v59 = vpop.f32.mrf.mxu1 }
 0x323   :  { %v1078_v53 = vadd.f32 %v1077_v59, %v629_v15  ;;  %675 = vmatmul.f32.gmra.mxu0 %v239_v50  ;;  %v5115_v15 = vpop.f32.mrf.mxu3 }
 0x324   :  { %6349 = vst [vmem:[#allocation33_spill] sm:$0xff] %v5115_v15 }
 0x325   :  { %v1349_v28 = vmax.f32 %v1078_v53, 0.0  ;;  %1124 = vmatmul.f32.gmra.mxu1 %v240_v11  ;;  %v243_v53 = vld [vmem:[%s6308_s0 + $0x620] sm:$0xff] }
 0x327   :  { %3452 = vmatmul.msk.f32.gmra.mxu2 %vm1477_vm0, %v1349_v28 }
 0x328   :  { %v631_v4 = vpop.f32.mrf.mxu0 }
 0x329   :  { %v632_v43 = vadd.f32 %v5099_v39, %v631_v4 }
 0x32a   :  { %v1080_v52 = vpop.f32.mrf.mxu1 }
 0x32b   :  { %v1081_v50 = vadd.f32 %v1080_v52, %v632_v43  ;;  %678 = vmatmul.f32.gmra.mxu0 %v241_v29  ;;  %v5125_v52 = vpop.f32.mrf.mxu3  ;;  %v245_v43 = vld [vmem:[%s6308_s0 + $0x630] sm:$0xff] }
 0x32c   :  { %6350 = vst [vmem:[#allocation34_spill] sm:$0xff] %v5125_v52  ;;  %v248_v52 = vld [vmem:[%s6308_s0 + $0x648] sm:$0xff] }
 0x32d   :  { %v1350_v59 = vmax.f32 %v1081_v50, 0.0  ;;  %1127 = vmatmul.f32.gmra.mxu1 %v242_v31 }
 0x32f   :  { %3453 = vmatmul.msk.f32.vlgmr.msra.gmra.mxu3 %vm1477_vm0, %v1350_v59 }
 0x330   :  { %v634_v11 = vpop.f32.mrf.mxu0 }
 0x331   :  { %v635_v28 = vadd.f32 %v5099_v39, %v634_v11  ;;  %v246_v11 = vld [vmem:[%s6308_s0 + $0x638] sm:$0xff] }
 0x332   :  { %v1083_v4 = vpop.f32.mrf.mxu1 }
 0x333   :  { %v1084_v26 = vadd.f32 %v1083_v4, %v635_v28  ;;  %681 = vmatmul.f32.gmra.mxu0 %v243_v53  ;;  %v247_v4 = vld [vmem:[%s6308_s0 + $0x640] sm:$0xff] }
 0x335   :  { %v1351_v29 = vmax.f32 %v1084_v26, 0.0  ;;  %1130 = vmatmul.f32.gmra.mxu1 %v244_v10  ;;  %v5135_v26 = vpop.f32.mrf.mxu3 }
 0x336   :  { %6351 = vst [vmem:[#allocation35_spill] sm:$0xff] %v5135_v26  ;;  %v250_v26 = vld [vmem:[%s6308_s0 + $0x658] sm:$0xff] }
 0x337   :  { %3454 = vmatmul.msk.f32.gmra.mxu3 %vm1477_vm0, %v1351_v29 }
 0x338   :  { %v637_v31 = vpop.f32.mrf.mxu0 }
 0x339   :  { %v638_v50 = vadd.f32 %v5099_v39, %v637_v31 }
 0x33a   :  { %v1086_v59 = vpop.f32.mrf.mxu1 }
 0x33b   :  { %v1087_v28 = vadd.f32 %v1086_v59, %v638_v50  ;;  %684 = vmatmul.f32.gmra.mxu0 %v245_v43 }
 0x33d   :  { %v1352_v53 = vmax.f32 %v1087_v28, 0.0  ;;  %1133 = vmatmul.f32.gmra.mxu1 %v246_v11  ;;  %v249_v11 = vld [vmem:[%s6308_s0 + $0x650] sm:$0xff]  ;;  %v5149_v28 = vpop.f32.mrf.mxu3 }
 0x33e   :  { %6352 = vst [vmem:[#allocation36_spill] sm:$0xff] %v5149_v28  ;;  %v256_v28 = vld [vmem:[%s6308_s0 + $0x688] sm:$0xff] }
 0x33f   :  { %3455 = vmatmul.msk.f32.gmra.mxu3 %vm1477_vm0, %v1352_v53 }
 0x340   :  { %v640_v10 = vpop.f32.mrf.mxu0 }
 0x341   :  { %v641_v29 = vadd.f32 %v5099_v39, %v640_v10 }
 0x342   :  { %v1089_v31 = vpop.f32.mrf.mxu1 }
 0x343   :  { %v1090_v50 = vadd.f32 %v1089_v31, %v641_v29  ;;  %687 = vmatmul.f32.gmra.mxu0 %v247_v4 }
 0x345   :  { %v1353_v43 = vmax.f32 %v1090_v50, 0.0  ;;  %1136 = vmatmul.f32.gmra.mxu1 %v248_v52  ;;  %v1456_v52 = vld [vmem:[%s6311_s3 + $0x158] sm:$0xff]  ;;  %v251_v50 = vld [vmem:[%s6308_s0 + $0x660] sm:$0xff] }
 0x346   :  { %2299 = vmatpush.msra.mxu2 %v1456_v52  ;;  %v1453_v52 = vld [vmem:[%s6311_s3 + $0x140] sm:$0xff] }
 0x347   :  { %3456 = vmatmul.msk.f32.gmra.mxu3 %vm1477_vm0, %v1353_v43 }
 0x348   :  { %v643_v59 = vpop.f32.mrf.mxu0 }
 0x349   :  { %v644_v53 = vadd.f32 %v5099_v39, %v643_v59  ;;  %v1455_v59 = vld [vmem:[%s6311_s3 + $0x150] sm:$0xff] }
 0x34a   :  { %v1092_v10 = vpop.f32.mrf.mxu1  ;;  %2300 = vmatpush.msra.mxu2 %v1455_v59 }
 0x34b   :  { %v1093_v29 = vadd.f32 %v1092_v10, %v644_v53  ;;  %690 = vmatmul.f32.gmra.mxu0 %v249_v11  ;;  %v5169_v53 = vpop.f32.mrf.mxu3 }
 0x34c   :  { %6353 = vst [vmem:[#allocation37_spill] sm:$0xff] %v5169_v53 }
 0x34d   :  { %v1354_v4 = vmax.f32 %v1093_v29, 0.0  ;;  %1139 = vmatmul.f32.gmra.mxu1 %v250_v26  ;;  %v252_v26 = vld [vmem:[%s6308_s0 + $0x668] sm:$0xff] }
 0x34e   :  { %v1454_v29 = vld [vmem:[%s6311_s3 + $0x148] sm:$0xff] }
 0x34f   :  { %3457 = vmatmul.msk.f32.gmra.mxu3 %vm1477_vm0, %v1354_v4  ;;  %2301 = vmatpush.msra.mxu2 %v1454_v29 }
 0x350   :  { %v646_v31 = vpop.f32.mrf.mxu0 }
 0x351   :  { %v647_v43 = vadd.f32 %v5099_v39, %v646_v31  ;;  %2302 = vmatpush.msra.mxu2 %v1453_v52  ;;  %v255_v52 = vld [vmem:[%s6308_s0 + $0x680] sm:$0xff] }
 0x352   :  { %v1095_v11 = vpop.f32.mrf.mxu1 }
 0x353   :  { %v1096_v10 = vadd.f32 %v1095_v11, %v647_v43  ;;  %693 = vmatmul.f32.gmra.mxu0 %v251_v50  ;;  %v253_v43 = vld [vmem:[%s6308_s0 + $0x670] sm:$0xff]  ;;  %v254_v11 = vld [vmem:[%s6308_s0 + $0x678] sm:$0xff] }
 0x355   :  { %v1355_v4 = vmax.f32 %v1096_v10, 0.0  ;;  %1142 = vmatmul.f32.gmra.mxu1 %v252_v26  ;;  %v5185_v26 = vpop.f32.mrf.mxu3 }
 0x356   :  { %6354 = vst [vmem:[#allocation38_spill] sm:$0xff] %v5185_v26  ;;  %v260_v26 = vld [vmem:[%s6308_s0 + $0x6a8] sm:$0xff] }
 0x357   :  { %3458 = vmatmul.msk.f32.gmra.mxu3 %vm1477_vm0, %v1355_v4 }
 0x358   :  { %v649_v31 = vpop.f32.mrf.mxu0 }
 0x359   :  { %v650_v50 = vadd.f32 %v5099_v39, %v649_v31 }
 0x35a   :  { %v1098_v59 = vpop.f32.mrf.mxu1 }
 0x35b   :  { %v1099_v10 = vadd.f32 %v1098_v59, %v650_v50  ;;  %696 = vmatmul.f32.gmra.mxu0 %v253_v43 }
 0x35d   :  { %v1356_v29 = vmax.f32 %v1099_v10, 0.0  ;;  %1145 = vmatmul.f32.gmra.mxu1 %v254_v11  ;;  %v5195_v50 = vpop.f32.mrf.mxu3  ;;  %v257_v11 = vld [vmem:[%s6308_s0 + $0x690] sm:$0xff]  ;;  %v5201_v10 = vpop.f32.mrf.mxu2 }
 0x35e   :  { %6355 = vst [vmem:[#allocation39_spill] sm:$0xff] %v5195_v50 }
 0x35f   :  { %3459 = vmatmul.msk.f32.gmra.mxu3 %vm1477_vm0, %v1356_v29 }
 0x360   :  { %v652_v4 = vpop.f32.mrf.mxu0 }
 0x361   :  { %v653_v31 = vadd.f32 %v5099_v39, %v652_v4 }
 0x362   :  { %v1101_v53 = vpop.f32.mrf.mxu1 }
 0x363   :  { %v1102_v7 = vadd.f32 %v1101_v53, %v653_v31  ;;  %699 = vmatmul.f32.gmra.mxu0 %v255_v52  ;;  %v258_v53 = vld [vmem:[%s6308_s0 + $0x698] sm:$0xff] }
 0x365   :  { %v1357_v43 = vmax.f32 %v1102_v7, 0.0  ;;  %1148 = vmatmul.f32.gmra.mxu1 %v256_v28  ;;  %v5207_v28 = vpop.f32.mrf.mxu3 }
 0x366   :  { %6356 = vst [vmem:[#allocation40_spill] sm:$0xff] %v5207_v28  ;;  %v262_v28 = vld [vmem:[%s6308_s0 + $0x6b8] sm:$0xff] }
 0x367   :  { %3460 = vmatmul.msk.f32.gmra.mxu3 %vm1477_vm0, %v1357_v43  ;;  %v259_v43 = vld [vmem:[%s6308_s0 + $0x6a0] sm:$0xff] }
 0x368   :  { %v655_v59 = vpop.f32.mrf.mxu0 }
 0x369   :  { %v656_v29 = vadd.f32 %v5099_v39, %v655_v59 }
 0x36a   :  { %v1104_v4 = vpop.f32.mrf.mxu1 }
 0x36b   :  { %v1105_v52 = vadd.f32 %v1104_v4, %v656_v29  ;;  %702 = vmatmul.f32.gmra.mxu0 %v257_v11  ;;  %v5217_v29 = vpop.f32.mrf.mxu2 }
 0x36c   :  { %6357 = vst [vmem:[#allocation41_spill] sm:$0xff] %v5217_v29 }
 0x36d   :  { %v1358_v7 = vmax.f32 %v1105_v52, 0.0  ;;  %1151 = vmatmul.f32.gmra.mxu1 %v258_v53  ;;  %v261_v52 = vld [vmem:[%s6308_s0 + $0x6b0] sm:$0xff] }
 0x36f   :  { %3461 = vmatmul.msk.f32.gmra.mxu3 %vm1477_vm0, %v1358_v7 }
 0x370   :  { %v658_v31 = vpop.f32.mrf.mxu0 }
 0x371   :  { %v659_v59 = vadd.f32 %v5099_v39, %v658_v31 }
 0x372   :  { %v1107_v50 = vpop.f32.mrf.mxu1 }
 0x373   :  { %v1108_v11 = vadd.f32 %v1107_v50, %v659_v59  ;;  %705 = vmatmul.f32.gmra.mxu0 %v259_v43  ;;  %v5227_v50 = vpop.f32.mrf.mxu2  ;;  %v263_v59 = vld [vmem:[%s6308_s0 + $0x6c0] sm:$0xff] }
 0x374   :  { %6358 = vst [vmem:[#allocation42_spill] sm:$0xff] %v5227_v50  ;;  %v266_v50 = vld [vmem:[%s6308_s0 + $0x6d8] sm:$0xff] }
 0x375   :  { %v1359_v4 = vmax.f32 %v1108_v11, 0.0  ;;  %1154 = vmatmul.f32.gmra.mxu1 %v260_v26 }
 0x377   :  { %3462 = vmatmul.msk.f32.vlgmr.msra.gmra.mxu2 %vm1477_vm0, %v1359_v4 }
 0x378   :  { %v661_v53 = vpop.f32.mrf.mxu0 }
 0x379   :  { %v662_v7 = vadd.f32 %v5099_v39, %v661_v53  ;;  %v264_v53 = vld [vmem:[%s6308_s0 + $0x6c8] sm:$0xff] }
 0x37a   :  { %v1110_v31 = vpop.f32.mrf.mxu1 }
 0x37b   :  { %v1111_v62 = vadd.f32 %v1110_v31, %v662_v7  ;;  %708 = vmatmul.f32.gmra.mxu0 %v261_v52  ;;  %v265_v31 = vld [vmem:[%s6308_s0 + $0x6d0] sm:$0xff] }
 0x37d   :  { %v1360_v43 = vmax.f32 %v1111_v62, 0.0  ;;  %1157 = vmatmul.f32.gmra.mxu1 %v262_v28  ;;  %v5237_v62 = vpop.f32.mrf.mxu2 }
 0x37e   :  { %6359 = vst [vmem:[#allocation43_spill] sm:$0xff] %v5237_v62 }
 0x37f   :  { %3463 = vmatmul.msk.f32.gmra.mxu2 %vm1477_vm0, %v1360_v43 }
 0x380   :  { %v664_v26 = vpop.f32.mrf.mxu0 }
 0x381   :  { %v665_v11 = vadd.f32 %v5099_v39, %v664_v26 }
 0x382   :  { %v1113_v4 = vpop.f32.mrf.mxu1 }
 0x383   :  { %v1114_v7 = vadd.f32 %v1113_v4, %v665_v11  ;;  %711 = vmatmul.f32.gmra.mxu0 %v263_v59  ;;  %v5248_v4 = vpop.f32.mrf.mxu3 }
 0x385   :  { %v1361_v52 = vmax.f32 %v1114_v7, 0.0  ;;  %1160 = vmatmul.f32.gmra.mxu1 %v264_v53  ;;  %v267_v7 = vld [vmem:[%s6308_s0 + $0x6e0] sm:$0xff] }
 0x387   :  { %3464 = vmatmul.msk.f32.gmra.mxu2 %vm1477_vm0, %v1361_v52  ;;  %v5253_v52 = vpop.f32.mrf.mxu2 }
 0x388   :  { %v667_v28 = vpop.f32.mrf.mxu0  ;;  %6360 = vst [vmem:[#allocation44_spill] sm:$0xff] %v5253_v52  ;;  %v1457_v52 = vld [vmem:[%s6311_s3 + $0x160] sm:$0xff] }
 0x389   :  { %v668_v43 = vadd.f32 %v5099_v39, %v667_v28 }
 0x38a   :  { %v1116_v26 = vpop.f32.mrf.mxu1 }
 0x38b   :  { %v1117_v11 = vadd.f32 %v1116_v26, %v668_v43  ;;  %714 = vmatmul.f32.gmra.mxu0 %v265_v31  ;;  %v268_v31 = vld [vmem:[%s6308_s0 + $0x6e8] sm:$0xff]  ;;  %v1460_v26 = vld [vmem:[%s6311_s3 + $0x178] sm:$0xff] }
 0x38c   :  { %2379 = vmatpush.msrb.mxu3 %v1460_v26  ;;  %v1458_v26 = vld [vmem:[%s6311_s3 + $0x168] sm:$0xff] }
 0x38d   :  { %v1362_v59 = vmax.f32 %v1117_v11, 0.0  ;;  %1163 = vmatmul.f32.gmra.mxu1 %v266_v50 }
 0x38f   :  { %3465 = vmatmul.msk.f32.gmra.mxu2 %vm1477_vm0, %v1362_v59  ;;  %v269_v59 = vld [vmem:[%s6308_s0 + $0x6f0] sm:$0xff] }
 0x390   :  { %v670_v53 = vpop.f32.mrf.mxu0 }
 0x391   :  { %v671_v28 = vadd.f32 %v5099_v39, %v670_v53 }
 0x392   :  { %v1119_v62 = vpop.f32.mrf.mxu1 }
 0x393   :  { %v1120_v43 = vadd.f32 %v1119_v62, %v671_v28  ;;  %717 = vmatmul.f32.gmra.mxu0 %v267_v7  ;;  %v1459_v62 = vld [vmem:[%s6311_s3 + $0x170] sm:$0xff]  ;;  %v5270_v7 = vpop.f32.mrf.mxu3 }
 0x394   :  { %6361 = vst [vmem:[#allocation45_spill] sm:$0xff] %v5270_v7  ;;  %2380 = vmatpush.msrb.mxu3 %v1459_v62 }
 0x395   :  { %v1363_v50 = vmax.f32 %v1120_v43, 0.0  ;;  %1166 = vmatmul.f32.gmra.mxu1 %v268_v31  ;;  %v270_v31 = vld [vmem:[%s6308_s0 + $0x6f8] sm:$0xff]  ;;  %v5275_v43 = vpop.f32.mrf.mxu2 }
 0x396   :  { %6362 = vst [vmem:[#allocation46_spill] sm:$0xff] %v5275_v43  ;;  %2381 = vmatpush.msrb.mxu3 %v1458_v26 }
 0x397   :  { %3466 = vmatmul.msk.f32.gmra.mxu2 %vm1477_vm0, %v1363_v50 }
 0x398   :  { %v673_v11 = vpop.f32.mrf.mxu0  ;;  %2382 = vmatpush.msrb.mxu3 %v1457_v52 }
 0x399   :  { %v674_v53 = vadd.f32 %v5099_v39, %v673_v11 }
 0x39a   :  { %v1122_v28 = vpop.f32.mrf.mxu1 }
 0x39b   :  { %v1123_v50 = vadd.f32 %v1122_v28, %v674_v53  ;;  %720 = vmatmul.f32.gmra.mxu0 %v269_v59  ;;  %v271_v53 = vld [vmem:[%s6308_s0 + $0x700] sm:$0xff]  ;;  %v272_v28 = vld [vmem:[%s6308_s0 + $0x708] sm:$0xff]  ;;  %v5293_v26 = vpop.f32.mrf.mxu3 }
 0x39c   :  { %6364 = vst [vmem:[#allocation48_spill] sm:$0xff] %v5293_v26 }
 0x39d   :  { %v1364_v11 = vmax.f32 %v1123_v50, 0.0  ;;  %1169 = vmatmul.f32.gmra.mxu1 %v270_v31  ;;  %v5291_v31 = vpop.f32.mrf.mxu2 }
 0x39e   :  { %6363 = vst [vmem:[#allocation47_spill] sm:$0xff] %v5291_v31  ;;  %v274_v31 = vld [vmem:[%s6308_s0 + $0x718] sm:$0xff] }
 0x39f   :  { %3467 = vmatmul.msk.f32.gmra.mxu2 %vm1477_vm0, %v1364_v11 }
 0x3a0   :  { %v676_v7 = vpop.f32.mrf.mxu0 }
 0x3a1   :  { %v677_v59 = vadd.f32 %v5099_v39, %v676_v7  ;;  %v273_v7 = vld [vmem:[%s6308_s0 + $0x710] sm:$0xff] }
 0x3a2   :  { %v1125_v62 = vpop.f32.mrf.mxu1 }
 0x3a3   :  { %v1126_v50 = vadd.f32 %v1125_v62, %v677_v59  ;;  %723 = vmatmul.f32.gmra.mxu0 %v271_v53 }
 0x3a5   :  { %v1365_v52 = vmax.f32 %v1126_v50, 0.0  ;;  %1172 = vmatmul.f32.gmra.mxu1 %v272_v28  ;;  %v5303_v53 = vpop.f32.mrf.mxu2  ;;  %v5305_v28 = vpop.f32.mrf.mxu3 }
 0x3a6   :  { %6365 = vst [vmem:[#allocation49_spill] sm:$0xff] %v5303_v53 }
 0x3a7   :  { %3468 = vmatmul.msk.f32.gmra.mxu2 %vm1477_vm0, %v1365_v52  ;;  %6366 = vst [vmem:[#allocation50_spill] sm:$0xff] %v5305_v28  ;;  %v275_v52 = vld [vmem:[%s6308_s0 + $0x720] sm:$0xff] }
 0x3a8   :  { %v679_v11 = vpop.f32.mrf.mxu0 }
 0x3a9   :  { %v680_v43 = vadd.f32 %v5099_v39, %v679_v11 }
 0x3aa   :  { %v1128_v44 = vpop.f32.mrf.mxu1 }
 0x3ab   :  { %v1129_v59 = vadd.f32 %v1128_v44, %v680_v43  ;;  %726 = vmatmul.f32.gmra.mxu0 %v273_v7  ;;  %v276_v44 = vld [vmem:[%s6308_s0 + $0x728] sm:$0xff] }
 0x3ad   :  { %v1366_v62 = vmax.f32 %v1129_v59, 0.0  ;;  %1175 = vmatmul.f32.gmra.mxu1 %v274_v31  ;;  %v5315_v31 = vpop.f32.mrf.mxu2  ;;  %v5318_v59 = vpop.f32.mrf.mxu3 }
 0x3ae   :  { %6367 = vst [vmem:[#allocation51_spill] sm:$0xff] %v5315_v31 }
 0x3af   :  { %3469 = vmatmul.msk.f32.gmra.mxu2 %vm1477_vm0, %v1366_v62  ;;  %6368 = vst [vmem:[#allocation52_spill] sm:$0xff] %v5318_v59  ;;  %v280_v59 = vld [vmem:[%s6308_s0 + $0x748] sm:$0xff] }
 0x3b0   :  { %v682_v50 = vpop.f32.mrf.mxu0 }
 0x3b1   :  { %v683_v11 = vadd.f32 %v5099_v39, %v682_v50  ;;  %v277_v50 = vld [vmem:[%s6308_s0 + $0x730] sm:$0xff] }
 0x3b2   :  { %v1131_v26 = vpop.f32.mrf.mxu1 }
 0x3b3   :  { %v1132_v43 = vadd.f32 %v1131_v26, %v683_v11  ;;  %729 = vmatmul.f32.gmra.mxu0 %v275_v52  ;;  %v278_v26 = vld [vmem:[%s6308_s0 + $0x738] sm:$0xff] }
 0x3b5   :  { %v1367_v7 = vmax.f32 %v1132_v43, 0.0  ;;  %1178 = vmatmul.f32.gmra.mxu1 %v276_v44  ;;  %v279_v43 = vld [vmem:[%s6308_s0 + $0x740] sm:$0xff]  ;;  %v5332_v31 = vpop.f32.mrf.mxu3 }
 0x3b6   :  { %6369 = vst [vmem:[#allocation53_spill] sm:$0xff] %v5332_v31 }
 0x3b7   :  { %3470 = vmatmul.msk.f32.gmra.mxu2 %vm1477_vm0, %v1367_v7 }
 0x3b8   :  { %v685_v62 = vpop.f32.mrf.mxu0 }
 0x3b9   :  { %v686_v53 = vadd.f32 %v5099_v39, %v685_v62 }
 0x3ba   :  { %v1134_v28 = vpop.f32.mrf.mxu1 }
 0x3bb   :  { %v1135_v52 = vadd.f32 %v1134_v28, %v686_v53  ;;  %732 = vmatmul.f32.gmra.mxu0 %v277_v50  ;;  %v5337_v28 = vpop.f32.mrf.mxu2 }
 0x3bc   :  { %6370 = vst [vmem:[#allocation54_spill] sm:$0xff] %v5337_v28 }
 0x3bd   :  { %v1368_v11 = vmax.f32 %v1135_v52, 0.0  ;;  %1181 = vmatmul.f32.gmra.mxu1 %v278_v26  ;;  %v281_v52 = vld [vmem:[%s6308_s0 + $0x750] sm:$0xff] }
 0x3bf   :  { %3471 = vmatmul.msk.f32.vlgmr.msrb.gmra.mxu3 %vm1477_vm0, %v1368_v11 }
 0x3c0   :  { %v688_v44 = vpop.f32.mrf.mxu0 }
 0x3c1   :  { %v689_v7 = vadd.f32 %v5099_v39, %v688_v44  ;;  %v5344_v44 = vpop.f32.mrf.mxu3 }
 0x3c2   :  { %v1137_v62 = vpop.f32.mrf.mxu1  ;;  %6371 = vst [vmem:[#allocation55_spill] sm:$0xff] %v5344_v44 }
 0x3c3   :  { %v1138_v53 = vadd.f32 %v1137_v62, %v689_v7  ;;  %735 = vmatmul.f32.gmra.mxu0 %v279_v43  ;;  %v282_v43 = vld [vmem:[%s6308_s0 + $0x758] sm:$0xff] }
 0x3c5   :  { %v1369_v50 = vmax.f32 %v1138_v53, 0.0  ;;  %1184 = vmatmul.f32.gmra.mxu1 %v280_v59  ;;  %v5349_v59 = vpop.f32.mrf.mxu2 }
 0x3c6   :  { %6372 = vst [vmem:[#allocation56_spill] sm:$0xff] %v5349_v59 }
 0x3c7   :  { %3472 = vmatmul.msk.f32.gmra.mxu3 %vm1477_vm0, %v1369_v50 }
 0x3c8   :  { %v691_v26 = vpop.f32.mrf.mxu0 }
 0x3c9   :  { %v692_v11 = vadd.f32 %v5099_v39, %v691_v26  ;;  %v5353_v15 = vpop.f32.mrf.mxu3 }
 0x3ca   :  { %v1140_v31 = vpop.f32.mrf.mxu1  ;;  %6373 = vst [vmem:[#allocation57_spill] sm:$0xff] %v5353_v15 }
 0x3cb   :  { %v1141_v7 = vadd.f32 %v1140_v31, %v692_v11  ;;  %738 = vmatmul.f32.gmra.mxu0 %v281_v52 }
 0x3cd   :  { %v1370_v62 = vmax.f32 %v1141_v7, 0.0  ;;  %1187 = vmatmul.f32.gmra.mxu1 %v282_v43  ;;  %v5356_v28 = vpop.f32.mrf.mxu2 }
 0x3ce   :  { %6374 = vst [vmem:[#allocation58_spill] sm:$0xff] %v5356_v28 }
 0x3cf   :  { %3473 = vmatmul.msk.f32.gmra.mxu3 %vm1477_vm0, %v1370_v62 }
 0x3d0   :  { %v694_v53 = vpop.f32.mrf.mxu0 }
 0x3d1   :  { %v695_v50 = vadd.f32 %v5099_v39, %v694_v53  ;;  %v5359_v59 = vpop.f32.mrf.mxu3  ;;  %v1463_v53 = vld [vmem:[%s6311_s3 + $0x190] sm:$0xff] }
 0x3d2   :  { %v1143_v29 = vpop.f32.mrf.mxu1  ;;  %6375 = vst [vmem:[#allocation59_spill] sm:$0xff] %v5359_v59 }
 0x3d3   :  { %v1144_v26 = vadd.f32 %v1143_v29, %v695_v50  ;;  %v1464_v29 = vld [vmem:[%s6311_s3 + $0x198] sm:$0xff] }
 0x3d4   :  { %2459 = vmatpush.msrb.mxu2 %v1464_v29 }
 0x3d5   :  { %v1371_v44 = vmax.f32 %v1144_v26, 0.0  ;;  %v5369_v50 = vpop.f32.mrf.mxu2 }
 0x3d6   :  { %6376 = vst [vmem:[#allocation60_spill] sm:$0xff] %v5369_v50  ;;  %2460 = vmatpush.msrb.mxu2 %v1463_v53 }
 0x3d7   :  { %3474 = vmatmul.msk.f32.gmra.mxu3 %vm1477_vm0, %v1371_v44 }
 0x3d8   :  { %v697_v31 = vpop.f32.mrf.mxu0 }
 0x3d9   :  { %v698_v52 = vadd.f32 %v5099_v39, %v697_v31  ;;  %v5381_v29 = vpop.f32.mrf.mxu3 }
 0x3da   :  { %v1146_v11 = vpop.f32.mrf.mxu1  ;;  %6377 = vst [vmem:[#allocation61_spill] sm:$0xff] %v5381_v29 }
 0x3db   :  { %v1147_v43 = vadd.f32 %v1146_v11, %v698_v52  ;;  %v1462_v52 = vld [vmem:[%s6311_s3 + $0x188] sm:$0xff] }
 0x3dc   :  { %2461 = vmatpush.msrb.mxu2 %v1462_v52 }
 0x3dd   :  { %v1372_v7 = vmax.f32 %v1147_v43, 0.0  ;;  %v1461_v43 = vld [vmem:[%s6311_s3 + $0x180] sm:$0xff] }
 0x3de   :  { %2462 = vmatpush.msrb.mxu2 %v1461_v43 }
 0x3df   :  { %3475 = vmatmul.msk.f32.gmra.mxu3 %vm1477_vm0, %v1372_v7  ;;  %v1468_v7 = vld [vmem:[%s6311_s3 + $0x1b8] sm:$0xff] }
 0x3e0   :  { %v700_v62 = vpop.f32.mrf.mxu0  ;;  %2539 = vmatpush.msra.mxu3 %v1468_v7 }
 0x3e1   :  { %v701_v44 = vadd.f32 %v5099_v39, %v700_v62  ;;  %v5388_v59 = vpop.f32.mrf.mxu3 }
 0x3e2   :  { %v1149_v26 = vpop.f32.mrf.mxu1  ;;  %6379 = vst [vmem:[#allocation63_spill] sm:$0xff] %v5388_v59 }
 0x3e3   :  { %v1150_v31 = vadd.f32 %v1149_v26, %v701_v44 }
 0x3e5   :  { %v1373_v11 = vmax.f32 %v1150_v31, 0.0  ;;  %v5384_v31 = vpop.f32.mrf.mxu2 }
 0x3e6   :  { %6378 = vst [vmem:[#allocation62_spill] sm:$0xff] %v5384_v31 }
 0x3e7   :  { %3476 = vmatmul.msk.f32.gmra.mxu3 %vm1477_vm0, %v1373_v11 }
 0x3e8   :  { %v703_v62 = vpop.f32.mrf.mxu0 }
 0x3e9   :  { %v704_v44 = vadd.f32 %v5099_v39, %v703_v62 }
 0x3ea   :  { %v1152_v53 = vpop.f32.mrf.mxu1 }
 0x3eb   :  { %v1153_v26 = vadd.f32 %v1152_v53, %v704_v44  ;;  %v1467_v44 = vld [vmem:[%s6311_s3 + $0x1b0] sm:$0xff] }
 0x3ec   :  { %2540 = vmatpush.msra.mxu3 %v1467_v44 }
 0x3ed   :  { %v1374_v52 = vmax.f32 %v1153_v26, 0.0  ;;  %v5390_v29 = vpop.f32.mrf.mxu2 }
 0x3ee   :  { %6380 = vst [vmem:[#allocation64_spill] sm:$0xff] %v5390_v29 }
 0x3ef   :  { %3477 = vmatmul.msk.f32.gmra.mxu3 %vm1477_vm0, %v1374_v52  ;;  %v5397_v52 = vpop.f32.mrf.mxu3 }
 0x3f0   :  { %v706_v43 = vpop.f32.mrf.mxu0  ;;  %6381 = vst [vmem:[#allocation65_spill] sm:$0xff] %v5397_v52 }
 0x3f1   :  { %v707_v11 = vadd.f32 %v5099_v39, %v706_v43 }
 0x3f2   :  { %v1155_v15 = vpop.f32.mrf.mxu1 }
 0x3f3   :  { %v1156_v50 = vadd.f32 %v1155_v15, %v707_v11 }
 0x3f5   :  { %v1375_v28 = vmax.f32 %v1156_v50, 0.0  ;;  %v5399_v31 = vpop.f32.mrf.mxu2 }
 0x3f6   :  { %6382 = vst [vmem:[#allocation66_spill] sm:$0xff] %v5399_v31 }
 0x3f7   :  { %3478 = vmatmul.msk.f32.gmra.mxu3 %vm1477_vm0, %v1375_v28  ;;  %v5403_v29 = vpop.f32.mrf.mxu3 }
 0x3f8   :  { %v709_v7 = vpop.f32.mrf.mxu0  ;;  %6383 = vst [vmem:[#allocation67_spill] sm:$0xff] %v5403_v29 }
 0x3f9   :  { %v710_v62 = vadd.f32 %v5099_v39, %v709_v7 }
 0x3fa   :  { %v1158_v53 = vpop.f32.mrf.mxu1 }
 0x3fb   :  { %v1159_v26 = vadd.f32 %v1158_v53, %v710_v62 }
 0x3fd   :  { %v1376_v43 = vmax.f32 %v1159_v26, 0.0  ;;  %v5406_v59 = vpop.f32.mrf.mxu2 }
 0x3fe   :  { %6384 = vst [vmem:[#allocation68_spill] sm:$0xff] %v5406_v59 }
 0x3ff   :  { %3479 = vmatmul.msk.f32.gmra.mxu3 %vm1477_vm0, %v1376_v43  ;;  %v1466_v43 = vld [vmem:[%s6311_s3 + $0x1a8] sm:$0xff] }
 0x400   :  { %v712_v15 = vpop.f32.mrf.mxu0  ;;  %2541 = vmatpush.msra.mxu3 %v1466_v43 }
 0x401   :  { %v713_v28 = vadd.f32 %v5099_v39, %v712_v15  ;;  %v5413_v15 = vpop.f32.mrf.mxu3 }
 0x402   :  { %v1161_v50 = vpop.f32.mrf.mxu1  ;;  %6385 = vst [vmem:[#allocation69_spill] sm:$0xff] %v5413_v15 }
 0x403   :  { %v1162_v11 = vadd.f32 %v1161_v50, %v713_v28 }
 0x405   :  { %v1377_v7 = vmax.f32 %v1162_v11, 0.0  ;;  %v5416_v11 = vpop.f32.mrf.mxu2 }
 0x406   :  { %6386 = vst [vmem:[#allocation70_spill] sm:$0xff] %v5416_v11 }
 0x407   :  { %3480 = vmatmul.msk.f32.vlgmr.msrb.gmra.mxu2 %vm1477_vm0, %v1377_v7 }
 0x408   :  { %v715_v62 = vpop.f32.mrf.mxu0 }
 0x409   :  { %v716_v44 = vadd.f32 %v5099_v39, %v715_v62 }
 0x40a   :  { %v1164_v53 = vpop.f32.mrf.mxu1 }
 0x40b   :  { %v1165_v26 = vadd.f32 %v1164_v53, %v716_v44 }
 0x40d   :  { %v1378_v31 = vmax.f32 %v1165_v26, 0.0  ;;  %v5420_v26 = vpop.f32.mrf.mxu3 }
 0x40e   :  { %6387 = vst [vmem:[#allocation71_spill] sm:$0xff] %v5420_v26 }
 0x40f   :  { %3481 = vmatmul.msk.f32.gmra.mxu2 %vm1477_vm0, %v1378_v31  ;;  %v5422_v31 = vpop.f32.mrf.mxu2 }
 0x410   :  { %v718_v28 = vpop.f32.mrf.mxu0  ;;  %6388 = vst [vmem:[#allocation72_spill] sm:$0xff] %v5422_v31 }
 0x411   :  { %v719_v50 = vadd.f32 %v5099_v39, %v718_v28  ;;  %v1465_v28 = vld [vmem:[%s6311_s3 + $0x1a0] sm:$0xff] }
 0x412   :  { %v1167_v7 = vpop.f32.mrf.mxu1  ;;  %2542 = vmatpush.msra.mxu3 %v1465_v28 }
 0x413   :  { %v1168_v59 = vadd.f32 %v1167_v7, %v719_v50 }
 0x415   :  { %v1379_v62 = vmax.f32 %v1168_v59, 0.0  ;;  %v5429_v7 = vpop.f32.mrf.mxu3 }
 0x416   :  { %6389 = vst [vmem:[#allocation73_spill] sm:$0xff] %v5429_v7 }
 0x417   :  { %3482 = vmatmul.msk.f32.gmra.mxu2 %vm1477_vm0, %v1379_v62  ;;  %v5431_v26 = vpop.f32.mrf.mxu2 }
 0x418   :  { %v721_v44 = vpop.f32.mrf.mxu0  ;;  %6390 = vst [vmem:[#allocation74_spill] sm:$0xff] %v5431_v26 }
 0x419   :  { %v722_v53 = vadd.f32 %v5099_v39, %v721_v44 }
 0x41a   :  { %v1170_v43 = vpop.f32.mrf.mxu1 }
 0x41b   :  { %v1171_v29 = vadd.f32 %v1170_v43, %v722_v53  ;;  %v1471_v43 = vld [vmem:[%s6311_s3 + $0x1d0] sm:$0xff] }
 0x41d   :  { %v1380_v15 = vmax.f32 %v1171_v29, 0.0  ;;  %v1472_v29 = vld [vmem:[%s6311_s3 + $0x1d8] sm:$0xff] }
 0x41e   :  { %2619 = vmatpush.msra.mxu2 %v1472_v29  ;;  %v1476_v29 = vld [vmem:[%s6311_s3 + $0x1f8] sm:$0xff] }
 0x41f   :  { %3483 = vmatmul.msk.f32.gmra.mxu2 %vm1477_vm0, %v1380_v15  ;;  %2699 = vmatpush.msrb.mxu3 %v1476_v29  ;;  %v1475_v29 = vld [vmem:[%s6311_s3 + $0x1f0] sm:$0xff] }
 0x420   :  { %v724_v59 = vpop.f32.mrf.mxu0  ;;  %2620 = vmatpush.msra.mxu2 %v1471_v43 }
 0x421   :  { %v725_v50 = vadd.f32 %v5099_v39, %v724_v59  ;;  %2700 = vmatpush.msrb.mxu3 %v1475_v29 }
 0x422   :  { %v1173_v62 = vpop.f32.mrf.mxu1 }
 0x423   :  { %v1174_v44 = vadd.f32 %v1173_v62, %v725_v50  ;;  %v1470_v50 = vld [vmem:[%s6311_s3 + $0x1c8] sm:$0xff] }
 0x424   :  { %2621 = vmatpush.msra.mxu2 %v1470_v50 }
 0x425   :  { %v1381_v11 = vmax.f32 %v1174_v44, 0.0  ;;  %v1469_v44 = vld [vmem:[%s6311_s3 + $0x1c0] sm:$0xff] }
 0x426   :  { %2622 = vmatpush.msra.mxu2 %v1469_v44 }
 0x427   :  { %3484 = vmatmul.msk.f32.gmra.mxu2 %vm1477_vm0, %v1381_v11  ;;  %v5444_v11 = vpop.f32.mrf.mxu3 }
 0x428   :  { %v727_v53 = vpop.f32.mrf.mxu0  ;;  %6391 = vst [vmem:[#allocation75_spill] sm:$0xff] %v5444_v11 }
 0x429   :  { %v728_v15 = vadd.f32 %v5099_v39, %v727_v53  ;;  %v5453_v53 = vpop.f32.mrf.mxu2 }
 0x42a   :  { %v1176_v28 = vpop.f32.mrf.mxu1  ;;  %6392 = vst [vmem:[#allocation76_spill] sm:$0xff] %v5453_v53  ;;  %v1395_v53 = vmax.f32 %v4256_v24, 0.0  ;;  %v1388_v24 = vmax.f32 %v4100_v56, 0.0  ;;  %v779_v56 = vadd.f32 %v5099_v39, %v4473_v5 }
 0x42b   :  { %v1177_v59 = vadd.f32 %v1176_v28, %v728_v15 }
 0x42d   :  { %v1382_v62 = vmax.f32 %v1177_v59, 0.0 }
 0x42f   :  { %3485 = vmatmul.msk.f32.gmra.mxu2 %vm1477_vm0, %v1382_v62  ;;  %v5456_v11 = vpop.f32.mrf.mxu3 }
 0x430   :  { %v730_v15 = vpop.f32.mrf.mxu0  ;;  %6393 = vst [vmem:[#allocation77_spill] sm:$0xff] %v5456_v11 }
 0x431   :  { %v731_v43 = vadd.f32 %v5099_v39, %v730_v15  ;;  %v5460_v7 = vpop.f32.mrf.mxu2 }
 0x432   :  { %v1179_v28 = vpop.f32.mrf.mxu1  ;;  %6394 = vst [vmem:[#allocation78_spill] sm:$0xff] %v5460_v7 }
 0x433   :  { %v1180_v50 = vadd.f32 %v1179_v28, %v731_v43 }
 0x435   :  { %v1383_v59 = vmax.f32 %v1180_v50, 0.0 }
 0x437   :  { %3486 = vmatmul.msk.f32.gmra.mxu2 %vm1477_vm0, %v1383_v59  ;;  %v5466_v15 = vpop.f32.mrf.mxu3 }
 0x438   :  { %v733_v44 = vpop.f32.mrf.mxu0  ;;  %6395 = vst [vmem:[#allocation79_spill] sm:$0xff] %v5466_v15 }
 0x439   :  { %v734_v62 = vadd.f32 %v5099_v39, %v733_v44  ;;  %v5469_v44 = vpop.f32.mrf.mxu2 }
 0x43a   :  { %v1182_v52 = vpop.f32.mrf.mxu1 }
 0x43b   :  { %v1183_v26 = vadd.f32 %v1182_v52, %v734_v62 }
 0x43d   :  { %v1384_v31 = vmax.f32 %v1183_v26, 0.0 }
 0x43f   :  { %3487 = vmatmul.msk.f32.gmra.mxu2 %vm1477_vm0, %v1384_v31  ;;  %v5473_v31 = vpop.f32.mrf.mxu3 }
 0x440   :  { %v736_v43 = vpop.f32.mrf.mxu0 }
 0x441   :  { %v737_v28 = vadd.f32 %v5099_v39, %v736_v43  ;;  %v5476_v29 = vpop.f32.mrf.mxu2 }
 0x442   :  { %v1185_v50 = vpop.f32.mrf.mxu1 }
 0x443   :  { %v1186_v59 = vadd.f32 %v1185_v50, %v737_v28  ;;  %v1387_v28 = vmax.f32 %v4081_v46, 0.0  ;;  %v1396_v50 = vmax.f32 %v4272_v45, 0.0  ;;  %v1473_v46 = vld [vmem:[%s6311_s3 + $0x1e0] sm:$0xff]  ;;  %v1389_v45 = vmax.f32 %v4119_v2, 0.0 }
 0x444   :  { %v782_v2 = vadd.f32 %v5099_v39, %v4489_v19 }
 0x445   :  { %v1385_v11 = vmax.f32 %v1186_v59, 0.0 }
 0x447   :  { %3488 = vmatmul.msk.f32.gmra.mxu2 %vm1477_vm0, %v1385_v11  ;;  %v1474_v11 = vld [vmem:[%s6311_s3 + $0x1e8] sm:$0xff]  ;;  %v5483_v43 = vpop.f32.mrf.mxu3 }
 0x448   :  { %v739_v52 = vpop.f32.mrf.mxu0  ;;  %2701 = vmatpush.msrb.mxu3 %v1474_v11  ;;  %v1390_v11 = vmax.f32 %v4138_v12, 0.0  ;;  %v785_v12 = vadd.f32 %v5099_v39, %v4503_v34 }
 0x449   :  { %v740_v26 = vadd.f32 %v5099_v39, %v739_v52  ;;  %v5487_v59 = vpop.f32.mrf.mxu2  ;;  %v1398_v52 = vmax.f32 %v4301_v47, 0.0  ;;  %v1231_v47 = vadd.f32 %v4411_v13, %v782_v2  ;;  %v1392_v13 = vmax.f32 %v4188_v38, 0.0 }
 0x44a   :  { %v1188_v62 = vpop.f32.mrf.mxu1  ;;  %2702 = vmatpush.msrb.mxu3 %v1473_v46  ;;  %v1234_v19 = vadd.f32 %v4421_v22, %v785_v12  ;;  %v1393_v22 = vmax.f32 %v4216_v58, 0.0  ;;  %v791_v38 = vadd.f32 %v5099_v39, %v4523_v33  ;;  %v800_v12 = vadd.f32 %v5099_v39, %v4573_v60 }
 0x44b   :  { %v1189_v7 = vadd.f32 %v1188_v62, %v740_v26  ;;  %v1228_v26 = vadd.f32 %v4400_v8, %v779_v56  ;;  %v1391_v8 = vmax.f32 %v4160_v23, 0.0  ;;  %v806_v60 = vadd.f32 %v5099_v39, %v4682_v16 }
 0x44c   :  { %v1401_v46 = vmax.f32 %v1234_v19, 0.0  ;;  %v812_v16 = vadd.f32 %v5099_v39, %v4712_v61 }
 0x44d   :  { %v1386_v15 = vmax.f32 %v1189_v7, 0.0  ;;  %v1397_v7 = vmax.f32 %v4286_v36, 0.0 }
 0x44f   :  { %3489 = vmatmul.msk.f32.vlgmr.msra.gmra.mxu3 %vm1477_vm0, %v1386_v15  ;;  %3498 = vmatmul.msk.f32.vlgmr.msra.gmra.mxu2 %vm1477_vm0, %v1395_v53  ;;  %v5493_v53 = vpop.f32.mrf.mxu3 }
 0x451   :  { %v5497_v15 = vpop.f32.mrf.mxu2 }
 0x457   :  { %3490 = vmatmul.msk.f32.gmra.mxu3 %vm1477_vm0, %v1387_v28  ;;  %3499 = vmatmul.msk.f32.gmra.mxu2 %vm1477_vm0, %v1396_v50  ;;  %v5508_v36 = vpop.f32.mrf.mxu3  ;;  %v1399_v28 = vmax.f32 %v1228_v26, 0.0  ;;  %v1240_v26 = vadd.f32 %v4461_v54, %v791_v38  ;;  %v797_v54 = vadd.f32 %v5099_v39, %v4563_v40  ;;  %v803_v40 = vadd.f32 %v5099_v39, %v4585_v6 }
 0x458   :  { %v809_v6 = vadd.f32 %v5099_v39, %v4698_v37 }
 0x459   :  { %v5511_v62 = vpop.f32.mrf.mxu2 }
 0x45f   :  { %3491 = vmatmul.msk.f32.gmra.mxu3 %vm1477_vm0, %v1388_v24  ;;  %3500 = vmatmul.msk.f32.gmra.mxu2 %vm1477_vm0, %v1397_v7  ;;  %v5519_v5 = vpop.f32.mrf.mxu3  ;;  %v1400_v24 = vmax.f32 %v1231_v47, 0.0 }
 0x461   :  { %v5521_v50 = vpop.f32.mrf.mxu2 }
 0x467   :  { %3492 = vmatmul.msk.f32.gmra.mxu3 %vm1477_vm0, %v1389_v45  ;;  %3501 = vmatmul.msk.f32.gmra.mxu2 %vm1477_vm0, %v1398_v52  ;;  %v5529_v7 = vpop.f32.mrf.mxu3  ;;  %v788_v45 = vadd.f32 %v5099_v39, %v4513_v49 }
 0x469   :  { %v5534_v52 = vpop.f32.mrf.mxu2  ;;  %v1237_v23 = vadd.f32 %v4438_v35, %v788_v45  ;;  %v794_v35 = vadd.f32 %v5099_v39, %v4540_v42  ;;  %v1246_v42 = vadd.f32 %v4483_v17, %v797_v54  ;;  %v1252_v17 = vadd.f32 %v4591_v14, %v803_v40 }
 0x46b   :  { %v1402_v56 = vmax.f32 %v1237_v23, 0.0  ;;  %v1243_v58 = vadd.f32 %v4471_v0, %v794_v35  ;;  %v1249_v0 = vadd.f32 %v4575_v55, %v800_v12  ;;  %v1407_v23 = vmax.f32 %v1252_v17, 0.0  ;;  %v6396_v17 = vld [vmem:[#allocation54_spill] sm:$0xff] }
 0x46c   :  { %v1255_v55 = vadd.f32 %v4610_v30, %v806_v60  ;;  %v1261_v30 = vadd.f32 %v4630_v63, %v812_v16  ;;  %v2769_v60 = vld [vmem:[%s6313_s5 + $0x38] sm:$0xff] }
 0x46d   :  { %v1404_v47 = vmax.f32 %v1243_v58, 0.0  ;;  %v815_v58 = vadd.f32 %v5099_v39, %v4722_v25  ;;  %v1603_v25 = vadd.f32 %v4890_v18, %v4784_v32  ;;  %v1606_v32 = vadd.f32 %v4906_v21, %v4800_v1  ;;  %2869 = vmatpush.msra.mxu3 %v2769_v60  ;;  %v6400_v16 = vld [vmem:[#allocation72_spill] sm:$0xff]  ;;  %v6410_v60 = vld [vmem:[#allocation74_spill] sm:$0xff] }
 0x46e   :  { %v1410_v37 = vmax.f32 %v1261_v30, 0.0 }
 0x46f   :  { %3493 = vmatmul.msk.f32.gmra.mxu3 %vm1477_vm0, %v1390_v11  ;;  %3502 = vmatmul.msk.f32.gmra.mxu2 %vm1477_vm0, %v1399_v28  ;;  %v5539_v34 = vpop.f32.mrf.mxu3  ;;  %v1394_v11 = vmax.f32 %v4238_v9, 0.0  ;;  %v1403_v28 = vmax.f32 %v1240_v26, 0.0  ;;  %v1258_v26 = vadd.f32 %v4620_v51, %v809_v6  ;;  %v1264_v51 = vadd.f32 %v4647_v27, %v815_v58 }
 0x470   :  { %v1694_v39 = vadd.f32 %v4992_v3, %v1603_v25  ;;  %v1695_v3 = vadd.f32 %v5008_v57, %v1606_v32  ;;  %v6402_v57 = vld [vmem:[#allocation19_spill] sm:$0xff] }
 0x471   :  { %v5546_v49 = vpop.f32.mrf.mxu2  ;;  %v1411_v61 = vmax.f32 %v1264_v51, 0.0  ;;  %v6404_v51 = vld [vmem:[#allocation79_spill] sm:$0xff] }
 0x472   :  { %v6408_v32 = vld [vmem:[#allocation63_spill] sm:$0xff] }
 0x477   :  { %3494 = vmatmul.msk.f32.gmra.mxu3 %vm1477_vm0, %v1391_v8  ;;  %3503 = vmatmul.msk.f32.gmra.mxu2 %vm1477_vm0, %v1400_v24  ;;  %v5552_v2 = vpop.f32.mrf.mxu3  ;;  %v1405_v24 = vmax.f32 %v1246_v42, 0.0  ;;  %v3590_v42 = vld [vmem:[%s6310_s2] ss:$0 sm:$0xff] }
 0x478   :  { %v818_v63 = vadd.f32 %v3590_v42, %v4732_v48  ;;  %v1774_v48 = vadd.f32 %v5094_v41, %v1694_v39  ;;  %v6397_v41 = vld [vmem:[#allocation33_spill] sm:$0xff]  ;;  %v6405_v42 = vld [vmem:[#allocation26_spill] sm:$0xff] }
 0x479   :  { %v5557_v33 = vpop.f32.mrf.mxu2  ;;  %v2776_v39 = vld [vmem:[%s6313_s5 + $0x70] sm:$0xff] }
 0x47f   :  { %3495 = vmatmul.msk.f32.gmra.mxu3 %vm1477_vm0, %v1392_v13  ;;  %3504 = vmatmul.msk.f32.gmra.mxu2 %vm1477_vm0, %v1401_v46  ;;  %v5562_v9 = vpop.f32.mrf.mxu3  ;;  %v1406_v13 = vmax.f32 %v1249_v0, 0.0  ;;  %v2777_v0 = vld [vmem:[%s6313_s5 + $0x78] sm:$0xff] }
 0x480   :  { %2846 = vmatpush.msrb.mxu2 %v2777_v0  ;;  %v2768_v0 = vld [vmem:[%s6313_s5 + $0x30] sm:$0xff] }
 0x481   :  { %v5565_v8 = vpop.f32.mrf.mxu2  ;;  %2870 = vmatpush.msra.mxu3 %v2768_v0  ;;  %v6419_v0 = vld [vmem:[#allocation76_spill] sm:$0xff] }
 0x482   :  { %2847 = vmatpush.msrb.mxu2 %v2776_v39 }
 0x487   :  { %3496 = vmatmul.msk.f32.gmra.mxu3 %vm1477_vm0, %v1393_v22  ;;  %3505 = vmatmul.msk.f32.gmra.mxu2 %vm1477_vm0, %v1402_v56  ;;  %v5571_v19 = vpop.f32.mrf.mxu3  ;;  %v1408_v56 = vmax.f32 %v1255_v55, 0.0  ;;  %v1775_v55 = vadd.f32 %v6397_v41, %v1695_v3 }
 0x489   :  { %v5575_v46 = vpop.f32.mrf.mxu2 }
 0x48f   :  { %3497 = vmatmul.msk.f32.gmra.mxu3 %vm1477_vm0, %v1394_v11  ;;  %3506 = vmatmul.msk.f32.gmra.mxu2 %vm1477_vm0, %v1403_v28  ;;  %v5579_v45 = vpop.f32.mrf.mxu3  ;;  %v1409_v11 = vmax.f32 %v1258_v26, 0.0  ;;  %v6399_v26 = vld [vmem:[#allocation41_spill] sm:$0xff] }
 0x491   :  { %v5583_v22 = vpop.f32.mrf.mxu2 }
 0x497   :  { %3507 = vmatmul.msk.f32.vlgmr.msrb.gmra.mxu3 %vm1477_vm0, %v1404_v47  ;;  %v5589_v38 = vpop.f32.mrf.mxu3 }
 0x499   :  { %v5592_v14 = vpop.f32.mrf.mxu2 }
 0x49f   :  { %3508 = vmatmul.msk.f32.gmra.mxu3 %vm1477_vm0, %v1405_v24  ;;  %v5598_v28 = vpop.f32.mrf.mxu3  ;;  %v1267_v24 = vadd.f32 %v4749_v20, %v818_v63  ;;  %v1854_v20 = vadd.f32 %v5201_v10, %v1774_v48  ;;  %v6407_v48 = vld [vmem:[#allocation34_spill] sm:$0xff] }
 0x4a1   :  { %v5601_v35 = vpop.f32.mrf.mxu2  ;;  %v1412_v27 = vmax.f32 %v1267_v24, 0.0  ;;  %v1934_v18 = vadd.f32 %v5248_v4, %v1854_v20  ;;  %v6401_v4 = vld [vmem:[#allocation12_spill] sm:$0xff] }
 0x4a2   :  { %v1609_v30 = vadd.f32 %v6402_v57, %v6401_v4  ;;  %v6406_v24 = vld [vmem:[#allocation56_spill] sm:$0xff] }
 0x4a4   :  { %v1696_v63 = vadd.f32 %v6405_v42, %v1609_v30  ;;  %v6414_v30 = vld [vmem:[#allocation27_spill] sm:$0xff] }
 0x4a5   :  { %v6416_v42 = vld [vmem:[#allocation35_spill] sm:$0xff] }
 0x4a6   :  { %v1776_v20 = vadd.f32 %v6407_v48, %v1696_v63  ;;  %v6417_v63 = vld [vmem:[#allocation65_spill] sm:$0xff] }
 0x4a7   :  { %3509 = vmatmul.msk.f32.gmra.mxu3 %vm1477_vm0, %v1406_v13  ;;  %v5607_v47 = vpop.f32.mrf.mxu3 }
 0x4a9   :  { %v2473_v54 = vpop.f32.mrf.mxu2 }
 0x4af   :  { %3510 = vmatmul.msk.f32.gmra.mxu3 %vm1477_vm0, %v1407_v23  ;;  %v2014_v23 = vadd.f32 %v6396_v17, %v1934_v18  ;;  %v6409_v17 = vld [vmem:[#allocation42_spill] sm:$0xff] }
 0x4b1   :  { %v2476_v13 = vpop.f32.mrf.mxu2 }
 0x4b7   :  { %3511 = vmatmul.msk.f32.gmra.mxu3 %vm1477_vm0, %v1408_v56  ;;  %v6398_v56 = vld [vmem:[#allocation61_spill] sm:$0xff] }
 0x4b8   :  { %v2094_v10 = vadd.f32 %v6398_v56, %v2014_v23  ;;  %v1856_v23 = vadd.f32 %v6409_v17, %v1776_v20  ;;  %v6422_v17 = vld [vmem:[#allocation50_spill] sm:$0xff] }
 0x4b9   :  { %v2479_v6 = vpop.f32.mrf.mxu2 }
 0x4ba   :  { %v2174_v1 = vadd.f32 %v6400_v16, %v2094_v10  ;;  %v6411_v10 = vld [vmem:[#allocation13_spill] sm:$0xff]  ;;  %v6413_v16 = vld [vmem:[#allocation48_spill] sm:$0xff] }
 0x4bf   :  { %3512 = vmatmul.msk.f32.gmra.mxu3 %vm1477_vm0, %v1409_v11  ;;  %v1855_v11 = vadd.f32 %v6399_v26, %v1775_v55  ;;  %v6412_v26 = vld [vmem:[#allocation20_spill] sm:$0xff] }
 0x4c1   :  { %v5660_v55 = vpop.f32.mrf.mxu2 }
 0x4c7   :  { %3513 = vmatmul.msk.f32.gmra.mxu3 %vm1477_vm0, %v1410_v37  ;;  %v6403_v37 = vld [vmem:[#allocation45_spill] sm:$0xff] }
 0x4c8   :  { %v1935_v58 = vadd.f32 %v6403_v37, %v1855_v11  ;;  %v1612_v11 = vadd.f32 %v6412_v26, %v6411_v10 }
 0x4ca   :  { %v2015_v25 = vadd.f32 %v6406_v24, %v1935_v58  ;;  %v1697_v37 = vadd.f32 %v6414_v30, %v1612_v11 }
 0x4cc   :  { %v2095_v18 = vadd.f32 %v6408_v32, %v2015_v25  ;;  %v6420_v32 = vld [vmem:[#allocation14_spill] sm:$0xff] }
 0x4cf   :  { %3514 = vmatmul.msk.f32.gmra.mxu3 %vm1477_vm0, %v1411_v61  ;;  %v2254_v61 = vadd.f32 %v6404_v51, %v2174_v1  ;;  %v1936_v1 = vadd.f32 %v6413_v16, %v1856_v23  ;;  %v2766_v16 = vld [vmem:[%s6313_s5 + $0x20] sm:$0xff] }
 0x4d2   :  { %v5615_v12 = vpop.f32.mrf.mxu3 }
 0x4d7   :  { %3515 = vmatmul.msk.f32.gmra.mxu3 %vm1477_vm0, %v1412_v27  ;;  %v2334_v27 = vadd.f32 %v5521_v50, %v2254_v61  ;;  %v2175_v50 = vadd.f32 %v6410_v60, %v2095_v18  ;;  %v2767_v61 = vld [vmem:[%s6313_s5 + $0x28] sm:$0xff] }
 0x4d8   :  { %2871 = vmatpush.msra.mxu3 %v2767_v61  ;;  %v6421_v18 = vld [vmem:[#allocation21_spill] sm:$0xff]  ;;  %v2765_v61 = vld [vmem:[%s6313_s5 + $0x18] sm:$0xff] }
 0x4d9   :  { %v2414_v3 = vadd.f32 %v5562_v9, %v2334_v27  ;;  %v2255_v4 = vadd.f32 %v5473_v31, %v2175_v50  ;;  %v6415_v9 = vld [vmem:[#allocation58_spill] sm:$0xff]  ;;  %v1777_v31 = vadd.f32 %v6416_v42, %v1697_v37  ;;  %v6418_v27 = vld [vmem:[#allocation43_spill] sm:$0xff] }
 0x4da   :  { %v5626_v40 = vpop.f32.mrf.mxu3  ;;  %v2016_v58 = vadd.f32 %v6415_v9, %v1936_v1  ;;  %2872 = vmatpush.msra.mxu3 %v2766_v16  ;;  %v6427_v9 = vld [vmem:[#allocation44_spill] sm:$0xff]  ;;  %v6438_v16 = vld [vmem:[#allocation69_spill] sm:$0xff] }
 0x4db   :  { %v2494_v41 = vadd.f32 %v2473_v54, %v2414_v3  ;;  %v2335_v51 = vadd.f32 %v5534_v52, %v2255_v4  ;;  %v2775_v54 = vld [vmem:[%s6313_s5 + $0x68] sm:$0xff]  ;;  %v1857_v39 = vadd.f32 %v6418_v27, %v1777_v31  ;;  %v1615_v3 = vadd.f32 %v6421_v18, %v6420_v32  ;;  %v6426_v4 = vld [vmem:[#allocation67_spill] sm:$0xff]  ;;  %v6431_v27 = vld [vmem:[#allocation52_spill] sm:$0xff] }
 0x4dc   :  { %2848 = vmatpush.msrb.mxu2 %v2775_v54  ;;  %v2096_v24 = vadd.f32 %v6417_v63, %v2016_v58  ;;  %2873 = vmatpush.msra.mxu3 %v2765_v61  ;;  %v2773_v31 = vld [vmem:[%s6313_s5 + $0x58] sm:$0xff]  ;;  %v6434_v18 = vld [vmem:[#allocation29_spill] sm:$0xff]  ;;  %v6441_v61 = vld [vmem:[#allocation30_spill] sm:$0xff] }
 0x4dd   :  { %v2415_v25 = vadd.f32 %v5571_v19, %v2335_v51  ;;  %v1937_v23 = vadd.f32 %v6422_v17, %v1857_v39  ;;  %v6424_v19 = vld [vmem:[#allocation60_spill] sm:$0xff]  ;;  %v6428_v51 = vld [vmem:[#allocation78_spill] sm:$0xff]  ;;  %v6429_v63 = vld [vmem:[#allocation15_spill] sm:$0xff] }
 0x4de   :  { %v2176_v52 = vadd.f32 %v6419_v0, %v2096_v24  ;;  %v6430_v24 = vld [vmem:[#allocation22_spill] sm:$0xff] }
 0x4df   :  { %v2495_v48 = vadd.f32 %v2476_v13, %v2415_v25  ;;  %v2017_v26 = vadd.f32 %v6424_v19, %v1937_v23  ;;  %v2774_v13 = vld [vmem:[%s6313_s5 + $0x60] sm:$0xff]  ;;  %v1618_v25 = vadd.f32 %v6430_v24, %v6429_v63  ;;  %v6435_v17 = vld [vmem:[#allocation62_spill] sm:$0xff] }
 0x4e0   :  { %v2256_v60 = vadd.f32 %v5483_v43, %v2176_v52  ;;  %2849 = vmatpush.msrb.mxu2 %v2774_v13  ;;  %v6425_v43 = vld [vmem:[#allocation36_spill] sm:$0xff]  ;;  %v2772_v52 = vld [vmem:[%s6313_s5 + $0x50] sm:$0xff] }
 0x4e1   :  { %v2097_v30 = vadd.f32 %v6426_v4, %v2017_v26  ;;  %v6436_v19 = vld [vmem:[#allocation16_spill] sm:$0xff] }
 0x4e2   :  { %v5640_v21 = vpop.f32.mrf.mxu3  ;;  %v2336_v11 = vadd.f32 %v5546_v49, %v2256_v60  ;;  %2850 = vmatpush.msrb.mxu2 %v2773_v31  ;;  %v2763_v60 = vld [vmem:[%s6313_s5 + $0x8] sm:$0xff]  ;;  %v2770_v4 = vld [vmem:[%s6313_s5 + $0x40] sm:$0xff] }
 0x4e3   :  { %v2177_v49 = vadd.f32 %v6428_v51, %v2097_v30  ;;  %v6439_v30 = vld [vmem:[#allocation23_spill] sm:$0xff]  ;;  %v6442_v31 = vld [vmem:[#allocation53_spill] sm:$0xff] }
 0x4e4   :  { %v2416_v37 = vadd.f32 %v5579_v45, %v2336_v11  ;;  %2851 = vmatpush.msrb.mxu2 %v2772_v52  ;;  %v6437_v11 = vld [vmem:[#allocation37_spill] sm:$0xff]  ;;  %v6446_v52 = vld [vmem:[#allocation64_spill] sm:$0xff] }
 0x4e5   :  { %v2257_v39 = vadd.f32 %v5493_v53, %v2177_v49 }
 0x4e6   :  { %v2496_v54 = vadd.f32 %v2479_v6, %v2416_v37  ;;  %v2764_v6 = vld [vmem:[%s6313_s5 + $0x10] sm:$0xff] }
 0x4e7   :  { %2874 = vmatpush.msra.mxu3 %v2764_v6  ;;  %v2337_v53 = vadd.f32 %v5557_v33, %v2257_v39  ;;  %v6445_v39 = vld [vmem:[#allocation38_spill] sm:$0xff] }
 0x4e9   :  { %2875 = vmatpush.msra.mxu3 %v2763_v60  ;;  %v2417_v33 = vadd.f32 %v5589_v38, %v2337_v53  ;;  %v2785_v38 = vld [vmem:[%s6313_s5 + $0xb8] sm:$0xff] }
 0x4ea   :  { %v2553_v56 = vpop.f32.mrf.mxu3 }
 0x4eb   :  { %v5666_v57 = vadd.f32 %v2553_v56, %v2494_v41  ;;  %v5688_v41 = vpop.f32.mrf.mxu2  ;;  %v6423_v56 = vld [vmem:[#allocation28_spill] sm:$0xff]  ;;  %v2497_v49 = vadd.f32 %v5660_v55, %v2417_v33  ;;  %v6443_v55 = vld [vmem:[#allocation7_spill] sm:$0xff] }
 0x4ec   :  { %v1698_v10 = vadd.f32 %v6423_v56, %v1615_v3  ;;  %v1699_v3 = vadd.f32 %v6434_v18, %v1618_v25  ;;  %v2781_v33 = vld [vmem:[%s6313_s5 + $0x98] sm:$0xff] }
 0x4ee   :  { %v1778_v1 = vadd.f32 %v6425_v43, %v1698_v10  ;;  %v2771_v10 = vld [vmem:[%s6313_s5 + $0x48] sm:$0xff]  ;;  %v1779_v13 = vadd.f32 %v6437_v11, %v1699_v3  ;;  %v6448_v3 = vld [vmem:[#allocation47_spill] sm:$0xff] }
 0x4ef   :  { %2852 = vmatpush.msrb.mxu2 %v2771_v10  ;;  %v2782_v10 = vld [vmem:[%s6313_s5 + $0xa0] sm:$0xff]  ;;  %v6451_v11 = vld [vmem:[#allocation55_spill] sm:$0xff] }
 0x4f0   :  { %v1858_v58 = vadd.f32 %v6427_v9, %v1778_v1  ;;  %v2762_v1 = vld [vmem:[%s6313_s5] sm:$0xff]  ;;  %v6440_v9 = vld [vmem:[#allocation46_spill] sm:$0xff] }
 0x4f1   :  { %2876 = vmatpush.msra.mxu3 %v2762_v1  ;;  %2853 = vmatpush.msrb.mxu2 %v2770_v4  ;;  %v6452_v4 = vld [vmem:[#allocation31_spill] sm:$0xff] }
 0x4f2   :  { %v2556_v20 = vpop.f32.mrf.mxu3  ;;  %v1938_v45 = vadd.f32 %v6431_v27, %v1858_v58  ;;  %v1859_v58 = vadd.f32 %v6440_v9, %v1779_v13  ;;  %v6444_v27 = vld [vmem:[#allocation10_spill] sm:$0xff] }
 0x4f3   :  { %v5686_v50 = vadd.f32 %v2556_v20, %v2495_v48  ;;  %v6432_v48 = vld [vmem:[#allocation6_spill] sm:$0xff]  ;;  %v6433_v20 = vld [vmem:[#allocation9_spill] sm:$0xff]  ;;  %v5730_v56 = vpop.f32.mrf.mxu2  ;;  %2892 = vmatpush.msra.mxu2 %v2785_v38  ;;  %v6455_v38 = vld [vmem:[#allocation11_spill] sm:$0xff] }
 0x4f4   :  { %v1594_v32 = vadd.f32 %v6433_v20, %v6432_v48  ;;  %v2018_v23 = vadd.f32 %v6435_v17, %v1938_v45  ;;  %v1939_v63 = vadd.f32 %v6442_v31, %v1859_v58  ;;  %v1597_v45 = vadd.f32 %v6444_v27, %v6443_v55  ;;  %v6457_v31 = vld [vmem:[#allocation73_spill] sm:$0xff]  ;;  %v6458_v55 = vld [vmem:[#allocation18_spill] sm:$0xff] }
 0x4f6   :  { %v1691_v26 = vadd.f32 %v6436_v19, %v1594_v32  ;;  %v2098_v43 = vadd.f32 %v6438_v16, %v2018_v23  ;;  %v2019_v48 = vadd.f32 %v6446_v52, %v1939_v63  ;;  %v6447_v32 = vld [vmem:[#allocation17_spill] sm:$0xff]  ;;  %v6449_v23 = vld [vmem:[#allocation71_spill] sm:$0xff] }
 0x4f7   :  { %v1692_v18 = vadd.f32 %v6447_v32, %v1597_v45  ;;  %v6459_v45 = vld [vmem:[#allocation49_spill] sm:$0xff] }
 0x4f8   :  { %v1771_v37 = vadd.f32 %v6439_v30, %v1691_v26  ;;  %v2178_v51 = vadd.f32 %v5469_v44, %v2098_v43  ;;  %v2784_v44 = vld [vmem:[%s6313_s5 + $0xb0] sm:$0xff]  ;;  %v2099_v53 = vadd.f32 %v6449_v23, %v2019_v48  ;;  %v2790_v48 = vld [vmem:[%s6313_s5 + $0xe0] sm:$0xff] }
 0x4f9   :  { %2893 = vmatpush.msra.mxu2 %v2784_v44  ;;  %v2791_v44 = vld [vmem:[%s6313_s5 + $0xe8] sm:$0xff] }
 0x4fa   :  { %v2559_v42 = vpop.f32.mrf.mxu3  ;;  %v2258_v24 = vadd.f32 %v5508_v36, %v2178_v51  ;;  %v2783_v36 = vld [vmem:[%s6313_s5 + $0xa8] sm:$0xff]  ;;  %v2179_v16 = vadd.f32 %v5476_v29, %v2099_v53  ;;  %v2792_v51 = vld [vmem:[%s6313_s5 + $0xf0] sm:$0xff]  ;;  %v6462_v53 = vld [vmem:[#allocation32_spill] sm:$0xff] }
 0x4fb   :  { %v5714_v0 = vadd.f32 %v2559_v42, %v2496_v54  ;;  %v1851_v42 = vadd.f32 %v6441_v61, %v1771_v37  ;;  %2894 = vmatpush.msra.mxu2 %v2783_v36  ;;  %v2624_v19 = vpop.f32.mrf.mxu2  ;;  %v6453_v37 = vld [vmem:[#allocation66_spill] sm:$0xff]  ;;  %v6456_v61 = vld [vmem:[#allocation39_spill] sm:$0xff]  ;;  %v6461_v32 = vld [vmem:[#allocation57_spill] sm:$0xff] }
 0x4fc   :  { %v2338_v20 = vadd.f32 %v5565_v8, %v2258_v24  ;;  %v6450_v8 = vld [vmem:[#allocation24_spill] sm:$0xff]  ;;  %v2259_v58 = vadd.f32 %v5519_v5, %v2179_v16  ;;  %v2779_v24 = vld [vmem:[%s6313_s5 + $0x88] sm:$0xff]  ;;  %v6465_v16 = vld [vmem:[#allocation75_spill] sm:$0xff] }
 0x4fd   :  { %v1931_v6 = vadd.f32 %v6445_v39, %v1851_v42  ;;  %2895 = vmatpush.msra.mxu2 %v2782_v10  ;;  %v1772_v26 = vadd.f32 %v6450_v8, %v1692_v18  ;;  %v6463_v10 = vld [vmem:[#allocation68_spill] sm:$0xff] }
 0x4fe   :  { %v2418_v60 = vadd.f32 %v5598_v28, %v2338_v20  ;;  %v2793_v28 = vld [vmem:[%s6313_s5 + $0xf8] sm:$0xff]  ;;  %v2339_v5 = vadd.f32 %v5575_v46, %v2259_v58  ;;  %v2778_v46 = vld [vmem:[%s6313_s5 + $0x80] sm:$0xff] }
 0x4ff   :  { %v2011_v17 = vadd.f32 %v6448_v3, %v1931_v6  ;;  %2896 = vmatpush.msra.mxu2 %v2781_v33  ;;  %2916 = vmatpush.msrb.mxu3 %v2793_v28  ;;  %v1852_v30 = vadd.f32 %v6452_v4, %v1772_v26  ;;  %v6460_v20 = vld [vmem:[#allocation25_spill] sm:$0xff] }
 0x500   :  { %v2498_v43 = vadd.f32 %v5688_v41, %v2418_v60  ;;  %v2780_v41 = vld [vmem:[%s6313_s5 + $0x90] sm:$0xff]  ;;  %v2419_v52 = vadd.f32 %v5607_v47, %v2339_v5  ;;  %v2789_v47 = vld [vmem:[%s6313_s5 + $0xd8] sm:$0xff]  ;;  %v2787_v28 = vld [vmem:[%s6313_s5 + $0xc8] sm:$0xff] }
 0x501   :  { %v2091_v13 = vadd.f32 %v6451_v11, %v2011_v17  ;;  %2897 = vmatpush.msra.mxu2 %v2780_v41  ;;  %2917 = vmatpush.msrb.mxu3 %v2792_v51  ;;  %v1932_v42 = vadd.f32 %v6456_v61, %v1852_v30  ;;  %v2786_v30 = vld [vmem:[%s6313_s5 + $0xc0] sm:$0xff] }
 0x502   :  { %v2562_v54 = vpop.f32.mrf.mxu3 }
 0x503   :  { %v5755_v25 = vadd.f32 %v2562_v54, %v2497_v49  ;;  %v2171_v9 = vadd.f32 %v6453_v37, %v2091_v13  ;;  %v6454_v49 = vld [vmem:[#allocation8_spill] sm:$0xff]  ;;  %2898 = vmatpush.msra.mxu2 %v2779_v24  ;;  %2918 = vmatpush.msrb.mxu3 %v2791_v44  ;;  %v2012_v39 = vadd.f32 %v6459_v45, %v1932_v42  ;;  %v2627_v17 = vpop.f32.mrf.mxu2  ;;  %v6467_v37 = vld [vmem:[#allocation59_spill] sm:$0xff]  ;;  %v6469_v42 = vld [vmem:[#allocation77_spill] sm:$0xff] }
 0x504   :  { %v1600_v54 = vadd.f32 %v6455_v38, %v6454_v49  ;;  %v6468_v49 = vld [vmem:[#allocation70_spill] sm:$0xff]  ;;  %v2809_v24 = vld [vmem:[%s6313_s5 + $0x178] sm:$0xff] }
 0x505   :  { %v2251_v63 = vadd.f32 %v6457_v31, %v2171_v9  ;;  %2899 = vmatpush.msra.mxu2 %v2778_v46  ;;  %2919 = vmatpush.msrb.mxu3 %v2790_v48  ;;  %v2092_v18 = vadd.f32 %v6461_v32, %v2012_v39  ;;  %v2805_v48 = vld [vmem:[%s6313_s5 + $0x158] sm:$0xff] }
 0x506   :  { %v1693_v27 = vadd.f32 %v6458_v55, %v1600_v54 }
 0x507   :  { %v2331_v6 = vadd.f32 %v5487_v59, %v2251_v63  ;;  %v2499_v59 = vadd.f32 %v5730_v56, %v2419_v52  ;;  %2920 = vmatpush.msrb.mxu3 %v2789_v47  ;;  %v2172_v8 = vadd.f32 %v6463_v10, %v2092_v18  ;;  %v6464_v56 = vld [vmem:[#allocation40_spill] sm:$0xff] }
 0x508   :  { %v1773_v36 = vadd.f32 %v6460_v20, %v1693_v27 }
 0x509   :  { %v2411_v3 = vadd.f32 %v5529_v7, %v2331_v6  ;;  %v2788_v7 = vld [vmem:[%s6313_s5 + $0xd0] sm:$0xff]  ;;  %v2806_v6 = vld [vmem:[%s6313_s5 + $0x160] sm:$0xff] }
 0x50a   :  { %v2565_v1 = vpop.f32.mrf.mxu3  ;;  %v1853_v60 = vadd.f32 %v6462_v53, %v1773_v36  ;;  %2921 = vmatpush.msrb.mxu3 %v2788_v7  ;;  %v2804_v36 = vld [vmem:[%s6313_s5 + $0x150] sm:$0xff] }
 0x50b   :  { %v5788_v29 = vadd.f32 %v2565_v1, %v2498_v43  ;;  %v2491_v26 = vadd.f32 %v5583_v22, %v2411_v3  ;;  %v2252_v43 = vadd.f32 %v6465_v16, %v2172_v8  ;;  %v6466_v1 = vld [vmem:[#allocation51_spill] sm:$0xff]  ;;  %v2630_v61 = vpop.f32.mrf.mxu2  ;;  %v2799_v3 = vld [vmem:[%s6313_s5 + $0x128] sm:$0xff] }
 0x50c   :  { %v1933_v13 = vadd.f32 %v6464_v56, %v1853_v60  ;;  %2922 = vmatpush.msrb.mxu3 %v2787_v28  ;;  %v2797_v60 = vld [vmem:[%s6313_s5 + $0x118] sm:$0xff] }
 0x50d   :  { %v2571_v33 = vadd.f32 %v5615_v12, %v2491_v26  ;;  %v2332_v4 = vadd.f32 %v5497_v15, %v2252_v43  ;;  %v5848_v12 = vld [vmem:[%s6312_s4] ss:$0 sm:$0xff]  ;;  %v2796_v26 = vld [vmem:[%s6313_s5 + $0x110] sm:$0xff]  ;;  %v2817_v43 = vld [vmem:[%s6313_s5 + $0x1b8] sm:$0xff] }
 0x50e   :  { %v2013_v22 = vadd.f32 %v6466_v1, %v1933_v13  ;;  %2923 = vmatpush.msrb.mxu3 %v2786_v30  ;;  %v2795_v13 = vld [vmem:[%s6313_s5 + $0x108] sm:$0xff]  ;;  %v2825_v28 = vld [vmem:[%s6313_s5 + $0x1f8] sm:$0xff]  ;;  %v2816_v1 = vld [vmem:[%s6313_s5 + $0x1b0] sm:$0xff] }
 0x50f   :  { %v2412_v58 = vadd.f32 %v5539_v34, %v2332_v4  ;;  %v2651_v41 = vadd.f32 %v2624_v19, %v2571_v33  ;;  %v2824_v4 = vld [vmem:[%s6313_s5 + $0x1f0] sm:$0xff] }
 0x510   :  { %v2093_v9 = vadd.f32 %v6467_v37, %v2013_v22 }
 0x511   :  { %v2492_v15 = vadd.f32 %v5592_v14, %v2412_v58  ;;  %v2808_v14 = vld [vmem:[%s6313_s5 + $0x170] sm:$0xff] }
 0x512   :  { %v2568_v23 = vpop.f32.mrf.mxu3  ;;  %v2173_v38 = vadd.f32 %v6468_v49, %v2093_v9  ;;  %v2815_v9 = vld [vmem:[%s6313_s5 + $0x1a8] sm:$0xff]  ;;  %v2822_v49 = vld [vmem:[%s6313_s5 + $0x1e0] sm:$0xff] }
 0x513   :  { %v5827_v11 = vadd.f32 %v2568_v23, %v2499_v59  ;;  %v2572_v63 = vadd.f32 %v5626_v40, %v2492_v15  ;;  %v2633_v52 = vpop.f32.mrf.mxu2  ;;  %v2803_v59 = vld [vmem:[%s6313_s5 + $0x148] sm:$0xff]  ;;  %v2802_v23 = vld [vmem:[%s6313_s5 + $0x140] sm:$0xff]  ;;  %v2813_v15 = vld [vmem:[%s6313_s5 + $0x198] sm:$0xff] }
 0x514   :  { %v2253_v31 = vadd.f32 %v6469_v42, %v2173_v38  ;;  %v2654_v8 = vadd.f32 %v2633_v52, %v5666_v57  ;;  %v2794_v57 = vld [vmem:[%s6313_s5 + $0x100] sm:$0xff]  ;;  %v2812_v42 = vld [vmem:[%s6313_s5 + $0x190] sm:$0xff] }
 0x515   :  { %v2652_v55 = vadd.f32 %v2627_v17, %v2572_v63  ;;  %v2798_v17 = vld [vmem:[%s6313_s5 + $0x120] sm:$0xff] }
 0x516   :  { %v2333_v34 = vadd.f32 %v5511_v62, %v2253_v31  ;;  %v2807_v62 = vld [vmem:[%s6313_s5 + $0x168] sm:$0xff]  ;;  %v2820_v31 = vld [vmem:[%s6313_s5 + $0x1d0] sm:$0xff] }
 0x518   :  { %v2413_v44 = vadd.f32 %v5552_v2, %v2333_v34  ;;  %v2811_v34 = vld [vmem:[%s6313_s5 + $0x188] sm:$0xff] }
 0x51a   :  { %v2704_v51 = vpop.f32.mrf.mxu3  ;;  %v2493_v27 = vadd.f32 %v5601_v35, %v2413_v44  ;;  %v2801_v35 = vld [vmem:[%s6313_s5 + $0x138] sm:$0xff]  ;;  %v2810_v44 = vld [vmem:[%s6313_s5 + $0x180] sm:$0xff] }
 0x51b   :  { %v2731_v54 = vadd.f32 %v2704_v51, %v2651_v41  ;;  %v2636_v10 = vpop.f32.mrf.mxu2  ;;  %v2814_v41 = vld [vmem:[%s6313_s5 + $0x1a0] sm:$0xff] }
 0x51c   :  { %v2573_v39 = vadd.f32 %v5640_v21, %v2493_v27  ;;  %v2800_v21 = vld [vmem:[%s6313_s5 + $0x130] sm:$0xff]  ;;  %v2655_v22 = vadd.f32 %v2636_v10, %v5686_v50  ;;  %v2823_v50 = vld [vmem:[%s6313_s5 + $0x1e8] sm:$0xff]  ;;  %v3083_v10 = vld [vmem:[%s6315_s7 + $0xe0] sm:$0xff] }
 0x51d   :  { %v2744_v5 = vadd.f32 %v5848_v12, %v2731_v54  ;;  %v2821_v54 = vld [vmem:[%s6313_s5 + $0x1d8] sm:$0xff]  ;;  %v2832_v27 = vld [vmem:[%s6313_s5 + $0x230] sm:$0xff] }
 0x51e   :  { %v2653_v20 = vadd.f32 %v2630_v61, %v2573_v39  ;;  %v2831_v39 = vld [vmem:[%s6313_s5 + $0x228] sm:$0xff] }
 0x51f   :  { %v2753_v19 = vmax.f32 %v2744_v5, 0.0 }
 0x521   :  { %3517 = vmatmul.msk.f32.vlgmr.msra.gmra.mxu3 %vm2834_vm1, %v2753_v19 }
 0x522   :  { %v2707_v40 = vpop.f32.mrf.mxu3  ;;  %2964 = vmatpush.msra.mxu3 %v2809_v24 }
 0x523   :  { %v2732_v45 = vadd.f32 %v2707_v40, %v2652_v55  ;;  %v2639_v30 = vpop.f32.mrf.mxu2  ;;  %v2818_v55 = vld [vmem:[%s6313_s5 + $0x1c0] sm:$0xff] }
 0x524   :  { %2965 = vmatpush.msra.mxu3 %v2808_v14  ;;  %v2656_v61 = vadd.f32 %v2639_v30, %v5714_v0  ;;  %v2819_v0 = vld [vmem:[%s6313_s5 + $0x1c8] sm:$0xff]  ;;  %v2833_v14 = vld [vmem:[%s6313_s5 + $0x238] sm:$0xff] }
 0x525   :  { %v2745_v2 = vadd.f32 %v5848_v12, %v2732_v45 }
 0x526   :  { %2966 = vmatpush.msra.mxu3 %v2807_v62 }
 0x527   :  { %v2754_v46 = vmax.f32 %v2745_v2, 0.0 }
 0x528   :  { %2967 = vmatpush.msra.mxu3 %v2806_v6  ;;  %v2830_v6 = vld [vmem:[%s6313_s5 + $0x220] sm:$0xff] }
 0x529   :  { %3516 = vmatmul.msk.f32.vlgmr.msrb.gmra.mxu2 %vm2834_vm1, %v2754_v46 }
 0x52a   :  { %v2710_v32 = vpop.f32.mrf.mxu3  ;;  %2940 = vmatpush.msrb.mxu2 %v2801_v35  ;;  %2968 = vmatpush.msra.mxu3 %v2805_v48 }
 0x52b   :  { %v2733_v18 = vadd.f32 %v2710_v32, %v2653_v20  ;;  %v2642_v19 = vpop.f32.mrf.mxu2  ;;  %v2828_v20 = vld [vmem:[%s6313_s5 + $0x210] sm:$0xff]  ;;  %v2827_v32 = vld [vmem:[%s6313_s5 + $0x208] sm:$0xff] }
 0x52c   :  { %2941 = vmatpush.msrb.mxu2 %v2800_v21  ;;  %2969 = vmatpush.msra.mxu3 %v2804_v36  ;;  %v2657_v45 = vadd.f32 %v2642_v19, %v5755_v25  ;;  %v2829_v25 = vld [vmem:[%s6313_s5 + $0x218] sm:$0xff] }
 0x52d   :  { %v2746_v47 = vadd.f32 %v5848_v12, %v2733_v18  ;;  %v3058_v19 = vld [vmem:[%s6315_s7 + $0x18] sm:$0xff] }
 0x52e   :  { %2942 = vmatpush.msrb.mxu2 %v2799_v3  ;;  %2970 = vmatpush.msra.mxu3 %v2803_v59 }
 0x52f   :  { %v2755_v53 = vmax.f32 %v2746_v47, 0.0 }
 0x530   :  { %2943 = vmatpush.msrb.mxu2 %v2798_v17  ;;  %2971 = vmatpush.msra.mxu3 %v2802_v23 }
 0x531   :  { %3518 = vmatmul.msk.f32.vlgmr.msra.gmra.mxu2 %vm2834_vm1, %v2755_v53 }
 0x532   :  { %v2713_v7 = vpop.f32.mrf.mxu3  ;;  %2944 = vmatpush.msrb.mxu2 %v2797_v60 }
 0x533   :  { %v2734_v56 = vadd.f32 %v2713_v7, %v2654_v8  ;;  %v2645_v46 = vpop.f32.mrf.mxu2  ;;  %v3084_v8 = vld [vmem:[%s6315_s7 + $0xe8] sm:$0xff] }
 0x534   :  { %2945 = vmatpush.msrb.mxu2 %v2796_v26  ;;  %v2658_v48 = vadd.f32 %v2645_v46, %v5788_v29  ;;  %v2826_v29 = vld [vmem:[%s6313_s5 + $0x200] sm:$0xff]  ;;  %v3076_v7 = vld [vmem:[%s6315_s7 + $0xa8] sm:$0xff] }
 0x535   :  { %v2747_v16 = vadd.f32 %v5848_v12, %v2734_v56  ;;  %v3075_v26 = vld [vmem:[%s6315_s7 + $0xa0] sm:$0xff] }
 0x536   :  { %2946 = vmatpush.msrb.mxu2 %v2795_v13  ;;  %v3071_v56 = vld [vmem:[%s6315_s7 + $0x80] sm:$0xff]  ;;  %v3072_v13 = vld [vmem:[%s6315_s7 + $0x88] sm:$0xff] }
 0x537   :  { %v2756_v33 = vmax.f32 %v2747_v16, 0.0  ;;  %v3067_v16 = vld [vmem:[%s6315_s7 + $0x60] sm:$0xff] }
 0x538   :  { %2947 = vmatpush.msrb.mxu2 %v2794_v57  ;;  %v3068_v57 = vld [vmem:[%s6315_s7 + $0x68] sm:$0xff]  ;;  %v3583_v46 = vld [vmem:[%s6314_s6] ss:$0 sm:$0xff] }
 0x539   :  { %3519 = vmatmul.msk.f32.vlgmr.msrb.gmra.mxu3 %vm2834_vm1, %v2756_v33  ;;  %v3064_v33 = vld [vmem:[%s6315_s7 + $0x48] sm:$0xff] }
 0x53a   :  { %2988 = vmatpush.msra.mxu2 %v2817_v43  ;;  %v2716_v37 = vpop.f32.mrf.mxu3  ;;  %3012 = vmatpush.msrb.mxu3 %v2825_v28  ;;  %v3063_v43 = vld [vmem:[%s6315_s7 + $0x40] sm:$0xff] }
 0x53b   :  { %v2735_v58 = vadd.f32 %v2716_v37, %v2655_v22  ;;  %v2648_v59 = vpop.f32.mrf.mxu2  ;;  %v3059_v28 = vld [vmem:[%s6315_s7 + $0x20] sm:$0xff]  ;;  %v3085_v37 = vld [vmem:[%s6315_s7 + $0xf0] sm:$0xff] }
 0x53c   :  { %2989 = vmatpush.msra.mxu2 %v2816_v1  ;;  %3013 = vmatpush.msrb.mxu3 %v2824_v4  ;;  %v2659_v47 = vadd.f32 %v2648_v59, %v5827_v11  ;;  %v3079_v11 = vld [vmem:[%s6315_s7 + $0xc0] sm:$0xff]  ;;  %v3060_v1 = vld [vmem:[%s6315_s7 + $0x28] sm:$0xff] }
 0x53d   :  { %v2748_v51 = vadd.f32 %v5848_v12, %v2735_v58  ;;  %v3055_v22 = vld [vmem:[%s6315_s7] sm:$0xff]  ;;  %v3056_v4 = vld [vmem:[%s6315_s7 + $0x8] sm:$0xff]  ;;  %v3081_v58 = vld [vmem:[%s6315_s7 + $0xd0] sm:$0xff] }
 0x53e   :  { %2990 = vmatpush.msra.mxu2 %v2815_v9  ;;  %3014 = vmatpush.msrb.mxu3 %v2823_v50  ;;  %v3086_v9 = vld [vmem:[%s6315_s7 + $0xf8] sm:$0xff]  ;;  %v3196_v59 = vld [vmem:[%s6317_s9 + $0x60] sm:$0xff] }
 0x53f   :  { %v2757_v38 = vmax.f32 %v2748_v51, 0.0  ;;  %v3082_v50 = vld [vmem:[%s6315_s7 + $0xd8] sm:$0xff] }
 0x540   :  { %2991 = vmatpush.msra.mxu2 %v2814_v41  ;;  %3015 = vmatpush.msrb.mxu3 %v2822_v49  ;;  %v3077_v41 = vld [vmem:[%s6315_s7 + $0xb0] sm:$0xff]  ;;  %v3078_v51 = vld [vmem:[%s6315_s7 + $0xb8] sm:$0xff] }
 0x541   :  { %3520 = vmatmul.msk.f32.vlgmr.msrb.gmra.mxu2 %vm2834_vm1, %v2757_v38  ;;  %v3073_v38 = vld [vmem:[%s6315_s7 + $0x90] sm:$0xff] }
 0x542   :  { %v2719_v63 = vpop.f32.mrf.mxu3  ;;  %2992 = vmatpush.msra.mxu2 %v2813_v15  ;;  %3016 = vmatpush.msrb.mxu3 %v2821_v54  ;;  %v3074_v15 = vld [vmem:[%s6315_s7 + $0x98] sm:$0xff]  ;;  %v3069_v54 = vld [vmem:[%s6315_s7 + $0x70] sm:$0xff] }
 0x543   :  { %v2736_v5 = vadd.f32 %v2719_v63, %v2656_v61  ;;  %v3070_v61 = vld [vmem:[%s6315_s7 + $0x78] sm:$0xff] }
 0x544   :  { %2993 = vmatpush.msra.mxu2 %v2812_v42  ;;  %3017 = vmatpush.msrb.mxu3 %v2820_v31  ;;  %v3065_v42 = vld [vmem:[%s6315_s7 + $0x50] sm:$0xff]  ;;  %v3066_v63 = vld [vmem:[%s6315_s7 + $0x58] sm:$0xff] }
 0x545   :  { %v2749_v24 = vadd.f32 %v5848_v12, %v2736_v5  ;;  %v3061_v5 = vld [vmem:[%s6315_s7 + $0x30] sm:$0xff] }
 0x546   :  { %2994 = vmatpush.msra.mxu2 %v2811_v34  ;;  %3018 = vmatpush.msrb.mxu3 %v2819_v0  ;;  %v3062_v34 = vld [vmem:[%s6315_s7 + $0x38] sm:$0xff]  ;;  %v3057_v0 = vld [vmem:[%s6315_s7 + $0x10] sm:$0xff] }
 0x547   :  { %v2758_v40 = vmax.f32 %v2749_v24, 0.0 }
 0x548   :  { %2995 = vmatpush.msra.mxu2 %v2810_v44  ;;  %3019 = vmatpush.msrb.mxu3 %v2818_v55 }
 0x549   :  { %3521 = vmatmul.msk.f32.vlgmr.msra.gmra.mxu3 %vm2834_vm1, %v2758_v40 }
 0x54a   :  { %3036 = vmatpush.msrb.mxu2 %v2833_v14  ;;  %v2722_v62 = vpop.f32.mrf.mxu3  ;;  %3108 = vmatpush.msra.mxu3 %v3083_v10  ;;  %v3193_v10 = vld [vmem:[%s6317_s9 + $0x48] sm:$0xff] }
 0x54b   :  { %v2737_v2 = vadd.f32 %v2722_v62, %v2657_v45 }
 0x54c   :  { %3037 = vmatpush.msrb.mxu2 %v2832_v27  ;;  %3109 = vmatpush.msra.mxu3 %v3079_v11  ;;  %v3192_v11 = vld [vmem:[%s6317_s9 + $0x40] sm:$0xff] }
 0x54d   :  { %v2750_v52 = vadd.f32 %v5848_v12, %v2737_v2 }
 0x54e   :  { %3038 = vmatpush.msrb.mxu2 %v2831_v39  ;;  %3110 = vmatpush.msra.mxu3 %v3075_v26  ;;  %v3191_v26 = vld [vmem:[%s6317_s9 + $0x38] sm:$0xff] }
 0x54f   :  { %v2759_v35 = vmax.f32 %v2750_v52, 0.0 }
 0x550   :  { %3039 = vmatpush.msrb.mxu2 %v2830_v6  ;;  %3111 = vmatpush.msra.mxu3 %v3071_v56  ;;  %v3190_v56 = vld [vmem:[%s6317_s9 + $0x30] sm:$0xff] }
 0x551   :  { %3522 = vmatmul.msk.f32.vlgmr.msra.gmra.mxu2 %vm2834_vm1, %v2759_v35 }
 0x552   :  { %v2725_v21 = vpop.f32.mrf.mxu3  ;;  %3040 = vmatpush.msrb.mxu2 %v2829_v25  ;;  %3112 = vmatpush.msra.mxu3 %v3067_v16  ;;  %v3189_v16 = vld [vmem:[%s6317_s9 + $0x28] sm:$0xff] }
 0x553   :  { %v2738_v36 = vadd.f32 %v2725_v21, %v2658_v48  ;;  %v3199_v21 = vld [vmem:[%s6317_s9 + $0x78] sm:$0xff] }
 0x554   :  { %3041 = vmatpush.msrb.mxu2 %v2828_v20  ;;  %3113 = vmatpush.msra.mxu3 %v3063_v43  ;;  %v3188_v43 = vld [vmem:[%s6317_s9 + $0x20] sm:$0xff] }
 0x555   :  { %v2751_v18 = vadd.f32 %v5848_v12, %v2738_v36  ;;  %v3215_v36 = vld [vmem:[%s6317_s9 + $0xf8] sm:$0xff] }
 0x556   :  { %3042 = vmatpush.msrb.mxu2 %v2827_v32  ;;  %3114 = vmatpush.msra.mxu3 %v3059_v28  ;;  %v3198_v32 = vld [vmem:[%s6317_s9 + $0x70] sm:$0xff]  ;;  %v3187_v28 = vld [vmem:[%s6317_s9 + $0x18] sm:$0xff] }
 0x557   :  { %v2760_v3 = vmax.f32 %v2751_v18, 0.0  ;;  %v3214_v18 = vld [vmem:[%s6317_s9 + $0xf0] sm:$0xff] }
 0x558   :  { %3043 = vmatpush.msrb.mxu2 %v2826_v29  ;;  %3115 = vmatpush.msra.mxu3 %v3055_v22  ;;  %v3197_v29 = vld [vmem:[%s6317_s9 + $0x68] sm:$0xff]  ;;  %v3186_v22 = vld [vmem:[%s6317_s9 + $0x10] sm:$0xff] }
 0x559   :  { %3523 = vmatmul.msk.f32.vlgmr.msrb.gmra.mxu3 %vm2834_vm1, %v2760_v3  ;;  %v3213_v3 = vld [vmem:[%s6317_s9 + $0xe8] sm:$0xff] }
 0x55a   :  { %v2728_v17 = vpop.f32.mrf.mxu3  ;;  %3128 = vmatpush.msra.mxu2 %v3084_v8  ;;  %3148 = vmatpush.msrb.mxu3 %v3085_v37  ;;  %v3209_v8 = vld [vmem:[%s6317_s9 + $0xc8] sm:$0xff] }
 0x55b   :  { %v2739_v23 = vadd.f32 %v2728_v17, %v2659_v47  ;;  %v3212_v47 = vld [vmem:[%s6317_s9 + $0xe0] sm:$0xff]  ;;  %v3195_v17 = vld [vmem:[%s6317_s9 + $0x58] sm:$0xff]  ;;  %v3201_v37 = vld [vmem:[%s6317_s9 + $0x88] sm:$0xff] }
 0x55c   :  { %3149 = vmatpush.msrb.mxu3 %v3081_v58  ;;  %v3200_v58 = vld [vmem:[%s6317_s9 + $0x80] sm:$0xff] }
 0x55d   :  { %v2752_v53 = vadd.f32 %v5848_v12, %v2739_v23  ;;  %v3080_v12 = vld [vmem:[%s6315_s7 + $0xc8] sm:$0xff]  ;;  %v3211_v23 = vld [vmem:[%s6317_s9 + $0xd8] sm:$0xff]  ;;  %s3363_s7 = sshll.u32 %s6321_s13, 4  ;;  %s3364_s7 = int_to_ptr.hbm [resolvable:$true] %s3363_s7 }
 0x55e   :  { %3129 = vmatpush.msra.mxu2 %v3080_v12  ;;  %3150 = vmatpush.msrb.mxu3 %v3077_v41  ;;  %v3208_v12 = vld [vmem:[%s6317_s9 + $0xc0] sm:$0xff]  ;;  %v3291_v41 = vld [vmem:[%s6319_s11 + $0xf8] sm:$0xff] }
 0x55f   :  { %v2761_v60 = vmax.f32 %v2752_v53, 0.0  ;;  %v3194_v53 = vld [vmem:[%s6317_s9 + $0x50] sm:$0xff] }
 0x560   :  { %3130 = vmatpush.msra.mxu2 %v3076_v7  ;;  %3151 = vmatpush.msrb.mxu3 %v3073_v38  ;;  %v3207_v7 = vld [vmem:[%s6317_s9 + $0xb8] sm:$0xff]  ;;  %v3273_v38 = vld [vmem:[%s6319_s11 + $0x68] sm:$0xff] }
 0x561   :  { %3524 = vmatmul.msk.f32.vlgmr.msrb.gmra.mxu2 %vm2834_vm1, %v2761_v60  ;;  %v3210_v60 = vld [vmem:[%s6317_s9 + $0xd0] sm:$0xff] }
 0x562   :  { %3131 = vmatpush.msra.mxu2 %v3072_v13  ;;  %3152 = vmatpush.msrb.mxu3 %v3069_v54  ;;  %v3206_v13 = vld [vmem:[%s6317_s9 + $0xb0] sm:$0xff]  ;;  %v3272_v54 = vld [vmem:[%s6319_s11 + $0x60] sm:$0xff] }
 0x564   :  { %3132 = vmatpush.msra.mxu2 %v3068_v57  ;;  %3153 = vmatpush.msrb.mxu3 %v3065_v42  ;;  %v3205_v57 = vld [vmem:[%s6317_s9 + $0xa8] sm:$0xff]  ;;  %v3271_v42 = vld [vmem:[%s6319_s11 + $0x58] sm:$0xff] }
 0x566   :  { %3133 = vmatpush.msra.mxu2 %v3064_v33  ;;  %3154 = vmatpush.msrb.mxu3 %v3061_v5  ;;  %v3204_v33 = vld [vmem:[%s6317_s9 + $0xa0] sm:$0xff]  ;;  %v3286_v5 = vld [vmem:[%s6319_s11 + $0xd0] sm:$0xff] }
 0x568   :  { %3134 = vmatpush.msra.mxu2 %v3060_v1  ;;  %3155 = vmatpush.msrb.mxu3 %v3057_v0  ;;  %v3203_v1 = vld [vmem:[%s6317_s9 + $0x98] sm:$0xff]  ;;  %v3285_v0 = vld [vmem:[%s6319_s11 + $0xc8] sm:$0xff] }
 0x56a   :  { %3135 = vmatpush.msra.mxu2 %v3056_v4  ;;  %v3202_v4 = vld [vmem:[%s6317_s9 + $0x90] sm:$0xff] }
 0x56c   :  { %3168 = vmatpush.msrb.mxu2 %v3086_v9  ;;  %v3184_v9 = vld [vmem:[%s6317_s9] sm:$0xff] }
 0x56e   :  { %3169 = vmatpush.msrb.mxu2 %v3082_v50  ;;  %v3275_v50 = vld [vmem:[%s6319_s11 + $0x78] sm:$0xff] }
 0x570   :  { %3170 = vmatpush.msrb.mxu2 %v3078_v51  ;;  %v3274_v51 = vld [vmem:[%s6319_s11 + $0x70] sm:$0xff] }
 0x572   :  { %3171 = vmatpush.msrb.mxu2 %v3074_v15  ;;  %v3289_v15 = vld [vmem:[%s6319_s11 + $0xe8] sm:$0xff] }
 0x574   :  { %3172 = vmatpush.msrb.mxu2 %v3070_v61  ;;  %v3288_v61 = vld [vmem:[%s6319_s11 + $0xe0] sm:$0xff] }
 0x576   :  { %3173 = vmatpush.msrb.mxu2 %v3066_v63  ;;  %v3270_v63 = vld [vmem:[%s6319_s11 + $0x50] sm:$0xff] }
 0x578   :  { %3174 = vmatpush.msrb.mxu2 %v3062_v34  ;;  %v3269_v34 = vld [vmem:[%s6319_s11 + $0x48] sm:$0xff] }
 0x57a   :  { %3175 = vmatpush.msrb.mxu2 %v3058_v19  ;;  %v3268_v19 = vld [vmem:[%s6319_s11 + $0x40] sm:$0xff] }
 0x5a4   :  { %v2878_v49 = vpop.f32.mrf.mxu3 }
 0x5ac   :  { %v2855_v30 = vpop.f32.mrf.mxu2 }
 0x5ad   :  { %v2879_v55 = vadd.f32 %v2878_v49, %v2855_v30  ;;  %v3185_v30 = vld [vmem:[%s6317_s9 + $0x8] sm:$0xff]  ;;  %v3290_v49 = vld [vmem:[%s6319_s11 + $0xf0] sm:$0xff] }
 0x5b4   :  { %v2901_v31 = vpop.f32.mrf.mxu2 }
 0x5b5   :  { %v2904_v40 = vadd.f32 %v2901_v31, %v2879_v55  ;;  %v3287_v31 = vld [vmem:[%s6319_s11 + $0xd8] sm:$0xff] }
 0x5b6   :  { %v3283_v55 = vld [vmem:[%s6319_s11 + $0xb8] sm:$0xff] }
 0x5bc   :  { %v2925_v24 = vpop.f32.mrf.mxu3 }
 0x5bd   :  { %v2928_v27 = vadd.f32 %v2925_v24, %v2904_v40  ;;  %v3284_v24 = vld [vmem:[%s6319_s11 + $0xc0] sm:$0xff]  ;;  %v3282_v40 = vld [vmem:[%s6319_s11 + $0xb0] sm:$0xff] }
 0x5c4   :  { %v2949_v44 = vpop.f32.mrf.mxu2 }
 0x5c5   :  { %v2952_v62 = vadd.f32 %v2949_v44, %v2928_v27  ;;  %v3267_v44 = vld [vmem:[%s6319_s11 + $0x38] sm:$0xff]  ;;  %v3265_v27 = vld [vmem:[%s6319_s11 + $0x28] sm:$0xff] }
 0x5cc   :  { %v2973_v14 = vpop.f32.mrf.mxu3 }
 0x5cd   :  { %v2976_v39 = vadd.f32 %v2973_v14, %v2952_v62  ;;  %v3266_v14 = vld [vmem:[%s6319_s11 + $0x30] sm:$0xff]  ;;  %v3264_v62 = vld [vmem:[%s6319_s11 + $0x20] sm:$0xff] }
 0x5d4   :  { %v2997_v45 = vpop.f32.mrf.mxu2 }
 0x5d5   :  { %v3000_v6 = vadd.f32 %v2997_v45, %v2976_v39  ;;  %v3281_v45 = vld [vmem:[%s6319_s11 + $0xa8] sm:$0xff]  ;;  %v3280_v39 = vld [vmem:[%s6319_s11 + $0xa0] sm:$0xff] }
 0x5dc   :  { %v3021_v2 = vpop.f32.mrf.mxu3 }
 0x5dd   :  { %v3024_v52 = vadd.f32 %v3021_v2, %v3000_v6  ;;  %v3263_v2 = vld [vmem:[%s6319_s11 + $0x18] sm:$0xff] }
 0x5de   :  { %v3279_v6 = vld [vmem:[%s6319_s11 + $0x98] sm:$0xff] }
 0x5e4   :  { %v3045_v35 = vpop.f32.mrf.mxu2 }
 0x5e5   :  { %v3048_v25 = vadd.f32 %v3045_v35, %v3024_v52  ;;  %v3262_v52 = vld [vmem:[%s6319_s11 + $0x10] sm:$0xff]  ;;  %v3261_v35 = vld [vmem:[%s6319_s11 + $0x8] sm:$0xff] }
 0x5e7   :  { %v3053_v48 = vadd.f32 %v3583_v46, %v3048_v25  ;;  %v3278_v46 = vld [vmem:[%s6319_s11 + $0x90] sm:$0xff]  ;;  %v3277_v25 = vld [vmem:[%s6319_s11 + $0x88] sm:$0xff] }
 0x5e9   :  { %v3054_v20 = vmax.f32 %v3053_v48, 0.0  ;;  %v3260_v48 = vld [vmem:[%s6319_s11] sm:$0xff] }
 0x5eb   :  { %3525 = vmatmul.msk.f32.vlgmr.msra.gmra.mxu3 %vm2834_vm1, %v3054_v20  ;;  %3526 = vmatmul.msk.f32.vlgmr.msra.gmra.mxu2 %vm2834_vm1, %v3054_v20 }
 0x5ec   :  { %3220 = vmatpush.msra.mxu3 %v3199_v21  ;;  %3240 = vmatpush.msra.mxu2 %v3215_v36  ;;  %v3087_v21 = vld [vmem:[%s6316_s8] sm:$0xf] }
 0x5ed   :  { %v3089_v36 = vperm.slane %v3087_v21, 0 }
 0x5ee   :  { %3221 = vmatpush.msra.mxu3 %v3198_v32  ;;  %3241 = vmatpush.msra.mxu2 %v3214_v18  ;;  %v3090_v32 = vperm.slane %v3087_v21, 1 }
 0x5f0   :  { %3222 = vmatpush.msra.mxu3 %v3197_v29  ;;  %3242 = vmatpush.msra.mxu2 %v3213_v3 }
 0x5f2   :  { %3223 = vmatpush.msra.mxu3 %v3196_v59  ;;  %3243 = vmatpush.msra.mxu2 %v3212_v47 }
 0x5f3   :  { %3527 = vmatmul.msk.f32.vlgmr.msrb.gmra.mxu3 %vm2834_vm1, %v3054_v20  ;;  %3528 = vmatmul.msk.f32.vlgmr.msrb.gmra.mxu2 %vm2834_vm1, %v3054_v20  ;;  %v3276_v20 = vld [vmem:[%s6319_s11 + $0x80] sm:$0xff] }
 0x5f4   :  { %3224 = vmatpush.msra.mxu3 %v3195_v17  ;;  %3244 = vmatpush.msra.mxu2 %v3211_v23  ;;  %v3091_v23 = vperm.slane %v3087_v21, 2 }
 0x5f6   :  { %3225 = vmatpush.msra.mxu3 %v3194_v53  ;;  %3245 = vmatpush.msra.mxu2 %v3210_v60  ;;  %v3092_v53 = vperm.slane %v3087_v21, 3 }
 0x5f8   :  { %3226 = vmatpush.msra.mxu3 %v3193_v10  ;;  %3246 = vmatpush.msra.mxu2 %v3209_v8 }
 0x5fa   :  { %3227 = vmatpush.msra.mxu3 %v3192_v11  ;;  %3247 = vmatpush.msra.mxu2 %v3208_v12 }
 0x5fc   :  { %3228 = vmatpush.msra.mxu3 %v3191_v26  ;;  %3248 = vmatpush.msra.mxu2 %v3207_v7  ;;  %v3617_v7 = vmov 0  }
 0x5fd   :  { %3580 = vset.pattern.permute.xlu0 %v3617_v7 }
 0x5fe   :  { %3229 = vmatpush.msra.mxu3 %v3190_v56  ;;  %3249 = vmatpush.msra.mxu2 %v3206_v13  ;;  %v3584_v56 = vld [vmem:[%s6318_s10] ss:$0 sm:$0xff]  ;;  %s3619_s10 = smov [#allocation3]  }
 0x5ff   :  { %s3361_s26 = sshll.u32 %s3619_s10, 4  ;;  %s3362_s26 = int_to_ptr.vmem [resolvable:$true] %s3361_s26 }
 0x600   :  { %3230 = vmatpush.msra.mxu3 %v3189_v16  ;;  %3250 = vmatpush.msra.mxu2 %v3205_v57 }
 0x602   :  { %3231 = vmatpush.msra.mxu3 %v3188_v43  ;;  %3251 = vmatpush.msra.mxu2 %v3204_v33 }
 0x604   :  { %3232 = vmatpush.msra.mxu3 %v3187_v28  ;;  %3252 = vmatpush.msra.mxu2 %v3203_v1  ;;  %v3585_v28 = vld [vmem:[#allocation2] ss:$0 sm:$0xff] }
 0x606   :  { %3233 = vmatpush.msra.mxu3 %v3186_v22  ;;  %3253 = vmatpush.msra.mxu2 %v3202_v4 }
 0x608   :  { %3234 = vmatpush.msra.mxu3 %v3185_v30  ;;  %3254 = vmatpush.msra.mxu2 %v3201_v37  ;;  %v3618_v37 = vmov 6.0  }
 0x609   :  { %3586 = vrcp.f32 %v3618_v37 }
 0x60a   :  { %3235 = vmatpush.msra.mxu3 %v3184_v9  ;;  %3255 = vmatpush.msra.mxu2 %v3200_v58 }
 0x60c   :  { %3296 = vmatpush.msrb.mxu3 %v3275_v50  ;;  %3316 = vmatpush.msrb.mxu2 %v3291_v41 }
 0x60e   :  { %3297 = vmatpush.msrb.mxu3 %v3274_v51  ;;  %3317 = vmatpush.msrb.mxu2 %v3290_v49 }
 0x60f   :  { %v3587_v9 = vpop.eup %3586 }
 0x610   :  { %3298 = vmatpush.msrb.mxu3 %v3273_v38  ;;  %3318 = vmatpush.msrb.mxu2 %v3289_v15  ;;  %v3347_v58 = vmul.f32 6.0, %v3587_v9  ;;  %vm3351_vm3 = vweird.f32 %v3587_v9 }
 0x612   :  { %3299 = vmatpush.msrb.mxu3 %v3272_v54  ;;  %3319 = vmatpush.msrb.mxu2 %v3288_v61  ;;  %v3348_v50 = vsub.f32 1.0, %v3347_v58 }
 0x614   :  { %3300 = vmatpush.msrb.mxu3 %v3271_v42  ;;  %3320 = vmatpush.msrb.mxu2 %v3287_v31  ;;  %v3349_v41 = vmul.f32 %v3587_v9, %v3348_v50 }
 0x616   :  { %3301 = vmatpush.msrb.mxu3 %v3270_v63  ;;  %3321 = vmatpush.msrb.mxu2 %v3286_v5  ;;  %v3350_v49 = vadd.f32 %v3587_v9, %v3349_v41 }
 0x618   :  { %3302 = vmatpush.msrb.mxu3 %v3269_v34  ;;  %3322 = vmatpush.msrb.mxu2 %v3285_v0  ;;  %v3352_v38 = vsel %vm3351_vm3, %v3587_v9, %v3350_v49 }
 0x61a   :  { %3303 = vmatpush.msrb.mxu3 %v3268_v19  ;;  %3323 = vmatpush.msrb.mxu2 %v3284_v24 }
 0x61c   :  { %3304 = vmatpush.msrb.mxu3 %v3267_v44  ;;  %3324 = vmatpush.msrb.mxu2 %v3283_v55 }
 0x61e   :  { %3305 = vmatpush.msrb.mxu3 %v3266_v14  ;;  %3325 = vmatpush.msrb.mxu2 %v3282_v40 }
 0x620   :  { %3306 = vmatpush.msrb.mxu3 %v3265_v27  ;;  %3326 = vmatpush.msrb.mxu2 %v3281_v45 }
 0x622   :  { %3307 = vmatpush.msrb.mxu3 %v3264_v62  ;;  %3327 = vmatpush.msrb.mxu2 %v3280_v39 }
 0x624   :  { %3308 = vmatpush.msrb.mxu3 %v3263_v2  ;;  %3328 = vmatpush.msrb.mxu2 %v3279_v6 }
 0x626   :  { %3309 = vmatpush.msrb.mxu3 %v3262_v52  ;;  %3329 = vmatpush.msrb.mxu2 %v3278_v46 }
 0x628   :  { %3310 = vmatpush.msrb.mxu3 %v3261_v35  ;;  %3330 = vmatpush.msrb.mxu2 %v3277_v25 }
 0x62a   :  { %3311 = vmatpush.msrb.mxu3 %v3260_v48  ;;  %3331 = vmatpush.msrb.mxu2 %v3276_v20 }
 0x66e   :  { %v3117_v18 = vpop.f32.mrf.mxu3  ;;  %v3137_v29 = vpop.f32.mrf.mxu2 }
 0x66f   :  { %v3118_v3 = vadd.f32 %v3117_v18, %v3089_v36  ;;  %v3138_v59 = vadd.f32 %v3137_v29, %v3090_v32 }
 0x671   :  { %v3180_v47 = vmax.f32 %v3118_v3, 0.0  ;;  %v3181_v17 = vmax.f32 %v3138_v59, 0.0 }
 0x673   :  { %3236 = vmatmul.f32.vlgmr.msra.gmra.mxu3 %v3180_v47  ;;  %3256 = vmatmul.f32.vlgmr.msra.gmra.mxu2 %v3181_v17 }
 0x676   :  { %v3157_v60 = vpop.f32.mrf.mxu3  ;;  %v3177_v10 = vpop.f32.mrf.mxu2 }
 0x677   :  { %v3158_v8 = vadd.f32 %v3157_v60, %v3091_v23  ;;  %v3178_v11 = vadd.f32 %v3177_v10, %v3092_v53 }
 0x679   :  { %v3182_v12 = vmax.f32 %v3158_v8, 0.0  ;;  %v3183_v26 = vmax.f32 %v3178_v11, 0.0 }
 0x67b   :  { %3312 = vmatmul.f32.vlgmr.msrb.gmra.mxu3 %v3182_v12  ;;  %3332 = vmatmul.f32.vlgmr.msrb.gmra.mxu2 %v3183_v26 }
 0x6f6   :  { %v3237_v13 = vpop.f32.mrf.mxu3  ;;  %v3257_v57 = vpop.f32.mrf.mxu2 }
 0x6f7   :  { %v3238_v16 = vadd.f32 %v3584_v56, %v3237_v13 }
 0x6f9   :  { %v3258_v43 = vadd.f32 %v3257_v57, %v3238_v16 }
 0x6fb   :  { %v3343_v33 = vsel %vm3342_vm2, %v3258_v43, 0.0 }
 0x6fc   :  { %3344 = vadd.xlane.f32.xlu0 %v3343_v33 }
 0x6fe   :  { %v3313_v1 = vpop.f32.mrf.mxu3  ;;  %v3333_v4 = vpop.f32.mrf.mxu2 }
 0x6ff   :  { %v3314_v22 = vadd.f32 %v3585_v28, %v3313_v1 }
 0x701   :  { %v3334_v30 = vadd.f32 %v3333_v4, %v3314_v22 }
 0x710   :  { %3338 = vperm.xlu0 %3580, %v3334_v30  }
 0x76f   :  { %v3345_v51 = vpop.xlane.xlu0 %3344 }
 0x770   :  { %v3353_v54 = vmul.f32 %v3352_v38, %v3345_v51 }
 0x782   :  { %v3339_v15 = vpop.permute.xlu0 %3338 }
 0x783   :  { %v3341_v61 = vadd.f32 %v3339_v15, %v3258_v43 }
 0x785   :  { %v3354_v42 = vsub.f32 %v3341_v61, %v3353_v54 }
 0x787   :  { %3355 = vst.msk [vmem:[#allocation3] sm:$0xff] %vm3342_vm2, %v3354_v42 }
 0x788   :  { %3366 = dma.vmem_to_hbm [thread:$0]  %s3362_s26, 128, %s3364_s7, [#allocation4]  }
 0x789   :  { %3615 = dma.done.wait [#allocation4], 128  }
 0x78a   :  { %3616 = vsyncadd [#allocation4], 4294967168 }
 0x78b   :  { %3371 = vsyncpa [#allocation4], 1 }

</bundles_post_ra>
